<compile_context>
chip_gen: v6e
topology: v6e:2x2x1
jax: 0.10.0
libtpu: 0.0.40
codegen_flags: <defaults>
</compile_context>

<pallas_src>
import math
import functools
import numpy as np

import jax
import jax.numpy as jnp
from jax.experimental import pallas as pl
from jax.experimental.pallas import tpu as pltpu


def _attention_kernel(xq_ref, xf_ref, qvec_ref, kvec_ref, logw_ref,
                      wq_ref, bq_ref, wkv_ref, bkv_ref, wp_ref, bp_ref,
                      lnw_ref, lnb_ref, o_ref,
                      *, num_heads, scale, pre_norm, eps, cos_cutoff):
    xq = xq_ref[0]          # (TQ, C) query tile of x (pre-norm residual)
    xf = xf_ref[0]          # (N, C)  full sequence (source of k/v)

    def layernorm(t):
        mu = jnp.mean(t, axis=-1, keepdims=True)
        var = jnp.mean((t - mu) ** 2, axis=-1, keepdims=True)
        return (t - mu) * jax.lax.rsqrt(var + eps) * lnw_ref[...] + lnb_ref[...]

    xqn = layernorm(xq) if pre_norm else xq
    xfn = layernorm(xf) if pre_norm else xf

    # 1x1 convs == per-token linear layers.  k|v fused into one wider MXU pass.
    q = jnp.dot(xqn, wq_ref[...], preferred_element_type=jnp.float32) + bq_ref[...]
    kv = jnp.dot(xfn, wkv_ref[...], preferred_element_type=jnp.float32) + bkv_ref[...]
    C = q.shape[-1]
    k = kv[:, :C]                                                         # (N, C)
    v = kv[:, C:]                                                         # (N, C)

    # Neighborhood bias rebuilt on the fly from O(N) geometry:
    #   cos(great-circle distance) = <unit_vec_q, unit_vec_k>  (zero-padded to K=8)
    cosd = jnp.dot(qvec_ref[...], kvec_ref[...],
                   preferred_element_type=jnp.float32)                    # (TQ, N)
    bias = jnp.where(cosd >= cos_cutoff, logw_ref[...], -1e30)            # (TQ, N)

    hd = C // num_heads
    out = jnp.zeros(xq.shape, jnp.float32)                                # (TQ, C)
    for h in range(num_heads):                                            # static unroll
        sl = slice(h * hd, (h + 1) * hd)
        # scores: contract both operands on their last dim (no explicit k.T);
        # scale applied to the scores, matching the module's operation order.
        s = jax.lax.dot_general(q[:, sl], k[:, sl],
                                (((1,), (1,)), ((), ())),
                                preferred_element_type=jnp.float32) * scale + bias
        s = s - jnp.max(s, axis=-1, keepdims=True)
        p = jnp.exp(s)
        # Exact reciprocal (one divide per query row); approx EUP rcp was the
        # source of the tolerance failure.
        p = p * (1.0 / jnp.sum(p, axis=-1, keepdims=True))
        head_out = jnp.dot(p, v[:, sl], preferred_element_type=jnp.float32)  # (TQ, hd)
        # Output projection fused per head: concat_h(head_out) @ wp == sum_h head_out @ wp[rows_h]
        out = out + jnp.dot(head_out, wp_ref[sl, :], preferred_element_type=jnp.float32)

    o_ref[0] = xq + out + bp_ref[...]


def _vmem_limit_bytes(N, C, block_q):
    f = 4  # float32
    # pipeline blocks (double-buffered by default)
    blocks = 2 * f * (block_q * C + N * C + block_q * 8 + 8 * N + N
                      + C * C + C + 2 * C * C + 2 * C + C * C + C + 2 * C
                      + block_q * C)
    # in-kernel temporaries: normalized x, fused kv, q, cosd/bias/score/prob tiles
    temps = f * (N * C + block_q * C + 2 * N * C + block_q * C
                 + 4 * block_q * N + 2 * block_q * C)
    est = blocks + temps
    return min(64 * 1024 * 1024, max(32 * 1024 * 1024, 4 * est))


def attention_wrapper_forward(x_nchw, params, *, num_heads, pre_norm, theta_cutoff,
                              block_q=128):
    B, C, H, W = x_nchw.shape
    N = H * W
    assert C % num_heads == 0, "channels must be divisible by num_heads"
    if block_q >= N:
        block_q = N
    assert N % block_q == 0 and block_q % 8 == 0

    dtype = x_nchw.dtype
    # NCHW -> (B, N, C); the module runs the neighborhood-attention branch in f32.
    x = jnp.transpose(x_nchw, (0, 2, 3, 1)).reshape(B, N, C).astype(jnp.float32)

    scale = 1.0 / math.sqrt(C // num_heads)
    kernel = functools.partial(_attention_kernel, num_heads=num_heads, scale=scale,
                               pre_norm=pre_norm, eps=1e-5,
                               cos_cutoff=math.cos(theta_cutoff))

    grid = (B, N // block_q)
    const = lambda b, qt: (0, 0)
    in_specs = [
        pl.BlockSpec((1, block_q, C), lambda b, qt: (b, qt, 0)),   # x, query tile
        pl.BlockSpec((1, N, C), lambda b, qt: (b, 0, 0)),          # x, full sequence (k/v)
        pl.BlockSpec((block_q, 8), lambda b, qt: (qt, 0)),         # query geometry tile
        pl.BlockSpec((8, N), const),                               # key geometry
        pl.BlockSpec((1, N), const),                               # log quadrature weights
        pl.BlockSpec((C, C), const),                               # wq  (stored (C_in, C_out))
        pl.BlockSpec((1, C), const),                               # bq
        pl.BlockSpec((C, 2 * C), const),                           # wkv (fused k|v)
        pl.BlockSpec((1, 2 * C), const),                           # bkv
        pl.BlockSpec((C, C), const),                               # w_proj
        pl.BlockSpec((1, C), const),                               # b_proj
        pl.BlockSpec((1, C), const),                               # layernorm weight
        pl.BlockSpec((1, C), const),                               # layernorm bias
    ]

    out = pl.pallas_call(
        kernel,
        out_shape=jax.ShapeDtypeStruct((B, N, C), jnp.float32),
        grid=grid,
        in_specs=in_specs,
        out_specs=pl.BlockSpec((1, block_q, C), lambda b, qt: (b, qt, 0)),
        compiler_params=pltpu.CompilerParams(
            dimension_semantics=("parallel", "parallel"),
            vmem_limit_bytes=_vmem_limit_bytes(N, C, block_q)),
    )(x, x, params["qvec"], params["kvec"], params["logw"],
      params["wq"], params["bq"], params["wkv"], params["bkv"],
      params["wp"], params["bp"], params["ln_w"], params["ln_b"])

    y = out.reshape(B, H, W, C).transpose(0, 3, 1, 2)   # back to NCHW
    return y.astype(dtype)


def build_s2_geometry(nlat, nlon):
    """O(N) geometry: unit-sphere vectors (zero-padded to 8) + log quadrature weights."""
    theta = np.linspace(0.0, np.pi, nlat)
    phi = np.linspace(0.0, 2.0 * np.pi, nlon, endpoint=False)
    tt, pp = np.meshgrid(theta, phi, indexing="ij")
    tt = tt.reshape(-1)
    pp = pp.reshape(-1)
    xyz = np.stack([np.sin(tt) * np.cos(pp),
                    np.sin(tt) * np.sin(pp),
                    np.cos(tt)], axis=-1)                           # (N, 3) unit vectors
    n = xyz.shape[0]
    qvec = np.zeros((n, 8), np.float32)
    qvec[:, :3] = xyz
    kvec = np.zeros((8, n), np.float32)
    kvec[:3, :] = xyz.T

    # Quadrature weights of the input grid: cell-integrated sin(theta) dtheta * dphi.
    # TODO(synk): torch_harmonics uses Clenshaw-Curtis latitude weights for the
    # "equiangular" grid; an exact cell-integrated sin(theta) rule is used here instead.
    dtheta = np.pi / (nlat - 1)
    a = np.clip(theta - 0.5 * dtheta, 0.0, np.pi)
    b = np.clip(theta + 0.5 * dtheta, 0.0, np.pi)
    w_lat = np.cos(a) - np.cos(b)
    quad_w = (w_lat[:, None] * np.ones((1, nlon)) * (2.0 * np.pi / nlon)).reshape(-1)
    logw = np.log(quad_w).astype(np.float32)[None, :]               # (1, N)
    return jnp.asarray(qvec), jnp.asarray(kvec), jnp.asarray(logw)


def make_params(key, channels, nlat, nlon):
    ks = jax.random.split(key, 8)
    s = 1.0 / math.sqrt(channels)
    qvec, kvec, logw = build_s2_geometry(nlat, nlon)
    # Conv2d 1x1 weights W[out, in, 1, 1] are stored transposed as (C_in, C_out)
    # so the kernel computes y = x @ W + b directly.  k and v are fused into one
    # (C, 2C) weight so the kernel does a single wider MXU pass.
    wk = jax.random.normal(ks[2], (channels, channels), jnp.float32) * s
    bk = jax.random.normal(ks[3], (1, channels), jnp.float32) * 0.01
    wv = jax.random.normal(ks[4], (channels, channels), jnp.float32) * s
    bv = jax.random.normal(ks[5], (1, channels), jnp.float32) * 0.01
    params = {
        "wq": jax.random.normal(ks[0], (channels, channels), jnp.float32) * s,
        "bq": jax.random.normal(ks[1], (1, channels), jnp.float32) * 0.01,
        "wkv": jnp.concatenate([wk, wv], axis=1),                   # (C, 2C)
        "bkv": jnp.concatenate([bk, bv], axis=1),                   # (1, 2C)
        "wp": jax.random.normal(ks[6], (channels, channels), jnp.float32) * s,
        "bp": jax.random.normal(ks[7], (1, channels), jnp.float32) * 0.01,
        # LayerNorm init per AttentionWrapper._init_weights: weight=1, bias=0.
        "ln_w": jnp.ones((1, channels), jnp.float32),
        "ln_b": jnp.zeros((1, channels), jnp.float32),
        "qvec": qvec, "kvec": kvec, "logw": logw,
    }
    return params


def reference_forward(x_nchw, params, *, num_heads, pre_norm, theta_cutoff):
    """Pure-JAX reference of the same forward pass (for verification)."""
    B, C, H, W = x_nchw.shape
    x = jnp.transpose(x_nchw, (0, 2, 3, 1)).reshape(B, H * W, C).astype(jnp.float32)
    residual = x
    if pre_norm:
        mu = x.mean(-1, keepdims=True)
        var = ((x - mu) ** 2).mean(-1, keepdims=True)
        xn = (x - mu) / jnp.sqrt(var + 1e-5) * params["ln_w"][0] + params["ln_b"][0]
    else:
        xn = x
    q = xn @ params["wq"] + params["bq"][0]
    kv = xn @ params["wkv"] + params["bkv"][0]
    k, v = kv[..., :C], kv[..., C:]
    hd = C // num_heads
    scale = 1.0 / math.sqrt(hd)
    # Same zero-padded geometry product as the kernel (cos of great-circle distance).
    cosd = jnp.dot(params["qvec"], params["kvec"])
    bias = jnp.where(cosd >= math.cos(theta_cutoff), params["logw"], -1e30)
    q = q.reshape(B, -1, num_heads, hd)
    k = k.reshape(B, -1, num_heads, hd)
    v = v.reshape(B, -1, num_heads, hd)
    s = jnp.einsum("bnhd,bmhd->bhnm", q, k) * scale + bias[None, None]
    a = jax.nn.softmax(s, axis=-1)
    o = jnp.einsum("bhnm,bmhd->bnhd", a, v).reshape(B, -1, C)
    o = o @ params["wp"] + params["bp"][0]
    y = residual + o
    return jnp.transpose(y.reshape(B, H, W, C), (0, 3, 1, 2)).astype(x_nchw.dtype)


if __name__ == "__main__":
    B, C, heads = 2, 32, 4
    nlat, nlon = 8, 16
    pre_norm = True
    theta_cutoff = 7.0 / math.sqrt(math.pi) * math.pi / (nlat - 1)

    key = jax.random.PRNGKey(0)
    kx, kp = jax.random.split(key)
    x = jax.random.normal(kx, (B, C, nlat, nlon), jnp.float32)
    params = make_params(kp, C, nlat, nlon)

    y = attention_wrapper_forward(x, params, num_heads=heads, pre_norm=pre_norm,
                                  theta_cutoff=theta_cutoff)
    y = jax.block_until_ready(y)

    y_ref = reference_forward(x, params, num_heads=heads, pre_norm=pre_norm,
                              theta_cutoff=theta_cutoff)
    np.testing.assert_allclose(np.asarray(y), np.asarray(y_ref), rtol=2e-3, atol=2e-3)

    print("KERNEL_OK")
</pallas_src>

<mosaic_0001>
module attributes {stable_mosaic.version = 11 : i64} {
  func.func @_attention_kernel(%arg0: i32, %arg1: i32, %arg2: memref<1x128x32xf32, #tpu.memory_space<vmem>>, %arg3: memref<1x128x32xf32, #tpu.memory_space<vmem>>, %arg4: memref<128x8xf32, #tpu.memory_space<vmem>>, %arg5: memref<8x128xf32, #tpu.memory_space<vmem>>, %arg6: memref<1x128xf32, #tpu.memory_space<vmem>>, %arg7: memref<32x32xf32, #tpu.memory_space<vmem>>, %arg8: memref<1x32xf32, #tpu.memory_space<vmem>>, %arg9: memref<32x64xf32, #tpu.memory_space<vmem>>, %arg10: memref<1x64xf32, #tpu.memory_space<vmem>>, %arg11: memref<32x32xf32, #tpu.memory_space<vmem>>, %arg12: memref<1x32xf32, #tpu.memory_space<vmem>>, %arg13: memref<1x32xf32, #tpu.memory_space<vmem>>, %arg14: memref<1x32xf32, #tpu.memory_space<vmem>>, %arg15: memref<1x128x32xf32, #tpu.memory_space<vmem>>) attributes {dimension_semantics = [#tpu.dimension_semantics<parallel>, #tpu.dimension_semantics<parallel>], iteration_bounds = array<i64: 2, 1>, scalar_prefetch = 0 : i64, scratch_operands = 0 : i64, tpu.core_type = #tpu.core_type<tc>, window_params = [{transform_indices = @transform_0, window_bounds = array<i64: 1, 128, 32>}, {transform_indices = @transform_1, window_bounds = array<i64: 1, 128, 32>}, {transform_indices = @transform_2, window_bounds = array<i64: 128, 8>}, {pipeline_mode = #tpu.pipeline_mode<synchronous>, transform_indices = @transform_3, window_bounds = array<i64: 8, 128>}, {pipeline_mode = #tpu.pipeline_mode<synchronous>, transform_indices = @transform_4, window_bounds = array<i64: 1, 128>}, {pipeline_mode = #tpu.pipeline_mode<synchronous>, transform_indices = @transform_5, window_bounds = array<i64: 32, 32>}, {pipeline_mode = #tpu.pipeline_mode<synchronous>, transform_indices = @transform_6, window_bounds = array<i64: 1, 32>}, {pipeline_mode = #tpu.pipeline_mode<synchronous>, transform_indices = @transform_7, window_bounds = array<i64: 32, 64>}, {pipeline_mode = #tpu.pipeline_mode<synchronous>, transform_indices = @transform_8, window_bounds = array<i64: 1, 64>}, {pipeline_mode = #tpu.pipeline_mode<synchronous>, transform_indices = @transform_9, window_bounds = array<i64: 32, 32>}, {pipeline_mode = #tpu.pipeline_mode<synchronous>, transform_indices = @transform_10, window_bounds = array<i64: 1, 32>}, {pipeline_mode = #tpu.pipeline_mode<synchronous>, transform_indices = @transform_11, window_bounds = array<i64: 1, 32>}, {pipeline_mode = #tpu.pipeline_mode<synchronous>, transform_indices = @transform_12, window_bounds = array<i64: 1, 32>}, {transform_indices = @transform_13, window_bounds = array<i64: 1, 128, 32>}]} {
    %c0 = arith.constant 0 : index
    %c0_0 = arith.constant 0 : index
    %c0_1 = arith.constant 0 : index
    %0 = vector.load %arg2[%c0, %c0_0, %c0_1] : memref<1x128x32xf32, #tpu.memory_space<vmem>>, vector<1x128x32xf32>
    %1 = vector.shape_cast %0 : vector<1x128x32xf32> to vector<128x32xf32>
    %c0_2 = arith.constant 0 : index
    %c0_3 = arith.constant 0 : index
    %c0_4 = arith.constant 0 : index
    %2 = vector.load %arg3[%c0_2, %c0_3, %c0_4] : memref<1x128x32xf32, #tpu.memory_space<vmem>>, vector<1x128x32xf32>
    %3 = vector.shape_cast %2 : vector<1x128x32xf32> to vector<128x32xf32>
    %cst = arith.constant dense<0.000000e+00> : vector<128xf32>
    %4 = vector.multi_reduction <add>, %1, %cst [1] : vector<128x32xf32> to vector<128xf32>
    %5 = vector.shape_cast %4 : vector<128xf32> to vector<128x1xf32>
    %cst_5 = arith.constant 3.200000e+01 : f32
    %6 = vector.broadcast %cst_5 : f32 to vector<128x1xf32>
    %7 = arith.divf %5, %6 : vector<128x1xf32>
    %8 = vector.broadcast %7 : vector<128x1xf32> to vector<128x32xf32>
    %9 = arith.subf %1, %8 : vector<128x32xf32>
    %10 = arith.mulf %9, %9 : vector<128x32xf32>
    %cst_6 = arith.constant dense<0.000000e+00> : vector<128xf32>
    %11 = vector.multi_reduction <add>, %10, %cst_6 [1] : vector<128x32xf32> to vector<128xf32>
    %12 = vector.shape_cast %11 : vector<128xf32> to vector<128x1xf32>
    %cst_7 = arith.constant 3.200000e+01 : f32
    %13 = vector.broadcast %cst_7 : f32 to vector<128x1xf32>
    %14 = arith.divf %12, %13 : vector<128x1xf32>
    %15 = vector.broadcast %7 : vector<128x1xf32> to vector<128x32xf32>
    %16 = arith.subf %1, %15 : vector<128x32xf32>
    %cst_8 = arith.constant 9.99999974E-6 : f32
    %17 = vector.broadcast %cst_8 : f32 to vector<128x1xf32>
    %18 = arith.addf %14, %17 : vector<128x1xf32>
    %19 = math.rsqrt %18 : vector<128x1xf32>
    %20 = vector.broadcast %19 : vector<128x1xf32> to vector<128x32xf32>
    %21 = arith.mulf %16, %20 : vector<128x32xf32>
    %c0_9 = arith.constant 0 : index
    %c0_10 = arith.constant 0 : index
    %22 = vector.load %arg13[%c0_9, %c0_10] : memref<1x32xf32, #tpu.memory_space<vmem>>, vector<1x32xf32>
    %23 = vector.broadcast %22 : vector<1x32xf32> to vector<128x32xf32>
    %24 = arith.mulf %21, %23 : vector<128x32xf32>
    %c0_11 = arith.constant 0 : index
    %c0_12 = arith.constant 0 : index
    %25 = vector.load %arg14[%c0_11, %c0_12] : memref<1x32xf32, #tpu.memory_space<vmem>>, vector<1x32xf32>
    %26 = vector.broadcast %25 : vector<1x32xf32> to vector<128x32xf32>
    %27 = arith.addf %24, %26 : vector<128x32xf32>
    %cst_13 = arith.constant dense<0.000000e+00> : vector<128xf32>
    %28 = vector.multi_reduction <add>, %3, %cst_13 [1] : vector<128x32xf32> to vector<128xf32>
    %29 = vector.shape_cast %28 : vector<128xf32> to vector<128x1xf32>
    %cst_14 = arith.constant 3.200000e+01 : f32
    %30 = vector.broadcast %cst_14 : f32 to vector<128x1xf32>
    %31 = arith.divf %29, %30 : vector<128x1xf32>
    %32 = vector.broadcast %31 : vector<128x1xf32> to vector<128x32xf32>
    %33 = arith.subf %3, %32 : vector<128x32xf32>
    %34 = arith.mulf %33, %33 : vector<128x32xf32>
    %cst_15 = arith.constant dense<0.000000e+00> : vector<128xf32>
    %35 = vector.multi_reduction <add>, %34, %cst_15 [1] : vector<128x32xf32> to vector<128xf32>
    %36 = vector.shape_cast %35 : vector<128xf32> to vector<128x1xf32>
    %cst_16 = arith.constant 3.200000e+01 : f32
    %37 = vector.broadcast %cst_16 : f32 to vector<128x1xf32>
    %38 = arith.divf %36, %37 : vector<128x1xf32>
    %39 = vector.broadcast %31 : vector<128x1xf32> to vector<128x32xf32>
    %40 = arith.subf %3, %39 : vector<128x32xf32>
    %cst_17 = arith.constant 9.99999974E-6 : f32
    %41 = vector.broadcast %cst_17 : f32 to vector<128x1xf32>
    %42 = arith.addf %38, %41 : vector<128x1xf32>
    %43 = math.rsqrt %42 : vector<128x1xf32>
    %44 = vector.broadcast %43 : vector<128x1xf32> to vector<128x32xf32>
    %45 = arith.mulf %40, %44 : vector<128x32xf32>
    %c0_18 = arith.constant 0 : index
    %c0_19 = arith.constant 0 : index
    %46 = vector.load %arg13[%c0_18, %c0_19] : memref<1x32xf32, #tpu.memory_space<vmem>>, vector<1x32xf32>
    %47 = vector.broadcast %46 : vector<1x32xf32> to vector<128x32xf32>
    %48 = arith.mulf %45, %47 : vector<128x32xf32>
    %c0_20 = arith.constant 0 : index
    %c0_21 = arith.constant 0 : index
    %49 = vector.load %arg14[%c0_20, %c0_21] : memref<1x32xf32, #tpu.memory_space<vmem>>, vector<1x32xf32>
    %50 = vector.broadcast %49 : vector<1x32xf32> to vector<128x32xf32>
    %51 = arith.addf %48, %50 : vector<128x32xf32>
    %c0_22 = arith.constant 0 : index
    %c0_23 = arith.constant 0 : index
    %52 = vector.load %arg7[%c0_22, %c0_23] : memref<32x32xf32, #tpu.memory_space<vmem>>, vector<32x32xf32>
    %cst_24 = arith.constant dense<0.000000e+00> : vector<128x32xf32>
    %53 = tpu.matmul %27, %52, %cst_24 {dimension_numbers = #tpu.dot_dimension_numbers<[1], [0], [0], [1], [0, 0, 1, 1], [], []>} : vector<128x32xf32>, vector<32x32xf32>, vector<128x32xf32> -> vector<128x32xf32>
    %c0_25 = arith.constant 0 : index
    %c0_26 = arith.constant 0 : index
    %54 = vector.load %arg8[%c0_25, %c0_26] : memref<1x32xf32, #tpu.memory_space<vmem>>, vector<1x32xf32>
    %55 = vector.broadcast %54 : vector<1x32xf32> to vector<128x32xf32>
    %56 = arith.addf %53, %55 : vector<128x32xf32>
    %c0_27 = arith.constant 0 : index
    %c0_28 = arith.constant 0 : index
    %57 = vector.load %arg9[%c0_27, %c0_28] : memref<32x64xf32, #tpu.memory_space<vmem>>, vector<32x64xf32>
    %cst_29 = arith.constant dense<0.000000e+00> : vector<128x64xf32>
    %58 = tpu.matmul %51, %57, %cst_29 {dimension_numbers = #tpu.dot_dimension_numbers<[1], [0], [0], [1], [0, 0, 1, 1], [], []>} : vector<128x32xf32>, vector<32x64xf32>, vector<128x64xf32> -> vector<128x64xf32>
    %c0_30 = arith.constant 0 : index
    %c0_31 = arith.constant 0 : index
    %59 = vector.load %arg10[%c0_30, %c0_31] : memref<1x64xf32, #tpu.memory_space<vmem>>, vector<1x64xf32>
    %60 = vector.broadcast %59 : vector<1x64xf32> to vector<128x64xf32>
    %61 = arith.addf %58, %60 : vector<128x64xf32>
    %62 = vector.extract_strided_slice %61 {offsets = [0, 0], sizes = [128, 32], strides = [1, 1]} : vector<128x64xf32> to vector<128x32xf32>
    %63 = vector.extract_strided_slice %61 {offsets = [0, 32], sizes = [128, 32], strides = [1, 1]} : vector<128x64xf32> to vector<128x32xf32>
    %c0_32 = arith.constant 0 : index
    %c0_33 = arith.constant 0 : index
    %64 = vector.load %arg4[%c0_32, %c0_33] : memref<128x8xf32, #tpu.memory_space<vmem>>, vector<128x8xf32>
    %c0_34 = arith.constant 0 : index
    %c0_35 = arith.constant 0 : index
    %65 = vector.load %arg5[%c0_34, %c0_35] : memref<8x128xf32, #tpu.memory_space<vmem>>, vector<8x128xf32>
    %cst_36 = arith.constant dense<0.000000e+00> : vector<128x128xf32>
    %66 = tpu.matmul %64, %65, %cst_36 {dimension_numbers = #tpu.dot_dimension_numbers<[1], [0], [0], [1], [0, 0, 1, 1], [], []>} : vector<128x8xf32>, vector<8x128xf32>, vector<128x128xf32> -> vector<128x128xf32>
    %cst_37 = arith.constant -0.200293541 : f32
    %67 = vector.broadcast %cst_37 : f32 to vector<128x128xf32>
    %68 = arith.cmpf oge, %66, %67 : vector<128x128xf32>
    %c0_38 = arith.constant 0 : index
    %c0_39 = arith.constant 0 : index
    %69 = vector.load %arg6[%c0_38, %c0_39] : memref<1x128xf32, #tpu.memory_space<vmem>>, vector<1x128xf32>
    %cst_40 = arith.constant -1.000000e+30 : f32
    %70 = vector.shape_cast %69 : vector<1x128xf32> to vector<1x128xf32>
    %71 = vector.broadcast %70 : vector<1x128xf32> to vector<128x128xf32>
    %72 = vector.broadcast %cst_40 : f32 to vector<128x128xf32>
    %73 = arith.select %68, %71, %72 : vector<128x128xi1>, vector<128x128xf32>
    %cst_41 = arith.constant 0.000000e+00 : f32
    %74 = vector.broadcast %cst_41 : f32 to vector<128x32xf32>
    %75 = vector.extract_strided_slice %56 {offsets = [0, 0], sizes = [128, 8], strides = [1, 1]} : vector<128x32xf32> to vector<128x8xf32>
    %76 = vector.extract_strided_slice %62 {offsets = [0, 0], sizes = [128, 8], strides = [1, 1]} : vector<128x32xf32> to vector<128x8xf32>
    %cst_42 = arith.constant dense<0.000000e+00> : vector<128x128xf32>
    %77 = tpu.matmul %75, %76, %cst_42 {dimension_numbers = #tpu.dot_dimension_numbers<[1], [1], [0], [0], [0, 0, 1, 0], [], []>} : vector<128x8xf32>, vector<128x8xf32>, vector<128x128xf32> -> vector<128x128xf32>
    %cst_43 = arith.constant 0.353553385 : f32
    %78 = vector.broadcast %cst_43 : f32 to vector<128x128xf32>
    %79 = arith.mulf %77, %78 : vector<128x128xf32>
    %80 = arith.addf %79, %73 : vector<128x128xf32>
    %cst_44 = arith.constant dense<0xFF800000> : vector<128xf32>
    %81 = vector.multi_reduction <maximumf>, %80, %cst_44 [1] : vector<128x128xf32> to vector<128xf32>
    %82 = vector.shape_cast %81 : vector<128xf32> to vector<128x1xf32>
    %83 = vector.broadcast %82 : vector<128x1xf32> to vector<128x128xf32>
    %84 = arith.subf %80, %83 : vector<128x128xf32>
    %85 = math.exp %84 : vector<128x128xf32>
    %cst_45 = arith.constant dense<0.000000e+00> : vector<128xf32>
    %86 = vector.multi_reduction <add>, %85, %cst_45 [1] : vector<128x128xf32> to vector<128xf32>
    %87 = vector.shape_cast %86 : vector<128xf32> to vector<128x1xf32>
    %cst_46 = arith.constant 1.000000e+00 : f32
    %88 = vector.broadcast %cst_46 : f32 to vector<128x1xf32>
    %89 = arith.divf %88, %87 : vector<128x1xf32>
    %90 = vector.broadcast %89 : vector<128x1xf32> to vector<128x128xf32>
    %91 = arith.mulf %85, %90 : vector<128x128xf32>
    %92 = vector.extract_strided_slice %63 {offsets = [0, 0], sizes = [128, 8], strides = [1, 1]} : vector<128x32xf32> to vector<128x8xf32>
    %cst_47 = arith.constant dense<0.000000e+00> : vector<128x8xf32>
    %93 = tpu.matmul %91, %92, %cst_47 {dimension_numbers = #tpu.dot_dimension_numbers<[1], [0], [0], [1], [0, 0, 1, 1], [], []>} : vector<128x128xf32>, vector<128x8xf32>, vector<128x8xf32> -> vector<128x8xf32>
    %c0_48 = arith.constant 0 : index
    %c0_49 = arith.constant 0 : index
    %94 = vector.load %arg11[%c0_48, %c0_49] : memref<32x32xf32, #tpu.memory_space<vmem>>, vector<8x32xf32>
    %cst_50 = arith.constant dense<0.000000e+00> : vector<128x32xf32>
    %95 = tpu.matmul %93, %94, %cst_50 {dimension_numbers = #tpu.dot_dimension_numbers<[1], [0], [0], [1], [0, 0, 1, 1], [], []>} : vector<128x8xf32>, vector<8x32xf32>, vector<128x32xf32> -> vector<128x32xf32>
    %96 = arith.addf %74, %95 : vector<128x32xf32>
    %97 = vector.extract_strided_slice %56 {offsets = [0, 8], sizes = [128, 8], strides = [1, 1]} : vector<128x32xf32> to vector<128x8xf32>
    %98 = vector.extract_strided_slice %62 {offsets = [0, 8], sizes = [128, 8], strides = [1, 1]} : vector<128x32xf32> to vector<128x8xf32>
    %cst_51 = arith.constant dense<0.000000e+00> : vector<128x128xf32>
    %99 = tpu.matmul %97, %98, %cst_51 {dimension_numbers = #tpu.dot_dimension_numbers<[1], [1], [0], [0], [0, 0, 1, 0], [], []>} : vector<128x8xf32>, vector<128x8xf32>, vector<128x128xf32> -> vector<128x128xf32>
    %cst_52 = arith.constant 0.353553385 : f32
    %100 = vector.broadcast %cst_52 : f32 to vector<128x128xf32>
    %101 = arith.mulf %99, %100 : vector<128x128xf32>
    %102 = arith.addf %101, %73 : vector<128x128xf32>
    %cst_53 = arith.constant dense<0xFF800000> : vector<128xf32>
    %103 = vector.multi_reduction <maximumf>, %102, %cst_53 [1] : vector<128x128xf32> to vector<128xf32>
    %104 = vector.shape_cast %103 : vector<128xf32> to vector<128x1xf32>
    %105 = vector.broadcast %104 : vector<128x1xf32> to vector<128x128xf32>
    %106 = arith.subf %102, %105 : vector<128x128xf32>
    %107 = math.exp %106 : vector<128x128xf32>
    %cst_54 = arith.constant dense<0.000000e+00> : vector<128xf32>
    %108 = vector.multi_reduction <add>, %107, %cst_54 [1] : vector<128x128xf32> to vector<128xf32>
    %109 = vector.shape_cast %108 : vector<128xf32> to vector<128x1xf32>
    %cst_55 = arith.constant 1.000000e+00 : f32
    %110 = vector.broadcast %cst_55 : f32 to vector<128x1xf32>
    %111 = arith.divf %110, %109 : vector<128x1xf32>
    %112 = vector.broadcast %111 : vector<128x1xf32> to vector<128x128xf32>
    %113 = arith.mulf %107, %112 : vector<128x128xf32>
    %114 = vector.extract_strided_slice %63 {offsets = [0, 8], sizes = [128, 8], strides = [1, 1]} : vector<128x32xf32> to vector<128x8xf32>
    %cst_56 = arith.constant dense<0.000000e+00> : vector<128x8xf32>
    %115 = tpu.matmul %113, %114, %cst_56 {dimension_numbers = #tpu.dot_dimension_numbers<[1], [0], [0], [1], [0, 0, 1, 1], [], []>} : vector<128x128xf32>, vector<128x8xf32>, vector<128x8xf32> -> vector<128x8xf32>
    %c8 = arith.constant 8 : index
    %c0_57 = arith.constant 0 : index
    %116 = vector.load %arg11[%c8, %c0_57] : memref<32x32xf32, #tpu.memory_space<vmem>>, vector<8x32xf32>
    %cst_58 = arith.constant dense<0.000000e+00> : vector<128x32xf32>
    %117 = tpu.matmul %115, %116, %cst_58 {dimension_numbers = #tpu.dot_dimension_numbers<[1], [0], [0], [1], [0, 0, 1, 1], [], []>} : vector<128x8xf32>, vector<8x32xf32>, vector<128x32xf32> -> vector<128x32xf32>
    %118 = arith.addf %96, %117 : vector<128x32xf32>
    %119 = vector.extract_strided_slice %56 {offsets = [0, 16], sizes = [128, 8], strides = [1, 1]} : vector<128x32xf32> to vector<128x8xf32>
    %120 = vector.extract_strided_slice %62 {offsets = [0, 16], sizes = [128, 8], strides = [1, 1]} : vector<128x32xf32> to vector<128x8xf32>
    %cst_59 = arith.constant dense<0.000000e+00> : vector<128x128xf32>
    %121 = tpu.matmul %119, %120, %cst_59 {dimension_numbers = #tpu.dot_dimension_numbers<[1], [1], [0], [0], [0, 0, 1, 0], [], []>} : vector<128x8xf32>, vector<128x8xf32>, vector<128x128xf32> -> vector<128x128xf32>
    %cst_60 = arith.constant 0.353553385 : f32
    %122 = vector.broadcast %cst_60 : f32 to vector<128x128xf32>
    %123 = arith.mulf %121, %122 : vector<128x128xf32>
    %124 = arith.addf %123, %73 : vector<128x128xf32>
    %cst_61 = arith.constant dense<0xFF800000> : vector<128xf32>
    %125 = vector.multi_reduction <maximumf>, %124, %cst_61 [1] : vector<128x128xf32> to vector<128xf32>
    %126 = vector.shape_cast %125 : vector<128xf32> to vector<128x1xf32>
    %127 = vector.broadcast %126 : vector<128x1xf32> to vector<128x128xf32>
    %128 = arith.subf %124, %127 : vector<128x128xf32>
    %129 = math.exp %128 : vector<128x128xf32>
    %cst_62 = arith.constant dense<0.000000e+00> : vector<128xf32>
    %130 = vector.multi_reduction <add>, %129, %cst_62 [1] : vector<128x128xf32> to vector<128xf32>
    %131 = vector.shape_cast %130 : vector<128xf32> to vector<128x1xf32>
    %cst_63 = arith.constant 1.000000e+00 : f32
    %132 = vector.broadcast %cst_63 : f32 to vector<128x1xf32>
    %133 = arith.divf %132, %131 : vector<128x1xf32>
    %134 = vector.broadcast %133 : vector<128x1xf32> to vector<128x128xf32>
    %135 = arith.mulf %129, %134 : vector<128x128xf32>
    %136 = vector.extract_strided_slice %63 {offsets = [0, 16], sizes = [128, 8], strides = [1, 1]} : vector<128x32xf32> to vector<128x8xf32>
    %cst_64 = arith.constant dense<0.000000e+00> : vector<128x8xf32>
    %137 = tpu.matmul %135, %136, %cst_64 {dimension_numbers = #tpu.dot_dimension_numbers<[1], [0], [0], [1], [0, 0, 1, 1], [], []>} : vector<128x128xf32>, vector<128x8xf32>, vector<128x8xf32> -> vector<128x8xf32>
    %c16 = arith.constant 16 : index
    %c0_65 = arith.constant 0 : index
    %138 = vector.load %arg11[%c16, %c0_65] : memref<32x32xf32, #tpu.memory_space<vmem>>, vector<8x32xf32>
    %cst_66 = arith.constant dense<0.000000e+00> : vector<128x32xf32>
    %139 = tpu.matmul %137, %138, %cst_66 {dimension_numbers = #tpu.dot_dimension_numbers<[1], [0], [0], [1], [0, 0, 1, 1], [], []>} : vector<128x8xf32>, vector<8x32xf32>, vector<128x32xf32> -> vector<128x32xf32>
    %140 = arith.addf %118, %139 : vector<128x32xf32>
    %141 = vector.extract_strided_slice %56 {offsets = [0, 24], sizes = [128, 8], strides = [1, 1]} : vector<128x32xf32> to vector<128x8xf32>
    %142 = vector.extract_strided_slice %62 {offsets = [0, 24], sizes = [128, 8], strides = [1, 1]} : vector<128x32xf32> to vector<128x8xf32>
    %cst_67 = arith.constant dense<0.000000e+00> : vector<128x128xf32>
    %143 = tpu.matmul %141, %142, %cst_67 {dimension_numbers = #tpu.dot_dimension_numbers<[1], [1], [0], [0], [0, 0, 1, 0], [], []>} : vector<128x8xf32>, vector<128x8xf32>, vector<128x128xf32> -> vector<128x128xf32>
    %cst_68 = arith.constant 0.353553385 : f32
    %144 = vector.broadcast %cst_68 : f32 to vector<128x128xf32>
    %145 = arith.mulf %143, %144 : vector<128x128xf32>
    %146 = arith.addf %145, %73 : vector<128x128xf32>
    %cst_69 = arith.constant dense<0xFF800000> : vector<128xf32>
    %147 = vector.multi_reduction <maximumf>, %146, %cst_69 [1] : vector<128x128xf32> to vector<128xf32>
    %148 = vector.shape_cast %147 : vector<128xf32> to vector<128x1xf32>
    %149 = vector.broadcast %148 : vector<128x1xf32> to vector<128x128xf32>
    %150 = arith.subf %146, %149 : vector<128x128xf32>
    %151 = math.exp %150 : vector<128x128xf32>
    %cst_70 = arith.constant dense<0.000000e+00> : vector<128xf32>
    %152 = vector.multi_reduction <add>, %151, %cst_70 [1] : vector<128x128xf32> to vector<128xf32>
    %153 = vector.shape_cast %152 : vector<128xf32> to vector<128x1xf32>
    %cst_71 = arith.constant 1.000000e+00 : f32
    %154 = vector.broadcast %cst_71 : f32 to vector<128x1xf32>
    %155 = arith.divf %154, %153 : vector<128x1xf32>
    %156 = vector.broadcast %155 : vector<128x1xf32> to vector<128x128xf32>
    %157 = arith.mulf %151, %156 : vector<128x128xf32>
    %158 = vector.extract_strided_slice %63 {offsets = [0, 24], sizes = [128, 8], strides = [1, 1]} : vector<128x32xf32> to vector<128x8xf32>
    %cst_72 = arith.constant dense<0.000000e+00> : vector<128x8xf32>
    %159 = tpu.matmul %157, %158, %cst_72 {dimension_numbers = #tpu.dot_dimension_numbers<[1], [0], [0], [1], [0, 0, 1, 1], [], []>} : vector<128x128xf32>, vector<128x8xf32>, vector<128x8xf32> -> vector<128x8xf32>
    %c24 = arith.constant 24 : index
    %c0_73 = arith.constant 0 : index
    %160 = vector.load %arg11[%c24, %c0_73] : memref<32x32xf32, #tpu.memory_space<vmem>>, vector<8x32xf32>
    %cst_74 = arith.constant dense<0.000000e+00> : vector<128x32xf32>
    %161 = tpu.matmul %159, %160, %cst_74 {dimension_numbers = #tpu.dot_dimension_numbers<[1], [0], [0], [1], [0, 0, 1, 1], [], []>} : vector<128x8xf32>, vector<8x32xf32>, vector<128x32xf32> -> vector<128x32xf32>
    %162 = arith.addf %140, %161 : vector<128x32xf32>
    %163 = arith.addf %1, %162 : vector<128x32xf32>
    %c0_75 = arith.constant 0 : index
    %c0_76 = arith.constant 0 : index
    %164 = vector.load %arg12[%c0_75, %c0_76] : memref<1x32xf32, #tpu.memory_space<vmem>>, vector<1x32xf32>
    %165 = vector.broadcast %164 : vector<1x32xf32> to vector<128x32xf32>
    %166 = arith.addf %163, %165 : vector<128x32xf32>
    %c0_77 = arith.constant 0 : index
    %c0_78 = arith.constant 0 : index
    %c0_79 = arith.constant 0 : index
    %167 = vector.load %arg15[%c0_77, %c0_78, %c0_79] : memref<1x128x32xf32, #tpu.memory_space<vmem>>, vector<1x128x32xf32>
    %168 = vector.shape_cast %167 : vector<1x128x32xf32> to vector<128x32xf32>
    %169 = vector.shape_cast %166 : vector<128x32xf32> to vector<1x128x32xf32>
    tpu.vector_store %arg15[%c0_77, %c0_78, %c0_79], %169 {strides = array<i32>} : memref<1x128x32xf32, #tpu.memory_space<vmem>>, vector<1x128x32xf32>,
    return
  }
  func.func @transform_0(%arg0: i32, %arg1: i32) -> (i32, i32, i32) {
    %c0_i32 = arith.constant 0 : i32
    %c0_i32_0 = arith.constant 0 : i32
    return %arg0, %arg1, %c0_i32 : i32, i32, i32
  }
  func.func @transform_1(%arg0: i32, %arg1: i32) -> (i32, i32, i32) {
    %c0_i32 = arith.constant 0 : i32
    %c0_i32_0 = arith.constant 0 : i32
    %c0_i32_1 = arith.constant 0 : i32
    return %arg0, %c0_i32, %c0_i32_0 : i32, i32, i32
  }
  func.func @transform_2(%arg0: i32, %arg1: i32) -> (i32, i32) {
    %c0_i32 = arith.constant 0 : i32
    %c0_i32_0 = arith.constant 0 : i32
    return %arg1, %c0_i32 : i32, i32
  }
  func.func @transform_3(%arg0: i32, %arg1: i32) -> (i32, i32) {
    %c0_i32 = arith.constant 0 : i32
    %c0_i32_0 = arith.constant 0 : i32
    %c0_i32_1 = arith.constant 0 : i32
    return %c0_i32, %c0_i32_0 : i32, i32
  }
  func.func @transform_4(%arg0: i32, %arg1: i32) -> (i32, i32) {
    %c0_i32 = arith.constant 0 : i32
    %c0_i32_0 = arith.constant 0 : i32
    %c0_i32_1 = arith.constant 0 : i32
    return %c0_i32, %c0_i32_0 : i32, i32
  }
  func.func @transform_5(%arg0: i32, %arg1: i32) -> (i32, i32) {
    %c0_i32 = arith.constant 0 : i32
    %c0_i32_0 = arith.constant 0 : i32
    %c0_i32_1 = arith.constant 0 : i32
    return %c0_i32, %c0_i32_0 : i32, i32
  }
  func.func @transform_6(%arg0: i32, %arg1: i32) -> (i32, i32) {
    %c0_i32 = arith.constant 0 : i32
    %c0_i32_0 = arith.constant 0 : i32
    %c0_i32_1 = arith.constant 0 : i32
    return %c0_i32, %c0_i32_0 : i32, i32
  }
  func.func @transform_7(%arg0: i32, %arg1: i32) -> (i32, i32) {
    %c0_i32 = arith.constant 0 : i32
    %c0_i32_0 = arith.constant 0 : i32
    %c0_i32_1 = arith.constant 0 : i32
    return %c0_i32, %c0_i32_0 : i32, i32
  }
  func.func @transform_8(%arg0: i32, %arg1: i32) -> (i32, i32) {
    %c0_i32 = arith.constant 0 : i32
    %c0_i32_0 = arith.constant 0 : i32
    %c0_i32_1 = arith.constant 0 : i32
    return %c0_i32, %c0_i32_0 : i32, i32
  }
  func.func @transform_9(%arg0: i32, %arg1: i32) -> (i32, i32) {
    %c0_i32 = arith.constant 0 : i32
    %c0_i32_0 = arith.constant 0 : i32
    %c0_i32_1 = arith.constant 0 : i32
    return %c0_i32, %c0_i32_0 : i32, i32
  }
  func.func @transform_10(%arg0: i32, %arg1: i32) -> (i32, i32) {
    %c0_i32 = arith.constant 0 : i32
    %c0_i32_0 = arith.constant 0 : i32
    %c0_i32_1 = arith.constant 0 : i32
    return %c0_i32, %c0_i32_0 : i32, i32
  }
  func.func @transform_11(%arg0: i32, %arg1: i32) -> (i32, i32) {
    %c0_i32 = arith.constant 0 : i32
    %c0_i32_0 = arith.constant 0 : i32
    %c0_i32_1 = arith.constant 0 : i32
    return %c0_i32, %c0_i32_0 : i32, i32
  }
  func.func @transform_12(%arg0: i32, %arg1: i32) -> (i32, i32) {
    %c0_i32 = arith.constant 0 : i32
    %c0_i32_0 = arith.constant 0 : i32
    %c0_i32_1 = arith.constant 0 : i32
    return %c0_i32, %c0_i32_0 : i32, i32
  }
  func.func @transform_13(%arg0: i32, %arg1: i32) -> (i32, i32, i32) {
    %c0_i32 = arith.constant 0 : i32
    %c0_i32_0 = arith.constant 0 : i32
    return %arg0, %arg1, %c0_i32 : i32, i32, i32
  }
}

</mosaic_0001>

<bundles_post_ra>
// kernel: tpu_custom_call.1
= control target key start
LH: loop header
LB: loop body
LE: loop exit
PB: predicated region body
PF: predicated region fallthrough
CT: control target
= control target key end

     0   :  { %s7047_s25 = smov 0   ;;  %s7049_s26 = smov 0   ;;  %s9560_s0 = inlined_call_operand.vmem [shape: f32[2,128,32], index: 0, kind: input, shape index: {}]   ;;  %s9561_s1 = inlined_call_operand.vmem [shape: f32[2,128,32], index: 1, kind: input, shape index: {}]   ;;  %s9562_s2 = inlined_call_operand.vmem [shape: f32[128,8], index: 2, kind: input, shape index: {}]   ;;  %s9563_s3 = inlined_call_operand.vmem [shape: f32[8,128], index: 3, kind: input, shape index: {}]   ;;  %s9564_s4 = inlined_call_operand.vmem [shape: f32[1,128], index: 4, kind: input, shape index: {}]   ;;  %s9565_s5 = inlined_call_operand.vmem [shape: f32[32,32], index: 5, kind: input, shape index: {}]   ;;  %s9566_s6 = inlined_call_operand.vmem [shape: f32[1,32], index: 6, kind: input, shape index: {}]   ;;  %s9567_s7 = inlined_call_operand.vmem [shape: f32[32,64], index: 7, kind: input, shape index: {}]   ;;  %s9568_s8 = inlined_call_operand.vmem [shape: f32[1,64], index: 8, kind: input, shape index: {}]   ;;  %s9569_s9 = inlined_call_operand.vmem [shape: f32[32,32], index: 9, kind: input, shape index: {}]   ;;  %s9570_s10 = inlined_call_operand.vmem [shape: f32[1,32], index: 10, kind: input, shape index: {}]   ;;  %s9571_s11 = inlined_call_operand.vmem [shape: f32[1,32], index: 11, kind: input, shape index: {}]   ;;  %s9572_s12 = inlined_call_operand.vmem [shape: f32[1,32], index: 12, kind: input, shape index: {}]   ;;  %s9573_s13 = inlined_call_operand.vmem [shape: f32[2,128,32], index: 13, kind: output, shape index: {}]  }
   0x1   :  { %s7051_s27 = smov 0  }
   0x2 LB: > { %s35_s28 = sadd.s32 1, %s6964_s26  ;;  %p5290_p0 = scmp.ge.s32.totalorder %s6968_s27, 1  ;;  %s6968_s27 = sphi %s7051_s27, %s23_s27   ;;  %s6964_s26 = sphi %s7049_s26, %s9790_s26   ;;  %s6960_s25 = sphi %s7047_s25, %s9789_s25  }
   0x3   : > { %p37_p1 = scmp.ge.s32.totalorder %s35_s28, 2  ;;  %p429_p2 = scmp.lt.s32.totalorder %s6968_s27, 3 }
   0x5   : > { %s9792_s28 = smov (%p37_p1, %s35_s28), 0  ;;  %p430_p3 = pnand %p5290_p0, %p429_p2 }
   0x7   : > { %433 = sbr.rel (%p430_p3) target bundleno = 3283 (0xcd3), region = 72 }
   0xc   : > { %p492_p4 = scmp.lt.s32.totalorder %s6960_s25, 1  ;;  %vm554_vm0 = vcmask 261120   ;;  %s6970_s17 = smov 96   ;;  %vm1475_vm1 = vcmask 64512  }
   0xd   : > { %s6971_s22 = smov 120   ;;  %s6972_s24 = smov 88  }
   0xe   : > { %s9794_s25 = smov (!%p492_p4, %s6960_s25), 1  ;;  %s6973_s30 = smov 112  }
   0xf   : > { %s7065_s29 = sshll.u32 %s9794_s25, 7  ;;  %s6976_s21 = smov 72  }
  0x10   : > { %s7071_s15 = scalar_lea.vmem %s9560_s0, %s7065_s29  ;;  %s7113_s18 = scalar_lea.vmem %s9561_s1, %s7065_s29 }
  0x11   : > { %v7074_v0 = vld [vmem:[%s7071_s15 + $0x40] sm:$0xff]  ;;  %v7077_v1 = vld [vmem:[%s7071_s15 + $0x50] sm:$0xff]  ;;  %v7080_v2 = vld [vmem:[%s7071_s15 + $0x48] sm:$0xff]  ;;  %s9472_s16 = scalar_lea.vmem %s9573_s13, %s7065_s29 }
  0x12   : > { %v579_v3 = vsel %vm554_vm0, %v7074_v0, 0.0  ;;  %v585_v4 = vsel %vm554_vm0, %v7077_v1, 0.0  ;;  %v7087_v5 = vld [vmem:[%s7071_s15 + $0x58] sm:$0xff]  ;;  %v582_v6 = vsel %vm554_vm0, %v7080_v2, 0.0  ;;  %v7094_v8 = vld [vmem:[%s7071_s15 + $0x60] sm:$0xff]  ;;  %v7097_v9 = vld [vmem:[%s7071_s15 + $0x68] sm:$0xff] }
  0x13   : > { %580 = vadd.xlane.f32.xlu0 %v579_v3  ;;  %586 = vadd.xlane.f32.xlu1 %v585_v4  ;;  %v588_v7 = vsel %vm554_vm0, %v7087_v5, 0.0  ;;  %v591_v10 = vsel %vm554_vm0, %v7094_v8, 0.0  ;;  %v594_v11 = vsel %vm554_vm0, %v7097_v9, 0.0  ;;  %v7104_v12 = vld [vmem:[%s7071_s15 + $0x70] sm:$0xff]  ;;  %v7107_v13 = vld [vmem:[%s7071_s15 + $0x78] sm:$0xff]  ;;  %v7120_v16 = vld [vmem:[%s7113_s18] sm:$0xff] }
  0x14   : > { %v597_v14 = vsel %vm554_vm0, %v7104_v12, 0.0  ;;  %v600_v15 = vsel %vm554_vm0, %v7107_v13, 0.0  ;;  %v7123_v17 = vld [vmem:[%s7113_s18 + $0x8] sm:$0xff]  ;;  %v810_v18 = vsel %vm554_vm0, %v7120_v16, 0.0  ;;  %v7130_v20 = vld [vmem:[%s7113_s18 + $0x10] sm:$0xff]  ;;  %v7133_v21 = vld [vmem:[%s7113_s18 + $0x18] sm:$0xff] }
  0x15   : > { %v813_v19 = vsel %vm554_vm0, %v7123_v17, 0.0  ;;  %v816_v22 = vsel %vm554_vm0, %v7130_v20, 0.0  ;;  %v819_v23 = vsel %vm554_vm0, %v7133_v21, 0.0  ;;  %v7140_v24 = vld [vmem:[%s7113_s18 + $0x20] sm:$0xff]  ;;  %v7143_v25 = vld [vmem:[%s7113_s18 + $0x28] sm:$0xff]  ;;  %v7150_v28 = vld [vmem:[%s7113_s18 + $0x30] sm:$0xff] }
  0x16   : > { %v822_v26 = vsel %vm554_vm0, %v7140_v24, 0.0  ;;  %v825_v27 = vsel %vm554_vm0, %v7143_v25, 0.0  ;;  %v7153_v29 = vld [vmem:[%s7113_s18 + $0x38] sm:$0xff]  ;;  %v828_v30 = vsel %vm554_vm0, %v7150_v28, 0.0  ;;  %v7160_v32 = vld [vmem:[%s7113_s18 + $0x40] sm:$0xff]  ;;  %v7163_v33 = vld [vmem:[%s7113_s18 + $0x48] sm:$0xff] }
  0x17   : > { %583 = vadd.xlane.f32.xlu0 %v582_v6  ;;  %589 = vadd.xlane.f32.xlu1 %v588_v7  ;;  %v831_v31 = vsel %vm554_vm0, %v7153_v29, 0.0  ;;  %v834_v34 = vsel %vm554_vm0, %v7160_v32, 0.0  ;;  %v837_v35 = vsel %vm554_vm0, %v7163_v33, 0.0  ;;  %v7170_v36 = vld [vmem:[%s7113_s18 + $0x50] sm:$0xff]  ;;  %v7173_v37 = vld [vmem:[%s7113_s18 + $0x58] sm:$0xff]  ;;  %v7180_v40 = vld [vmem:[%s7113_s18 + $0x60] sm:$0xff] }
  0x18   : > { %v840_v38 = vsel %vm554_vm0, %v7170_v36, 0.0  ;;  %v843_v39 = vsel %vm554_vm0, %v7173_v37, 0.0  ;;  %v7183_v41 = vld [vmem:[%s7113_s18 + $0x68] sm:$0xff]  ;;  %v846_v42 = vsel %vm554_vm0, %v7180_v40, 0.0  ;;  %v7190_v44 = vld [vmem:[%s7113_s18 + $0x70] sm:$0xff]  ;;  %v7193_v45 = vld [vmem:[%s7113_s18 + $0x78] sm:$0xff] }
  0x19   : > { %v849_v43 = vsel %vm554_vm0, %v7183_v41, 0.0  ;;  %v852_v46 = vsel %vm554_vm0, %v7190_v44, 0.0  ;;  %v855_v47 = vsel %vm554_vm0, %v7193_v45, 0.0  ;;  %v7200_v48 = vld [vmem:[%s7071_s15] sm:$0xff]  ;;  %s6975_s18 = smov 80  }
  0x1a   : > { %v555_v49 = vsel %vm554_vm0, %v7200_v48, 0.0 }
  0x1b   : > { %592 = vadd.xlane.f32.xlu0 %v591_v10  ;;  %595 = vadd.xlane.f32.xlu1 %v594_v11 }
  0x1f   : > { %598 = vadd.xlane.f32.xlu0 %v597_v14  ;;  %601 = vadd.xlane.f32.xlu1 %v600_v15 }
  0x23   : > { %811 = vadd.xlane.f32.xlu0 %v810_v18  ;;  %814 = vadd.xlane.f32.xlu1 %v813_v19 }
  0x27   : > { %817 = vadd.xlane.f32.xlu0 %v816_v22  ;;  %820 = vadd.xlane.f32.xlu1 %v819_v23 }
  0x2b   : > { %823 = vadd.xlane.f32.xlu0 %v822_v26  ;;  %826 = vadd.xlane.f32.xlu1 %v825_v27 }
  0x2f   : > { %829 = vadd.xlane.f32.xlu0 %v828_v30  ;;  %832 = vadd.xlane.f32.xlu1 %v831_v31 }
  0x33   : > { %835 = vadd.xlane.f32.xlu0 %v834_v34  ;;  %838 = vadd.xlane.f32.xlu1 %v837_v35 }
  0x37   : > { %841 = vadd.xlane.f32.xlu0 %v840_v38  ;;  %844 = vadd.xlane.f32.xlu1 %v843_v39 }
  0x3b   : > { %847 = vadd.xlane.f32.xlu0 %v846_v42  ;;  %850 = vadd.xlane.f32.xlu1 %v849_v43 }
  0x3f   : > { %853 = vadd.xlane.f32.xlu0 %v852_v46  ;;  %856 = vadd.xlane.f32.xlu1 %v855_v47 }
  0x43   : > { %556 = vadd.xlane.f32.xlu0 %v555_v49 }
  0x9c   : > { %v581_v50 = vpop.xlane.xlu0 %580  ;;  %v587_v51 = vpop.xlane.xlu1 %586 }
  0x9d   : > { %v612_v52 = vmul.f32 0.03125, %v581_v50  ;;  %v614_v53 = vmul.f32 0.03125, %v587_v51 }
  0x9f   : > { %v7205_v54 = vsub.f32 %v7074_v0, %v612_v52  ;;  %v7208_v55 = vsub.f32 %v7077_v1, %v614_v53 }
  0xa0   : > { %v584_v56 = vpop.xlane.xlu0 %583  ;;  %v590_v57 = vpop.xlane.xlu1 %589 }
  0xa1   : > { %v613_v58 = vmul.f32 0.03125, %v584_v56  ;;  %v615_v59 = vmul.f32 0.03125, %v590_v57  ;;  %v644_v60 = vmul.f32 %v7205_v54, %v7205_v54  ;;  %v646_v61 = vmul.f32 %v7208_v55, %v7208_v55 }
  0xa3   : > { %v7215_v62 = vsub.f32 %v7080_v2, %v613_v58  ;;  %v7218_v63 = vsub.f32 %v7087_v5, %v615_v59  ;;  %v676_v0 = vsel %vm554_vm0, %v644_v60, 0.0  ;;  %v682_v4 = vsel %vm554_vm0, %v646_v61, 0.0 }
  0xa4   : > { %v593_v1 = vpop.xlane.xlu0 %592  ;;  %677 = vadd.xlane.f32.xlu0 %v676_v0  ;;  %v596_v3 = vpop.xlane.xlu1 %595 }
  0xa5   : > { %v616_v6 = vmul.f32 0.03125, %v593_v1  ;;  %v617_v7 = vmul.f32 0.03125, %v596_v3  ;;  %v645_v10 = vmul.f32 %v7215_v62, %v7215_v62  ;;  %v647_v11 = vmul.f32 %v7218_v63, %v7218_v63 }
  0xa7   : > { %v7227_v2 = vsub.f32 %v7094_v8, %v616_v6  ;;  %v7230_v5 = vsub.f32 %v7097_v9, %v617_v7  ;;  %v679_v14 = vsel %vm554_vm0, %v645_v10, 0.0  ;;  %v685_v19 = vsel %vm554_vm0, %v647_v11, 0.0 }
  0xa8   : > { %680 = vadd.xlane.f32.xlu1 %v679_v14  ;;  %v599_v15 = vpop.xlane.xlu0 %598  ;;  %683 = vadd.xlane.f32.xlu0 %v682_v4  ;;  %v602_v18 = vpop.xlane.xlu1 %601 }
  0xa9   : > { %v618_v22 = vmul.f32 0.03125, %v599_v15  ;;  %v619_v23 = vmul.f32 0.03125, %v602_v18  ;;  %v648_v26 = vmul.f32 %v7227_v2, %v7227_v2  ;;  %v649_v8 = vmul.f32 %v7230_v5, %v7230_v5  ;;  %v7287_v18 = vld [vmem:[%s7071_s15 + $0x8] sm:$0xff] }
  0xab   : > { %v7239_v27 = vsub.f32 %v7104_v12, %v618_v22  ;;  %v7242_v9 = vsub.f32 %v7107_v13, %v619_v23  ;;  %v688_v30 = vsel %vm554_vm0, %v648_v26, 0.0  ;;  %v691_v35 = vsel %vm554_vm0, %v649_v8, 0.0 }
  0xac   : > { %686 = vadd.xlane.f32.xlu1 %v685_v19  ;;  %v812_v31 = vpop.xlane.xlu0 %811  ;;  %689 = vadd.xlane.f32.xlu0 %v688_v30  ;;  %v815_v34 = vpop.xlane.xlu1 %814  ;;  %v558_v26 = vsel %vm554_vm0, %v7287_v18, 0.0 }
  0xad   : > { %v858_v38 = vmul.f32 0.03125, %v812_v31  ;;  %v859_v39 = vmul.f32 0.03125, %v815_v34  ;;  %v650_v42 = vmul.f32 %v7239_v27, %v7239_v27  ;;  %v651_v12 = vmul.f32 %v7242_v9, %v7242_v9 }
  0xaf   : > { %v7251_v43 = vsub.f32 %v7120_v16, %v858_v38  ;;  %v7254_v13 = vsub.f32 %v7123_v17, %v859_v39  ;;  %v694_v46 = vsel %vm554_vm0, %v650_v42, 0.0  ;;  %v697_v50 = vsel %vm554_vm0, %v651_v12, 0.0 }
  0xb0   : > { %692 = vadd.xlane.f32.xlu1 %v691_v35  ;;  %v818_v47 = vpop.xlane.xlu0 %817  ;;  %695 = vadd.xlane.f32.xlu0 %v694_v46  ;;  %v821_v49 = vpop.xlane.xlu1 %820 }
  0xb1   : > { %v860_v51 = vmul.f32 0.03125, %v818_v47  ;;  %v861_v52 = vmul.f32 0.03125, %v821_v49  ;;  %v890_v53 = vmul.f32 %v7251_v43, %v7251_v43  ;;  %v891_v16 = vmul.f32 %v7254_v13, %v7254_v13 }
  0xb3   : > { %v7263_v56 = vsub.f32 %v7130_v20, %v860_v51  ;;  %v7266_v17 = vsub.f32 %v7133_v21, %v861_v52  ;;  %v906_v57 = vsel %vm554_vm0, %v890_v53, 0.0  ;;  %v909_v60 = vsel %vm554_vm0, %v891_v16, 0.0 }
  0xb4   : > { %698 = vadd.xlane.f32.xlu1 %v697_v50  ;;  %v824_v58 = vpop.xlane.xlu0 %823  ;;  %907 = vadd.xlane.f32.xlu0 %v906_v57  ;;  %v827_v59 = vpop.xlane.xlu1 %826  ;;  %v1052_v57 = vld [vmem:[%s9565_s5 + $0x10] sm:$0xff] }
  0xb5   : > { %v862_v61 = vmul.f32 0.03125, %v824_v58  ;;  %v863_v0 = vmul.f32 0.03125, %v827_v59  ;;  %v892_v1 = vmul.f32 %v7263_v56, %v7263_v56  ;;  %v893_v20 = vmul.f32 %v7266_v17, %v7266_v17 }
  0xb7   : > { %v7275_v21 = vsub.f32 %v7140_v24, %v862_v61  ;;  %v7278_v3 = vsub.f32 %v7143_v25, %v863_v0  ;;  %v912_v4 = vsel %vm554_vm0, %v892_v1, 0.0  ;;  %v915_v7 = vsel %vm554_vm0, %v893_v20, 0.0 }
  0xb8   : > { %910 = vadd.xlane.f32.xlu1 %v909_v60  ;;  %v830_v6 = vpop.xlane.xlu0 %829  ;;  %913 = vadd.xlane.f32.xlu0 %v912_v4  ;;  %v833_v10 = vpop.xlane.xlu1 %832 }
  0xb9   : > { %v864_v11 = vmul.f32 0.03125, %v830_v6  ;;  %v894_v14 = vmul.f32 %v7275_v21, %v7275_v21  ;;  %v865_v15 = vmul.f32 0.03125, %v833_v10  ;;  %v895_v24 = vmul.f32 %v7278_v3, %v7278_v3 }
  0xbb   : > { %v7290_v25 = vsub.f32 %v7150_v28, %v864_v11  ;;  %v918_v19 = vsel %vm554_vm0, %v894_v14, 0.0  ;;  %v7294_v23 = vsub.f32 %v7153_v29, %v865_v15  ;;  %v921_v31 = vsel %vm554_vm0, %v895_v24, 0.0 }
  0xbc   : > { %916 = vadd.xlane.f32.xlu1 %v915_v7  ;;  %v836_v22 = vpop.xlane.xlu0 %835  ;;  %919 = vadd.xlane.f32.xlu0 %v918_v19  ;;  %v839_v8 = vpop.xlane.xlu1 %838  ;;  %v1050_v7 = vld [vmem:[%s9565_s5] sm:$0xff] }
  0xbd   : > { %v866_v30 = vmul.f32 0.03125, %v836_v22  ;;  %v867_v34 = vmul.f32 0.03125, %v839_v8  ;;  %v896_v28 = vmul.f32 %v7290_v25, %v7290_v25  ;;  %v897_v42 = vmul.f32 %v7294_v23, %v7294_v23 }
  0xbf   : > { %v7302_v35 = vsub.f32 %v7160_v32, %v866_v30  ;;  %v7305_v29 = vsub.f32 %v7163_v33, %v867_v34  ;;  %v924_v46 = vsel %vm554_vm0, %v896_v28, 0.0  ;;  %v1053_v32 = vld [vmem:[%s9565_s5 + $0x18] sm:$0xff]  ;;  %v927_v58 = vsel %vm554_vm0, %v897_v42, 0.0 }
  0xc0   : > { %922 = vadd.xlane.f32.xlu1 %v921_v31  ;;  %v842_v38 = vpop.xlane.xlu0 %841  ;;  %559 = vadd.xlane.f32.xlu0 %v558_v26  ;;  %v845_v39 = vpop.xlane.xlu1 %844 }
  0xc1   : > { %v868_v12 = vmul.f32 0.03125, %v842_v38  ;;  %v898_v47 = vmul.f32 %v7302_v35, %v7302_v35  ;;  %v869_v49 = vmul.f32 0.03125, %v845_v39  ;;  %6571 = vmatprep.subr.mxu1 %v1053_v32  ;;  %5929 = vmatprep.subr.mxu0 %v1053_v32  ;;  %v899_v16 = vmul.f32 %v7305_v29, %v7305_v29  ;;  %v7370_v38 = vld [vmem:[%s7071_s15 + $0x20] sm:$0xff]  ;;  %v7375_v39 = vld [vmem:[%s9567_s7 + $0x18] sm:$0xff] }
  0xc2   : > { %6575 = vmatpush3.msra.mxu1 %v1053_v32  ;;  %5930 = vmatpush3.msra.mxu0 %v1053_v32 }
  0xc3   : > { %v7316_v50 = vsub.f32 %v7170_v36, %v868_v12  ;;  %v930_v33 = vsel %vm554_vm0, %v898_v47, 0.0  ;;  %v7320_v52 = vsub.f32 %v7173_v37, %v869_v49  ;;  %6572 = vmatprep.subr.mxu1 %v1052_v57  ;;  %v1051_v37 = vld [vmem:[%s9565_s5 + $0x8] sm:$0xff]  ;;  %5931 = vmatprep.subr.mxu0 %v1052_v57  ;;  %v933_v20 = vsel %vm554_vm0, %v899_v16, 0.0  ;;  %v7385_v47 = vld [vmem:[%s7071_s15 + $0x18] sm:$0xff]  ;;  %v7388_v49 = vld [vmem:[%s7071_s15 + $0x30] sm:$0xff] }
  0xc4   : > { %925 = vadd.xlane.f32.xlu1 %v924_v46  ;;  %v848_v51 = vpop.xlane.xlu0 %847  ;;  %931 = vadd.xlane.f32.xlu0 %v930_v33  ;;  %v851_v53 = vpop.xlane.xlu1 %850  ;;  %v567_v12 = vsel %vm554_vm0, %v7370_v38, 0.0  ;;  %v564_v32 = vsel %vm554_vm0, %v7385_v47, 0.0  ;;  %v573_v33 = vsel %vm554_vm0, %v7388_v49, 0.0 }
  0xc5   : > { %v870_v36 = vmul.f32 0.03125, %v848_v51  ;;  %v900_v59 = vmul.f32 %v7316_v50, %v7316_v50  ;;  %v871_v60 = vmul.f32 0.03125, %v851_v53  ;;  %6576 = vmatpush3.msra.mxu1 %v1052_v57  ;;  %5932 = vmatpush3.msra.mxu0 %v1052_v57  ;;  %v901_v6 = vmul.f32 %v7320_v52, %v7320_v52  ;;  %v7397_v53 = vld [vmem:[%s7071_s15 + $0x28] sm:$0xff]  ;;  %v7403_v57 = vld [vmem:[%s7071_s15 + $0x38] sm:$0xff] }
  0xc6   : > { %6573 = vmatprep.subr.mxu1 %v1051_v37  ;;  %5933 = vmatprep.subr.mxu0 %v1051_v37 }
  0xc7   : > { %v7334_v61 = vsub.f32 %v7180_v40, %v870_v36  ;;  %v936_v0 = vsel %vm554_vm0, %v900_v59, 0.0  ;;  %v7344_v40 = vsub.f32 %v7183_v41, %v871_v60  ;;  %6577 = vmatpush3.msra.mxu1 %v1051_v37  ;;  %5934 = vmatpush3.msra.mxu0 %v1051_v37  ;;  %v939_v19 = vsel %vm554_vm0, %v901_v6, 0.0 }
  0xc8   : > { %928 = vadd.xlane.f32.xlu1 %v927_v58  ;;  %v854_v1 = vpop.xlane.xlu0 %853  ;;  %937 = vadd.xlane.f32.xlu0 %v936_v0  ;;  %v857_v4 = vpop.xlane.xlu1 %856  ;;  %v576_v36 = vsel %vm554_vm0, %v7403_v57, 0.0 }
  0xc9   : > { %v872_v10 = vmul.f32 0.03125, %v854_v1  ;;  %v902_v11 = vmul.f32 %v7334_v61, %v7334_v61  ;;  %v873_v14 = vmul.f32 0.03125, %v857_v4  ;;  %6574 = vmatprep.subr.mxu1 %v1050_v7  ;;  %5935 = vmatprep.subr.mxu0 %v1050_v7  ;;  %v903_v26 = vmul.f32 %v7344_v40, %v7344_v40 }
  0xca   : > { %6578 = vmatpush3.msra.mxu1 %v1050_v7  ;;  %5936 = vmatpush3.msra.mxu0 %v1050_v7 }
  0xcb   : > { %v7349_v15 = vsub.f32 %v7190_v44, %v872_v10  ;;  %v942_v24 = vsel %vm554_vm0, %v902_v11, 0.0  ;;  %v7353_v41 = vsub.f32 %v7193_v45, %v873_v14  ;;  %v7361_v44 = vld [vmem:[%s7071_s15 + $0x10] sm:$0xff]  ;;  %v945_v45 = vsel %vm554_vm0, %v903_v26, 0.0  ;;  %5961 = vmatprep.subr.mxu1 %v7375_v39 }
  0xcc   : > { %934 = vadd.xlane.f32.xlu1 %v933_v20  ;;  %943 = vadd.xlane.f32.xlu0 %v942_v24  ;;  %v557_v8 = vpop.xlane.xlu0 %556  ;;  %v561_v31 = vsel %vm554_vm0, %v7361_v44, 0.0 }
  0xcd   : > { %v904_v22 = vmul.f32 %v7349_v15, %v7349_v15  ;;  %v905_v34 = vmul.f32 %v7353_v41, %v7353_v41  ;;  %v604_v28 = vmul.f32 0.03125, %v557_v8 }
  0xcf   : > { %v948_v30 = vsel %vm554_vm0, %v904_v22, 0.0  ;;  %v951_v42 = vsel %vm554_vm0, %v905_v34, 0.0  ;;  %v7382_v46 = vsub.f32 %v7200_v48, %v604_v28  ;;  %v570_v48 = vsel %vm554_vm0, %v7397_v53, 0.0 }
  0xd0   : > { %940 = vadd.xlane.f32.xlu1 %v939_v19  ;;  %949 = vadd.xlane.f32.xlu0 %v948_v30 }
  0xd1   : > { %v636_v51 = vmul.f32 %v7382_v46, %v7382_v46 }
  0xd3   : > { %v652_v16 = vsel %vm554_vm0, %v636_v51, 0.0 }
  0xd4   : > { %946 = vadd.xlane.f32.xlu1 %v945_v45  ;;  %562 = vadd.xlane.f32.xlu0 %v561_v31 }
  0xd8   : > { %952 = vadd.xlane.f32.xlu1 %v951_v42  ;;  %568 = vadd.xlane.f32.xlu0 %v567_v12 }
  0xdc   : > { %565 = vadd.xlane.f32.xlu1 %v564_v32  ;;  %574 = vadd.xlane.f32.xlu0 %v573_v33  ;;  %v7410_v33 = vld [vmem:[%s9571_s11] ss:$0 sm:$0xff] }
  0xe0   : > { %571 = vadd.xlane.f32.xlu1 %v570_v48  ;;  %653 = vadd.xlane.f32.xlu0 %v652_v16 }
  0xe4   : > { %577 = vadd.xlane.f32.xlu1 %v576_v36 }
 0x12d   : > { %v678_v58 = vpop.xlane.xlu0 %677 }
 0x12e   : > { %v708_v59 = vmul.f32 0.03125, %v678_v58 }
 0x130   : > { %v724_v60 = vadd.f32 1e-05, %v708_v59  ;;  %v7416_v59 = vld [vmem:[%s9572_s12] ss:$0 sm:$0xff] }
 0x131   : > { %v681_v37 = vpop.xlane.xlu1 %680  ;;  %v684_v0 = vpop.xlane.xlu0 %683 }
 0x132   : > { %6610 = vrsqrt.f32 %v724_v60  ;;  %v709_v1 = vmul.f32 0.03125, %v681_v37  ;;  %v710_v20 = vmul.f32 0.03125, %v684_v0 }
 0x134   : > { %v725_v4 = vadd.f32 1e-05, %v709_v1  ;;  %v726_v6 = vadd.f32 1e-05, %v710_v20 }
 0x135   : > { %v687_v7 = vpop.xlane.xlu1 %686  ;;  %v690_v10 = vpop.xlane.xlu0 %689 }
 0x136   : > { %6612 = vrsqrt.f32 %v725_v4  ;;  %v711_v11 = vmul.f32 0.03125, %v687_v7  ;;  %v712_v14 = vmul.f32 0.03125, %v690_v10 }
 0x137   : > { %6614 = vrsqrt.f32 %v726_v6 }
 0x138   : > { %v727_v24 = vadd.f32 1e-05, %v711_v11  ;;  %v728_v19 = vadd.f32 1e-05, %v712_v14 }
 0x139   : > { %v693_v22 = vpop.xlane.xlu1 %692  ;;  %v696_v26 = vpop.xlane.xlu0 %695 }
 0x13a   : > { %6616 = vrsqrt.f32 %v727_v24  ;;  %v713_v8 = vmul.f32 0.03125, %v693_v22  ;;  %v714_v30 = vmul.f32 0.03125, %v696_v26 }
 0x13b   : > { %6618 = vrsqrt.f32 %v728_v19 }
 0x13c   : > { %v729_v45 = vadd.f32 1e-05, %v713_v8  ;;  %v730_v31 = vadd.f32 1e-05, %v714_v30 }
 0x13d   : > { %v699_v34 = vpop.xlane.xlu1 %698  ;;  %v908_v28 = vpop.xlane.xlu0 %907 }
 0x13e   : > { %6620 = vrsqrt.f32 %v729_v45  ;;  %v715_v42 = vmul.f32 0.03125, %v699_v34  ;;  %v954_v12 = vmul.f32 0.03125, %v908_v28 }
 0x13f   : > { %v6611_v32 = vpop.eup %6610  ;;  %6622 = vrsqrt.f32 %v730_v31 }
 0x140   : > { %v731_v51 = vadd.f32 1e-05, %v715_v42  ;;  %v970_v48 = vadd.f32 1e-05, %v954_v12  ;;  %v756_v16 = vmul.f32 %v6611_v32, %v7205_v54  ;;  %v1256_v32 = vld [vmem:[%s9567_s7 + $0x10] sm:$0xff] }
 0x141   : > { %v911_v36 = vpop.xlane.xlu1 %910  ;;  %v914_v58 = vpop.xlane.xlu0 %913 }
 0x142   : > { %6624 = vrsqrt.f32 %v731_v51  ;;  %v955_v60 = vmul.f32 0.03125, %v911_v36  ;;  %v956_v37 = vmul.f32 0.03125, %v914_v58  ;;  %v779_v0 = vmul.f32 %v7410_v33, %v756_v16 }
 0x143   : > { %v6613_v1 = vpop.eup %6612  ;;  %6626 = vrsqrt.f32 %v970_v48 }
 0x144   : > { %v6615_v20 = vpop.eup %6614  ;;  %v971_v4 = vadd.f32 1e-05, %v955_v60  ;;  %v972_v6 = vadd.f32 1e-05, %v956_v37  ;;  %v802_v7 = vadd.f32 %v7416_v59, %v779_v0  ;;  %v757_v54 = vmul.f32 %v6613_v1, %v7215_v62 }
 0x145   : > { %v917_v10 = vpop.xlane.xlu1 %916  ;;  %v920_v11 = vpop.xlane.xlu0 %919  ;;  %v758_v14 = vmul.f32 %v6615_v20, %v7208_v55 }
 0x146   : > { %6628 = vrsqrt.f32 %v971_v4  ;;  %v957_v24 = vmul.f32 0.03125, %v917_v10  ;;  %v958_v19 = vmul.f32 0.03125, %v920_v11  ;;  %5949 = vmatprep.mubr.msk.f32.mxu1 %vm554_vm0, %v802_v7  ;;  %v780_v22 = vmul.f32 %v7410_v33, %v757_v54  ;;  %v1254_v7 = vld [vmem:[%s9567_s7] sm:$0xff] }
 0x147   : > { %v6617_v26 = vpop.eup %6616  ;;  %6630 = vrsqrt.f32 %v972_v6  ;;  %v781_v8 = vmul.f32 %v7410_v33, %v758_v14 }
 0x148   : > { %v6619_v30 = vpop.eup %6618  ;;  %v973_v45 = vadd.f32 1e-05, %v957_v24  ;;  %v974_v31 = vadd.f32 1e-05, %v958_v19  ;;  %v803_v62 = vadd.f32 %v7416_v59, %v780_v22  ;;  %v759_v34 = vmul.f32 %v6617_v26, %v7218_v63 }
 0x149   : > { %v923_v28 = vpop.xlane.xlu1 %922  ;;  %v560_v55 = vpop.xlane.xlu0 %559  ;;  %v804_v42 = vadd.f32 %v7416_v59, %v781_v8  ;;  %v760_v12 = vmul.f32 %v6619_v30, %v7227_v2  ;;  %v1255_v2 = vld [vmem:[%s9567_s7 + $0x8] sm:$0xff] }
 0x14a   : > { %6632 = vrsqrt.f32 %v973_v45  ;;  %v959_v51 = vmul.f32 0.03125, %v923_v28  ;;  %v605_v48 = vmul.f32 0.03125, %v560_v55  ;;  %5950 = vmatmul.mubr.msk.f32.vlgmr.msra.gmra.mxu1 %vm554_vm0, %v803_v62  ;;  %v782_v16 = vmul.f32 %v7410_v33, %v759_v34 }
 0x14b   : > { %v6621_v36 = vpop.eup %6620  ;;  %6634 = vrsqrt.f32 %v974_v31  ;;  %5952 = vmatprep.mubr.msk.f32.mxu1 %vm554_vm0, %v804_v42  ;;  %v783_v63 = vmul.f32 %v7410_v33, %v760_v12  ;;  %5962 = vmatpush3.msra.mxu1 %v7375_v39 }
 0x14c   : > { %v6623_v58 = vpop.eup %6622  ;;  %v975_v60 = vadd.f32 1e-05, %v959_v51  ;;  %v7441_v37 = vsub.f32 %v7287_v18, %v605_v48  ;;  %v805_v0 = vadd.f32 %v7416_v59, %v782_v16  ;;  %v761_v1 = vmul.f32 %v6621_v36, %v7230_v5  ;;  %5963 = vmatprep.subr.mxu1 %v1256_v32 }
 0x14d   : > { %v926_v20 = vpop.xlane.xlu1 %925  ;;  %v932_v4 = vpop.xlane.xlu0 %931  ;;  %v806_v6 = vadd.f32 %v7416_v59, %v783_v63  ;;  %v762_v39 = vmul.f32 %v6623_v58, %v7239_v27  ;;  %5964 = vmatpush3.msra.mxu1 %v1256_v32 }
 0x14e   : > { %6636 = vrsqrt.f32 %v975_v60  ;;  %v960_v54 = vmul.f32 0.03125, %v926_v20  ;;  %v962_v18 = vmul.f32 0.03125, %v932_v4  ;;  %5953 = vmatmul.mubr.msk.f32.gmra.mxu1 %vm554_vm0, %v805_v0  ;;  %v637_v5 = vmul.f32 %v7441_v37, %v7441_v37  ;;  %5965 = vmatprep.subr.mxu1 %v1255_v2 }
 0x14f   : > { %v6625_v10 = vpop.eup %6624  ;;  %5955 = vmatprep.mubr.msk.f32.mxu1 %vm554_vm0, %v806_v6  ;;  %v784_v11 = vmul.f32 %v7410_v33, %v761_v1  ;;  %v785_v27 = vmul.f32 %v7410_v33, %v762_v39  ;;  %5966 = vmatpush3.msra.mxu1 %v1255_v2 }
 0x150   : > { %v6627_v14 = vpop.eup %6626  ;;  %v976_v24 = vadd.f32 1e-05, %v960_v54  ;;  %v978_v19 = vadd.f32 1e-05, %v962_v18  ;;  %v655_v22 = vsel %vm554_vm0, %v637_v5, 0.0  ;;  %v763_v26 = vmul.f32 %v6625_v10, %v7242_v9  ;;  %5967 = vmatprep.subr.mxu1 %v1254_v7 }
 0x151   : > { %v929_v8 = vpop.xlane.xlu1 %928  ;;  %656 = vadd.xlane.f32.xlu1 %v655_v22  ;;  %v938_v30 = vpop.xlane.xlu0 %937  ;;  %v807_v45 = vadd.f32 %v7416_v59, %v784_v11  ;;  %v808_v31 = vadd.f32 %v7416_v59, %v785_v27  ;;  %v1002_v62 = vmul.f32 %v6627_v14, %v7251_v43  ;;  %5968 = vmatpush3.msra.mxu1 %v1254_v7 }
 0x152   : > { %6638 = vrsqrt.f32 %v976_v24  ;;  %v961_v34 = vmul.f32 0.03125, %v929_v8  ;;  %v964_v28 = vmul.f32 0.03125, %v938_v30  ;;  %v786_v55 = vmul.f32 %v7410_v33, %v763_v26 }
 0x153   : > { %v6629_v42 = vpop.eup %6628  ;;  %6640 = vrsqrt.f32 %v978_v19  ;;  %5956 = vmatmul.mubr.msk.f32.gmra.mxu1 %vm554_vm0, %v807_v45  ;;  %v1018_v9 = vmul.f32 %v7410_v33, %v1002_v62 }
 0x154   : > { %v6631_v12 = vpop.eup %6630  ;;  %v1003_v32 = vmul.f32 %v6629_v42, %v7254_v13  ;;  %v977_v51 = vadd.f32 1e-05, %v961_v34  ;;  %v980_v48 = vadd.f32 1e-05, %v964_v28  ;;  %5958 = vmatprep.mubr.msk.f32.mxu1 %vm554_vm0, %v808_v31  ;;  %v809_v43 = vadd.f32 %v7416_v59, %v786_v55 }
 0x155   : > { %v935_v16 = vpop.xlane.xlu1 %934  ;;  %v944_v36 = vpop.xlane.xlu0 %943  ;;  %v1034_v63 = vadd.f32 %v7416_v59, %v1018_v9  ;;  %v1004_v2 = vmul.f32 %v6631_v12, %v7263_v56 }
 0x156   : > { %v1019_v58 = vmul.f32 %v7410_v33, %v1003_v32  ;;  %6642 = vrsqrt.f32 %v977_v51  ;;  %v963_v60 = vmul.f32 0.03125, %v935_v16  ;;  %v966_v0 = vmul.f32 0.03125, %v944_v36 }
 0x157   : > { %v6633_v1 = vpop.eup %6632  ;;  %6644 = vrsqrt.f32 %v980_v48  ;;  %5959 = vmatmul.mubr.msk.f32.gmra.mxu1 %vm554_vm0, %v809_v43  ;;  %v1020_v13 = vmul.f32 %v7410_v33, %v1004_v2 }
 0x158   : > { %v6635_v20 = vpop.eup %6634  ;;  %v979_v4 = vadd.f32 1e-05, %v963_v60  ;;  %v982_v6 = vadd.f32 1e-05, %v966_v0  ;;  %5969 = vmatprep.mubr.msk.f32.mxu1 %vm554_vm0, %v1034_v63  ;;  %v1035_v39 = vadd.f32 %v7416_v59, %v1019_v58  ;;  %v1005_v56 = vmul.f32 %v6633_v1, %v7266_v17 }
 0x159   : > { %v941_v7 = vpop.xlane.xlu1 %940  ;;  %v950_v54 = vpop.xlane.xlu0 %949  ;;  %v1036_v18 = vadd.f32 %v7416_v59, %v1020_v13  ;;  %v1006_v5 = vmul.f32 %v6635_v20, %v7275_v21 }
 0x15a   : > { %6646 = vrsqrt.f32 %v979_v4  ;;  %v965_v10 = vmul.f32 0.03125, %v941_v7  ;;  %v968_v11 = vmul.f32 0.03125, %v950_v54  ;;  %v1021_v27 = vmul.f32 %v7410_v33, %v1005_v56 }
 0x15b   : > { %v6637_v14 = vpop.eup %6636  ;;  %6648 = vrsqrt.f32 %v982_v6  ;;  %5970 = vmatmul.mubr.msk.f32.vlgmr.msra.gmra.mxu1 %vm554_vm0, %v1035_v39  ;;  %v1022_v24 = vmul.f32 %v7410_v33, %v1006_v5 }
 0x15c   : > { %v981_v19 = vadd.f32 1e-05, %v965_v10  ;;  %v984_v22 = vadd.f32 1e-05, %v968_v11  ;;  %5972 = vmatprep.mubr.msk.f32.mxu1 %vm554_vm0, %v1036_v18  ;;  %v1037_v17 = vadd.f32 %v7416_v59, %v1021_v27  ;;  %v1007_v26 = vmul.f32 %v6637_v14, %v7278_v3 }
 0x15d   : > { %v947_v21 = vpop.xlane.xlu1 %946  ;;  %v563_v8 = vpop.xlane.xlu0 %562  ;;  %v1038_v30 = vadd.f32 %v7416_v59, %v1022_v24 }
 0x15e   : > { %6650 = vrsqrt.f32 %v981_v19  ;;  %v967_v45 = vmul.f32 0.03125, %v947_v21  ;;  %v606_v31 = vmul.f32 0.03125, %v563_v8  ;;  %v1023_v62 = vmul.f32 %v7410_v33, %v1007_v26 }
 0x15f   : > { %v6639_v34 = vpop.eup %6638  ;;  %6652 = vrsqrt.f32 %v984_v22  ;;  %5973 = vmatmul.mubr.msk.f32.gmra.mxu1 %vm554_vm0, %v1037_v17 }
 0x160   : > { %v6641_v28 = vpop.eup %6640  ;;  %v983_v55 = vadd.f32 1e-05, %v967_v45  ;;  %v7487_v42 = vsub.f32 %v7361_v44, %v606_v31  ;;  %5975 = vmatprep.mubr.msk.f32.mxu1 %vm554_vm0, %v1038_v30  ;;  %v1039_v3 = vadd.f32 %v7416_v59, %v1023_v62  ;;  %v1008_v9 = vmul.f32 %v6639_v34, %v7290_v25 }
 0x161   : > { %v953_v12 = vpop.xlane.xlu1 %952  ;;  %v569_v32 = vpop.xlane.xlu0 %568  ;;  %v1010_v51 = vmul.f32 %v6641_v28, %v7302_v35 }
 0x162   : > { %6654 = vrsqrt.f32 %v983_v55  ;;  %v969_v48 = vmul.f32 0.03125, %v953_v12  ;;  %v608_v43 = vmul.f32 0.03125, %v569_v32  ;;  %v638_v16 = vmul.f32 %v7487_v42, %v7487_v42 }
 0x163   : > { %v6643_v36 = vpop.eup %6642  ;;  %5976 = vmatmul.mubr.msk.f32.gmra.mxu1 %vm554_vm0, %v1039_v3  ;;  %v1024_v44 = vmul.f32 %v7410_v33, %v1008_v9  ;;  %v1026_v13 = vmul.f32 %v7410_v33, %v1010_v51 }
 0x164   : > { %v6645_v63 = vpop.eup %6644  ;;  %v985_v2 = vadd.f32 1e-05, %v969_v48  ;;  %v7498_v58 = vsub.f32 %v7370_v38, %v608_v43  ;;  %v658_v25 = vsel %vm554_vm0, %v638_v16, 0.0  ;;  %v1009_v35 = vmul.f32 %v6643_v36, %v7294_v23 }
 0x165   : > { %v566_v60 = vpop.xlane.xlu1 %565  ;;  %659 = vadd.xlane.f32.xlu0 %v658_v25  ;;  %v575_v0 = vpop.xlane.xlu0 %574  ;;  %v1040_v1 = vadd.f32 %v7416_v59, %v1024_v44  ;;  %v1012_v20 = vmul.f32 %v6645_v63, %v7316_v50  ;;  %v1042_v14 = vadd.f32 %v7416_v59, %v1026_v13 }
 0x166   : > { %6656 = vrsqrt.f32 %v985_v2  ;;  %v607_v4 = vmul.f32 0.03125, %v566_v60  ;;  %v610_v6 = vmul.f32 0.03125, %v575_v0  ;;  %v640_v38 = vmul.f32 %v7498_v58, %v7498_v58 }
 0x167   : > { %v6647_v39 = vpop.eup %6646  ;;  %5978 = vmatprep.mubr.msk.f32.mxu1 %vm554_vm0, %v1040_v1  ;;  %v1025_v23 = vmul.f32 %v7410_v33, %v1009_v35  ;;  %v1028_v56 = vmul.f32 %v7410_v33, %v1012_v20 }
 0x168   : > { %v6649_v7 = vpop.eup %6648  ;;  %v7511_v54 = vsub.f32 %v7385_v47, %v607_v4  ;;  %v7514_v18 = vsub.f32 %v7388_v49, %v610_v6  ;;  %v664_v50 = vsel %vm554_vm0, %v640_v38, 0.0  ;;  %v1011_v5 = vmul.f32 %v6647_v39, %v7305_v29 }
 0x169   : > { %v572_v10 = vpop.xlane.xlu1 %571  ;;  %665 = vadd.xlane.f32.xlu0 %v664_v50  ;;  %v654_v11 = vpop.xlane.xlu0 %653  ;;  %v1041_v27 = vadd.f32 %v7416_v59, %v1025_v23  ;;  %v1014_v24 = vmul.f32 %v6649_v7, %v7334_v61  ;;  %v1044_v26 = vadd.f32 %v7416_v59, %v1028_v56 }
 0x16a   : > { %v609_v19 = vmul.f32 0.03125, %v572_v10  ;;  %v700_v22 = vmul.f32 0.03125, %v654_v11  ;;  %v639_v47 = vmul.f32 %v7511_v54, %v7511_v54  ;;  %v642_v49 = vmul.f32 %v7514_v18, %v7514_v18 }
 0x16b   : > { %v6651_v17 = vpop.eup %6650  ;;  %5979 = vmatmul.mubr.msk.f32.gmra.mxu1 %vm554_vm0, %v1041_v27  ;;  %v1027_v29 = vmul.f32 %v7410_v33, %v1011_v5  ;;  %v1030_v28 = vmul.f32 %v7410_v33, %v1014_v24 }
 0x16c   : > { %v6653_v21 = vpop.eup %6652  ;;  %v7529_v8 = vsub.f32 %v7397_v53, %v609_v19  ;;  %v716_v61 = vadd.f32 1e-05, %v700_v22  ;;  %5981 = vmatprep.mubr.msk.f32.mxu1 %vm554_vm0, %v1042_v14  ;;  %v661_v30 = vsel %vm554_vm0, %v639_v47, 0.0  ;;  %v670_v45 = vsel %vm554_vm0, %v642_v49, 0.0 }
 0x16d   : > { %v578_v31 = vpop.xlane.xlu1 %577  ;;  %662 = vadd.xlane.f32.xlu1 %v661_v30  ;;  %671 = vadd.xlane.f32.xlu0 %v670_v45  ;;  %v1043_v62 = vadd.f32 %v7416_v59, %v1027_v29  ;;  %v1013_v34 = vmul.f32 %v6651_v17, %v7320_v52  ;;  %v1016_v3 = vmul.f32 %v6653_v21, %v7349_v15 }
 0x16e   : > { %6658 = vrsqrt.f32 %v716_v61  ;;  %v611_v55 = vmul.f32 0.03125, %v578_v31  ;;  %v641_v53 = vmul.f32 %v7529_v8, %v7529_v8  ;;  %v1046_v43 = vadd.f32 %v7416_v59, %v1030_v28 }
 0x16f   : > { %v6655_v9 = vpop.eup %6654  ;;  %5982 = vmatmul.mubr.msk.f32.gmra.mxu1 %vm554_vm0, %v1043_v62  ;;  %v1029_v12 = vmul.f32 %v7410_v33, %v1013_v34  ;;  %v1032_v36 = vmul.f32 %v7410_v33, %v1016_v3 }
 0x170   : > { %v7543_v32 = vsub.f32 %v7403_v57, %v611_v55  ;;  %5984 = vmatprep.mubr.msk.f32.mxu1 %vm554_vm0, %v1044_v26  ;;  %v667_v52 = vsel %vm554_vm0, %v641_v53, 0.0  ;;  %v1015_v51 = vmul.f32 %v6655_v9, %v7344_v40 }
 0x171   : > { %668 = vadd.xlane.f32.xlu1 %v667_v52  ;;  %v1045_v48 = vadd.f32 %v7416_v59, %v1029_v12  ;;  %v1048_v2 = vadd.f32 %v7416_v59, %v1032_v36 }
 0x172   : > { %v643_v15 = vmul.f32 %v7543_v32, %v7543_v32  ;;  %v1031_v16 = vmul.f32 %v7410_v33, %v1015_v51 }
 0x173   : > { %v6657_v57 = vpop.eup %6656  ;;  %5985 = vmatmul.mubr.msk.f32.gmra.mxu1 %vm554_vm0, %v1045_v48 }
 0x174   : > { %5987 = vmatprep.mubr.msk.f32.mxu1 %vm554_vm0, %v1046_v43  ;;  %v673_v44 = vsel %vm554_vm0, %v643_v15, 0.0  ;;  %v1047_v40 = vadd.f32 %v7416_v59, %v1031_v16  ;;  %v1017_v63 = vmul.f32 %v6657_v57, %v7353_v41 }
 0x175   : > { %674 = vadd.xlane.f32.xlu1 %v673_v44 }
 0x176   : > { %v1033_v25 = vmul.f32 %v7410_v33, %v1017_v63 }
 0x177   : > { %5988 = vmatmul.mubr.msk.f32.gmra.mxu1 %vm554_vm0, %v1047_v40 }
 0x178   : > { %5990 = vmatprep.mubr.msk.f32.mxu1 %vm554_vm0, %v1048_v2  ;;  %v1049_v35 = vadd.f32 %v7416_v59, %v1033_v25 }
 0x17b   : > { %v6659_v60 = vpop.eup %6658  ;;  %5991 = vmatmul.mubr.msk.f32.gmra.mxu1 %vm554_vm0, %v1049_v35 }
 0x17c   : > { %v748_v0 = vmul.f32 %v6659_v60, %v7382_v46 }
 0x17e   : > { %v771_v1 = vmul.f32 %v7410_v33, %v748_v0 }
 0x180   : > { %v794_v41 = vadd.f32 %v7416_v59, %v771_v1 }
 0x182   : > { %5937 = vmatprep.mubr.msk.f32.mxu0 %vm554_vm0, %v794_v41 }
 0x1da   : > { %v657_v13 = vpop.xlane.xlu1 %656 }
 0x1db   : > { %v701_v20 = vmul.f32 0.03125, %v657_v13 }
 0x1dd   : > { %v717_v4 = vadd.f32 1e-05, %v701_v20 }
 0x1df   : > { %6660 = vrsqrt.f32 %v717_v4 }
 0x1ec   : > { %v6661_v6 = vpop.eup %6660 }
 0x1ed   : > { %v749_v38 = vmul.f32 %v6661_v6, %v7441_v37 }
 0x1ee   : > { %v660_v39 = vpop.xlane.xlu0 %659 }
 0x1ef   : > { %v702_v23 = vmul.f32 0.03125, %v660_v39  ;;  %v772_v56 = vmul.f32 %v7410_v33, %v749_v38 }
 0x1f1   : > { %v718_v7 = vadd.f32 1e-05, %v702_v23  ;;  %v795_v46 = vadd.f32 %v7416_v59, %v772_v56 }
 0x1f2   : > { %v666_v50 = vpop.xlane.xlu0 %665 }
 0x1f3   : > { %6662 = vrsqrt.f32 %v718_v7  ;;  %v704_v5 = vmul.f32 0.03125, %v666_v50  ;;  %5938 = vmatmul.mubr.msk.f32.vlgmr.msra.gmra.mxu0 %vm554_vm0, %v795_v46 }
 0x1f5   : > { %v720_v10 = vadd.f32 1e-05, %v704_v5 }
 0x1f6   : > { %v663_v11 = vpop.xlane.xlu1 %662  ;;  %v672_v27 = vpop.xlane.xlu0 %671 }
 0x1f7   : > { %6664 = vrsqrt.f32 %v720_v10  ;;  %v703_v14 = vmul.f32 0.03125, %v663_v11  ;;  %v706_v24 = vmul.f32 0.03125, %v672_v27 }
 0x1f9   : > { %v719_v19 = vadd.f32 1e-05, %v703_v14  ;;  %v722_v37 = vadd.f32 1e-05, %v706_v24 }
 0x1fa   : > { %v669_v22 = vpop.xlane.xlu1 %668 }
 0x1fb   : > { %6666 = vrsqrt.f32 %v719_v19  ;;  %v705_v47 = vmul.f32 0.03125, %v669_v22  ;;  %v1474_v19 = vld [vmem:[%s9563_s3] sm:$0xff] }
 0x1fc   : > { %6668 = vrsqrt.f32 %v722_v37  ;;  %5993 = vmatprep.subr.mxu0 %v1474_v19  ;;  %v1458_v22 = vld [vmem:[%s9562_s2] sm:$0xff] }
 0x1fd   : > { %v721_v49 = vadd.f32 1e-05, %v705_v47  ;;  %5994 = vmatpush3.msra.mxu0 %v1474_v19 }
 0x1fe   : > { %v675_v17 = vpop.xlane.xlu1 %674 }
 0x1ff   : > { %6670 = vrsqrt.f32 %v721_v49  ;;  %v707_v29 = vmul.f32 0.03125, %v675_v17  ;;  %v1459_v17 = vld [vmem:[%s9562_s2 + $0x8] sm:$0xff] }
 0x200   : > { %v6663_v26 = vpop.eup %6662 }
 0x201   : > { %v723_v21 = vadd.f32 1e-05, %v707_v29  ;;  %v750_v61 = vmul.f32 %v6663_v26, %v7487_v42 }
 0x203   : > { %6672 = vrsqrt.f32 %v723_v21  ;;  %v773_v30 = vmul.f32 %v7410_v33, %v750_v61 }
 0x204   : > { %v6665_v45 = vpop.eup %6664 }
 0x205   : > { %v796_v31 = vadd.f32 %v7416_v59, %v773_v30  ;;  %v752_v62 = vmul.f32 %v6665_v45, %v7498_v58 }
 0x207   : > { %5940 = vmatprep.mubr.msk.f32.mxu0 %vm554_vm0, %v796_v31  ;;  %v775_v3 = vmul.f32 %v7410_v33, %v752_v62  ;;  %v1460_v31 = vld [vmem:[%s9562_s2 + $0x10] sm:$0xff]  ;;  %v1461_v62 = vld [vmem:[%s9562_s2 + $0x18] sm:$0xff] }
 0x208   : > { %v6667_v34 = vpop.eup %6666 }
 0x209   : > { %v6669_v28 = vpop.eup %6668  ;;  %v751_v55 = vmul.f32 %v6667_v34, %v7511_v54  ;;  %v798_v43 = vadd.f32 %v7416_v59, %v775_v3  ;;  %v1462_v34 = vld [vmem:[%s9562_s2 + $0x20] sm:$0xff]  ;;  %v1465_v3 = vld [vmem:[%s9562_s2 + $0x38] sm:$0xff] }
 0x20a   : > { %v7579_v53 = vpop.f32.mrf.mxu1  ;;  %v754_v42 = vmul.f32 %v6669_v28, %v7514_v18  ;;  %v1463_v28 = vld [vmem:[%s9562_s2 + $0x28] sm:$0xff] }
 0x20b   : > { %v774_v9 = vmul.f32 %v7410_v33, %v751_v55  ;;  %v1464_v55 = vld [vmem:[%s9562_s2 + $0x30] sm:$0xff] }
 0x20c   : > { %v6671_v12 = vpop.eup %6670  ;;  %v7584_v52 = vpop.f32.mrf.mxu1  ;;  %v777_v54 = vmul.f32 %v7410_v33, %v754_v42  ;;  %v1466_v42 = vld [vmem:[%s9562_s2 + $0x40] sm:$0xff] }
 0x20d   : > { %v797_v51 = vadd.f32 %v7416_v59, %v774_v9  ;;  %v753_v58 = vmul.f32 %v6671_v12, %v7529_v8  ;;  %v1467_v9 = vld [vmem:[%s9562_s2 + $0x48] sm:$0xff]  ;;  %v1468_v12 = vld [vmem:[%s9562_s2 + $0x50] sm:$0xff] }
 0x20e   : > { %v7588_v48 = vpop.f32.mrf.mxu1  ;;  %v800_v8 = vadd.f32 %v7416_v59, %v777_v54  ;;  %v1472_v54 = vld [vmem:[%s9562_s2 + $0x70] sm:$0xff] }
 0x20f   : > { %5941 = vmatmul.mubr.msk.f32.gmra.mxu0 %vm554_vm0, %v797_v51  ;;  %v776_v15 = vmul.f32 %v7410_v33, %v753_v58  ;;  %v1469_v51 = vld [vmem:[%s9562_s2 + $0x58] sm:$0xff]  ;;  %v1470_v58 = vld [vmem:[%s9562_s2 + $0x60] sm:$0xff] }
 0x210   : > { %v6673_v18 = vpop.eup %6672  ;;  %5943 = vmatprep.mubr.msk.f32.mxu0 %vm554_vm0, %v798_v43  ;;  %v7595_v16 = vpop.f32.mrf.mxu1  ;;  %v1471_v43 = vld [vmem:[%s9562_s2 + $0x68] sm:$0xff] }
 0x211   : > { %v799_v36 = vadd.f32 %v7416_v59, %v776_v15  ;;  %v755_v57 = vmul.f32 %v6673_v18, %v7543_v32  ;;  %v5316_v32 = vld [vmem:[%s9568_s8] ss:$0 sm:$0xff]  ;;  %v1473_v15 = vld [vmem:[%s9562_s2 + $0x78] sm:$0xff] }
 0x213   : > { %v7600_v44 = vpop.f32.mrf.mxu1  ;;  %5944 = vmatmul.mubr.msk.f32.gmra.mxu0 %vm554_vm0, %v799_v36  ;;  %v778_v40 = vmul.f32 %v7410_v33, %v755_v57 }
 0x214   : > { %5946 = vmatprep.mubr.msk.f32.mxu0 %vm554_vm0, %v800_v8 }
 0x215   : > { %v7605_v63 = vpop.f32.mrf.mxu1  ;;  %v801_v2 = vadd.f32 %v7416_v59, %v778_v40 }
 0x217   : > { %v7608_v25 = vpop.f32.mrf.mxu1  ;;  %5947 = vmatmul.mubr.msk.f32.gmra.mxu0 %vm554_vm0, %v801_v2 }
 0x218   : > { %5995 = vmatprep.mubr.msk.f32.mxu0 %vm1475_vm1, %v1458_v22 }
 0x219   : > { %v7611_v35 = vpop.f32.mrf.mxu1 }
 0x21b   : > { %v5971_v60 = vpop.f32.mrf.mxu1  ;;  %5996 = vmatmul.mubr.msk.f32.vlgmr.msra.gmra.mxu0 %vm1475_vm1, %v1459_v17 }
 0x21c   : > { %v7616_v0 = vadd.f32 %v5971_v60, %v5316_v32  ;;  %5998 = vmatprep.mubr.msk.f32.mxu0 %vm1475_vm1, %v1460_v31 }
 0x21d   : > { %v1379_v33 = vpop.f32.mrf.mxu1 }
 0x21e   : > { %9651 = vst [vmem:[#allocation2_spill] sm:$0xff] %v7616_v0  ;;  %v7618_v1 = vadd.f32 %v5316_v32, %v1379_v33  ;;  %2143 = vrot.lane.b32.xlu0 %v7616_v0, %s6970_s17 }
 0x21f   : > { %v5974_v59 = vpop.f32.mrf.mxu1  ;;  %5999 = vmatmul.mubr.msk.f32.gmra.mxu0 %vm1475_vm1, %v1461_v62 }
 0x220   : > { %9652 = vst [vmem:[#allocation3_spill] sm:$0xff] %v7618_v1  ;;  %v7622_v41 = vadd.f32 %v5974_v59, %v5316_v32  ;;  %2141 = vrot.lane.b32.xlu1 %v7618_v1, %s6970_s17  ;;  %6001 = vmatprep.mubr.msk.f32.mxu0 %vm1475_vm1, %v1462_v34 }
 0x221   : > { %v1389_v13 = vpop.f32.mrf.mxu1 }
 0x222   : > { %9653 = vst [vmem:[#allocation4_spill] sm:$0xff] %v7622_v41  ;;  %v7626_v20 = vadd.f32 %v5316_v32, %v1389_v13  ;;  %2147 = vrot.lane.b32.xlu0 %v7622_v41, %s6970_s17 }
 0x223   : > { %v5977_v4 = vpop.f32.mrf.mxu1  ;;  %6002 = vmatmul.mubr.msk.f32.gmra.mxu0 %vm1475_vm1, %v1463_v28 }
 0x224   : > { %9654 = vst [vmem:[#allocation5_spill] sm:$0xff] %v7626_v20  ;;  %v7630_v6 = vadd.f32 %v5977_v4, %v5316_v32  ;;  %2145 = vrot.lane.b32.xlu1 %v7626_v20, %s6970_s17  ;;  %6004 = vmatprep.mubr.msk.f32.mxu0 %vm1475_vm1, %v1464_v55 }
 0x225   : > { %v1399_v38 = vpop.f32.mrf.mxu1 }
 0x226   : > { %9655 = vst [vmem:[#allocation6_spill] sm:$0xff] %v7630_v6  ;;  %v7634_v39 = vadd.f32 %v5316_v32, %v1399_v38  ;;  %2151 = vrot.lane.b32.xlu0 %v7630_v6, %s6970_s17 }
 0x227   : > { %6005 = vmatmul.mubr.msk.f32.gmra.mxu0 %vm1475_vm1, %v1465_v3 }
 0x228   : > { %9656 = vst [vmem:[#allocation7_spill] sm:$0xff] %v7634_v39  ;;  %2149 = vrot.lane.b32.xlu1 %v7634_v39, %s6970_s17  ;;  %6007 = vmatprep.mubr.msk.f32.mxu0 %vm1475_vm1, %v1466_v42 }
 0x22b   : > { %v5980_v23 = vpop.f32.mrf.mxu1  ;;  %6008 = vmatmul.mubr.msk.f32.gmra.mxu0 %vm1475_vm1, %v1467_v9 }
 0x22c   : > { %v7640_v56 = vadd.f32 %v5980_v23, %v5316_v32  ;;  %6010 = vmatprep.mubr.msk.f32.mxu0 %vm1475_vm1, %v1468_v12 }
 0x22d   : > { %v1409_v7 = vpop.f32.mrf.mxu1 }
 0x22e   : > { %9657 = vst [vmem:[#allocation8_spill] sm:$0xff] %v7640_v56  ;;  %v7642_v46 = vadd.f32 %v5316_v32, %v1409_v7  ;;  %2155 = vrot.lane.b32.xlu0 %v7640_v56, %s6970_s17 }
 0x22f   : > { %v5983_v50 = vpop.f32.mrf.mxu1  ;;  %6011 = vmatmul.mubr.msk.f32.gmra.mxu0 %vm1475_vm1, %v1469_v51 }
 0x230   : > { %9658 = vst [vmem:[#allocation9_spill] sm:$0xff] %v7642_v46  ;;  %2153 = vrot.lane.b32.xlu1 %v7642_v46, %s6970_s17  ;;  %v7648_v10 = vadd.f32 %v5983_v50, %v5316_v32  ;;  %6013 = vmatprep.mubr.msk.f32.mxu0 %vm1475_vm1, %v1470_v58 }
 0x231   : > { %v1419_v5 = vpop.f32.mrf.mxu1 }
 0x232   : > { %9659 = vst [vmem:[#allocation10_spill] sm:$0xff] %v7648_v10  ;;  %v7654_v24 = vadd.f32 %v5316_v32, %v1419_v5 }
 0x233   : > { %v5986_v11 = vpop.f32.mrf.mxu1  ;;  %6014 = vmatmul.mubr.msk.f32.gmra.mxu0 %vm1475_vm1, %v1471_v43 }
 0x234   : > { %v7650_v27 = vadd.f32 %v5986_v11, %v5316_v32  ;;  %2159 = vrot.lane.b32.xlu1 %v7648_v10, %s6970_s17  ;;  %9661 = vst [vmem:[#allocation12_spill] sm:$0xff] %v7654_v24  ;;  %6016 = vmatprep.mubr.msk.f32.mxu0 %vm1475_vm1, %v1472_v54  ;;  %v7832_v11 = vld [vmem:[%s9566_s6] ss:$0 sm:$0xff] }
 0x235   : > { %v1429_v14 = vpop.f32.mrf.mxu1  ;;  %v7882_v43 = vadd.f32 %v7832_v11, %v7584_v52  ;;  %v7892_v54 = vadd.f32 %v7579_v53, %v7832_v11  ;;  %v7904_v52 = vadd.f32 %v7588_v48, %v7832_v11  ;;  %v7916_v53 = vadd.f32 %v7600_v44, %v7832_v11 }
 0x236   : > { %9660 = vst [vmem:[#allocation11_spill] sm:$0xff] %v7650_v27  ;;  %2163 = vrot.lane.b32.xlu0 %v7650_v27, %s6970_s17  ;;  %v7667_v49 = vadd.f32 %v5316_v32, %v1429_v14  ;;  %v7928_v48 = vadd.f32 %v7608_v25, %v7832_v11 }
 0x237   : > { %v5989_v37 = vpop.f32.mrf.mxu1  ;;  %6017 = vmatmul.mubr.msk.f32.gmra.mxu0 %vm1475_vm1, %v1473_v15  ;;  %9667 = vst [vmem:[#allocation18_spill] sm:$0xff] %v7892_v54  ;;  %v7896_v15 = vadd.f32 %v7832_v11, %v7595_v16  ;;  %9669 = vst [vmem:[#allocation20_spill] sm:$0xff] %v7904_v52  ;;  %v7920_v16 = vadd.f32 %v7832_v11, %v7611_v35  ;;  %v7935_v35 = vld [vmem:[%s9564_s4] ss:$0 sm:$0xff] }
 0x238   : > { %2157 = vrot.lane.b32.xlu1 %v7654_v24, %s6970_s17  ;;  %9662 = vst [vmem:[#allocation13_spill] sm:$0xff] %v7667_v49  ;;  %v7675_v26 = vadd.f32 %v5989_v37, %v5316_v32  ;;  %9671 = vst [vmem:[#allocation22_spill] sm:$0xff] %v7916_v53 }
 0x239   : > { %v1439_v47 = vpop.f32.mrf.mxu1  ;;  %9668 = vst [vmem:[#allocation19_spill] sm:$0xff] %v7896_v15  ;;  %9672 = vst [vmem:[#allocation23_spill] sm:$0xff] %v7920_v16 }
 0x23a   : > { %2389 = vrot.lane.b32.xlu0 %v7650_v27, %s6971_s22  ;;  %9663 = vst [vmem:[#allocation14_spill] sm:$0xff] %v7675_v26  ;;  %v7681_v30 = vadd.f32 %v5316_v32, %v1439_v47  ;;  %9673 = vst [vmem:[#allocation24_spill] sm:$0xff] %v7928_v48 }
 0x23b   : > { %v5992_v29 = vpop.f32.mrf.mxu1 }
 0x23c   : > { %v7677_v21 = vadd.f32 %v5992_v29, %v5316_v32  ;;  %2161 = vrot.lane.b32.xlu1 %v7667_v49, %s6970_s17  ;;  %9665 = vst [vmem:[#allocation16_spill] sm:$0xff] %v7681_v30 }
 0x23d   : > { %v1449_v61 = vpop.f32.mrf.mxu1 }
 0x23e   : > { %9664 = vst [vmem:[#allocation15_spill] sm:$0xff] %v7677_v21  ;;  %v7683_v45 = vadd.f32 %v5316_v32, %v1449_v61  ;;  %6019 = vmatprep.subr.msk.mxu1 %vm1475_vm1, %v7677_v21  ;;  %2167 = vrot.lane.b32.xlu0 %v7675_v26, %s6970_s17 }
 0x23f   : > { %6020 = vmatpush3.xpose.msk.msra.mxu1 %vm1475_vm1, %v7677_v21 }
 0x240   : > { %9666 = vst [vmem:[#allocation17_spill] sm:$0xff] %v7683_v45  ;;  %2165 = vrot.lane.b32.xlu1 %v7681_v30, %s6970_s17  ;;  %6021 = vmatprep.subr.msk.mxu1 %vm1475_vm1, %v7683_v45 }
 0x242   : > { %2393 = vrot.lane.b32.xlu0 %v7675_v26, %s6971_s22 }
 0x243   : > { %6022 = vmatpush3.xpose.msk.msra.mxu1 %vm1475_vm1, %v7683_v45 }
 0x244   : > { %2391 = vrot.lane.b32.xlu1 %v7681_v30, %s6971_s22  ;;  %6023 = vmatprep.subr.msk.mxu1 %vm1475_vm1, %v7675_v26 }
 0x246   : > { %2171 = vrot.lane.b32.xlu0 %v7677_v21, %s6970_s17 }
 0x247   : > { %6024 = vmatpush3.xpose.msk.msra.mxu1 %vm1475_vm1, %v7675_v26 }
 0x248   : > { %2169 = vrot.lane.b32.xlu1 %v7683_v45, %s6970_s17  ;;  %6025 = vmatprep.subr.msk.mxu1 %vm1475_vm1, %v7681_v30  ;;  %s6974_s17 = smov 104  }
 0x24a   : > { %2397 = vrot.lane.b32.xlu0 %v7677_v21, %s6971_s22 }
 0x24b   : > { %6026 = vmatpush3.xpose.msk.msra.mxu1 %vm1475_vm1, %v7681_v30 }
 0x24c   : > { %2395 = vrot.lane.b32.xlu1 %v7683_v45, %s6971_s22  ;;  %6027 = vmatprep.subr.msk.mxu1 %vm1475_vm1, %v7650_v27 }
 0x24f   : > { %6028 = vmatpush3.xpose.msk.msra.mxu1 %vm1475_vm1, %v7650_v27 }
 0x250   : > { %6029 = vmatprep.subr.msk.mxu1 %vm1475_vm1, %v7667_v49 }
 0x253   : > { %6030 = vmatpush3.xpose.msk.msra.mxu1 %vm1475_vm1, %v7667_v49 }
 0x254   : > { %6031 = vmatprep.subr.msk.mxu1 %vm1475_vm1, %v7648_v10 }
 0x257   : > { %6032 = vmatpush3.xpose.msk.msra.mxu1 %vm1475_vm1, %v7648_v10 }
 0x258   : > { %6033 = vmatprep.subr.msk.mxu1 %vm1475_vm1, %v7654_v24 }
 0x25b   : > { %6034 = vmatpush3.xpose.msk.msra.mxu1 %vm1475_vm1, %v7654_v24 }
 0x25c   : > { %6035 = vmatprep.subr.msk.mxu1 %vm1475_vm1, %v7640_v56 }
 0x25f   : > { %6036 = vmatpush3.xpose.msk.msra.mxu1 %vm1475_vm1, %v7640_v56 }
 0x260   : > { %6037 = vmatprep.subr.msk.mxu1 %vm1475_vm1, %v7642_v46 }
 0x263   : > { %6038 = vmatpush3.xpose.msk.msra.mxu1 %vm1475_vm1, %v7642_v46 }
 0x264   : > { %6039 = vmatprep.subr.msk.mxu1 %vm1475_vm1, %v7630_v6 }
 0x267   : > { %6040 = vmatpush3.xpose.msk.msra.mxu1 %vm1475_vm1, %v7630_v6 }
 0x268   : > { %6041 = vmatprep.subr.msk.mxu1 %vm1475_vm1, %v7634_v39 }
 0x26b   : > { %6042 = vmatpush3.xpose.msk.msra.mxu1 %vm1475_vm1, %v7634_v39 }
 0x26c   : > { %6043 = vmatprep.subr.msk.mxu1 %vm1475_vm1, %v7622_v41 }
 0x26f   : > { %6044 = vmatpush3.xpose.msk.msra.mxu1 %vm1475_vm1, %v7622_v41 }
 0x270   : > { %6045 = vmatprep.subr.msk.mxu1 %vm1475_vm1, %v7626_v20 }
 0x273   : > { %6046 = vmatpush3.xpose.msk.msra.mxu1 %vm1475_vm1, %v7626_v20 }
 0x274   : > { %6047 = vmatprep.subr.msk.mxu1 %vm1475_vm1, %v7616_v0 }
 0x277   : > { %6048 = vmatpush3.xpose.msk.msra.mxu1 %vm1475_vm1, %v7616_v0 }
 0x278   : > { %6049 = vmatprep.subr.msk.mxu1 %vm1475_vm1, %v7618_v1 }
 0x27b   : > { %6050 = vmatpush3.xpose.msk.msra.mxu1 %vm1475_vm1, %v7618_v1 }
 0x290   : > { %v7823_v36 = vpop.permute.xlu0 %2143 }
 0x292   : > { %v7821_v18 = vpop.permute.xlu1 %2141 }
 0x294   : > { %v2148_v8 = vpop.permute.xlu0 %2147 }
 0x296   : > { %v2146_v57 = vpop.permute.xlu1 %2145 }
 0x298   : > { %v2152_v2 = vpop.permute.xlu0 %2151 }
 0x29a   : > { %v2150_v40 = vpop.permute.xlu1 %2149 }
 0x2a0   : > { %v2156_v60 = vpop.permute.xlu0 %2155 }
 0x2a2   : > { %v2154_v32 = vpop.permute.xlu1 %2153 }
 0x2a6   : > { %v2160_v33 = vpop.permute.xlu1 %2159 }
 0x2a8   : > { %v2164_v59 = vpop.permute.xlu0 %2163 }
 0x2aa   : > { %v2158_v13 = vpop.permute.xlu1 %2157 }
 0x2ac   : > { %v7825_v4 = vpop.permute.xlu0 %2389 }
 0x2ae   : > { %v2162_v38 = vpop.permute.xlu1 %2161 }
 0x2b0   : > { %v2168_v23 = vpop.permute.xlu0 %2167 }
 0x2b2   : > { %v2166_v7 = vpop.permute.xlu1 %2165 }
 0x2b3   : > { %v5939_v50 = vpop.f32.mrf.mxu0 }
 0x2b4   : > { %v7827_v5 = vpop.permute.xlu0 %2393  ;;  %v7840_v22 = vadd.f32 %v5939_v50, %v7832_v11 }
 0x2b5   : > { %v1175_v14 = vpop.f32.mrf.mxu0 }
 0x2b6   : > { %v7834_v19 = vpop.permute.xlu1 %2391  ;;  %v7837_v37 = vadd.f32 %v7832_v11, %v1175_v14 }
 0x2b8   : > { %v2172_v47 = vpop.permute.xlu0 %2171  ;;  %6051 = vmatprep.mubr.msk.f32.mxu1 %vm1475_vm1, %v7837_v37 }
 0x2b9   : > { %6075 = vmatprep.subr.mxu0 %v2172_v47  ;;  %6052 = vmatmul.mubr.msk.f32.vlgmr.msra.gmra.mxu1 %vm1475_vm1, %v7840_v22 }
 0x2ba   : > { %v2170_v17 = vpop.permute.xlu1 %2169  ;;  %6076 = vmatpush3.msra.mxu0 %v2172_v47 }
 0x2bb   : > { %6077 = vmatprep.subr.mxu0 %v2170_v17 }
 0x2bc   : > { %6078 = vmatpush3.msra.mxu0 %v2170_v17  ;;  %v7865_v9 = vpop.permute.xlu0 %2397 }
 0x2bd   : > { %6079 = vmatprep.subr.mxu0 %v2168_v23 }
 0x2be   : > { %6080 = vmatpush3.msra.mxu0 %v2168_v23 }
 0x2bf   : > { %6081 = vmatprep.subr.mxu0 %v2166_v7 }
 0x2c0   : > { %6082 = vmatpush3.msra.mxu0 %v2166_v7 }
 0x2c1   : > { %6083 = vmatprep.subr.mxu0 %v2164_v59 }
 0x2c2   : > { %6084 = vmatpush3.msra.mxu0 %v2164_v59 }
 0x2c3   : > { %6085 = vmatprep.subr.mxu0 %v2162_v38 }
 0x2c4   : > { %6086 = vmatpush3.msra.mxu0 %v2162_v38 }
 0x2c5   : > { %6087 = vmatprep.subr.mxu0 %v2160_v33 }
 0x2c6   : > { %6088 = vmatpush3.msra.mxu0 %v2160_v33 }
 0x2c7   : > { %6089 = vmatprep.subr.mxu0 %v2158_v13 }
 0x2c8   : > { %6090 = vmatpush3.msra.mxu0 %v2158_v13 }
 0x2c9   : > { %6091 = vmatprep.subr.mxu0 %v2156_v60 }
 0x2ca   : > { %6092 = vmatpush3.msra.mxu0 %v2156_v60 }
 0x2cb   : > { %6093 = vmatprep.subr.mxu0 %v2154_v32 }
 0x2cc   : > { %6094 = vmatpush3.msra.mxu0 %v2154_v32 }
 0x2cd   : > { %6095 = vmatprep.subr.mxu0 %v2152_v2 }
 0x2ce   : > { %6096 = vmatpush3.msra.mxu0 %v2152_v2 }
 0x2cf   : > { %6097 = vmatprep.subr.mxu0 %v2150_v40  ;;  %v5942_v29 = vpop.f32.mrf.mxu0 }
 0x2d0   : > { %6098 = vmatpush3.msra.mxu0 %v2150_v40  ;;  %v7850_v62 = vadd.f32 %v5942_v29, %v7832_v11 }
 0x2d1   : > { %6099 = vmatprep.subr.mxu0 %v2148_v8  ;;  %v1185_v61 = vpop.f32.mrf.mxu0 }
 0x2d2   : > { %v7847_v31 = vadd.f32 %v7832_v11, %v1185_v61  ;;  %6100 = vmatpush3.msra.mxu0 %v2148_v8 }
 0x2d3   : > { %6101 = vmatprep.subr.mxu0 %v2146_v57  ;;  %v5945_v34 = vpop.f32.mrf.mxu0 }
 0x2d4   : > { %6102 = vmatpush3.msra.mxu0 %v2146_v57  ;;  %6054 = vmatprep.mubr.msk.f32.mxu1 %vm1475_vm1, %v7847_v31  ;;  %v7862_v3 = vadd.f32 %v5945_v34, %v7832_v11 }
 0x2d5   : > { %6103 = vmatprep.subr.mxu0 %v7823_v36  ;;  %v1195_v28 = vpop.f32.mrf.mxu0  ;;  %6055 = vmatmul.mubr.msk.f32.gmra.mxu1 %vm1475_vm1, %v7850_v62 }
 0x2d6   : > { %v7858_v55 = vadd.f32 %v7832_v11, %v1195_v28  ;;  %6104 = vmatpush3.msra.mxu0 %v7823_v36 }
 0x2d7   : > { %6105 = vmatprep.subr.mxu0 %v7821_v18  ;;  %v5948_v42 = vpop.f32.mrf.mxu0 }
 0x2d8   : > { %6106 = vmatpush3.msra.mxu0 %v7821_v18  ;;  %6057 = vmatprep.mubr.msk.f32.mxu1 %vm1475_vm1, %v7858_v55  ;;  %v7878_v58 = vadd.f32 %v5948_v42, %v7832_v11  ;;  %v7908_v18 = vadd.f32 %v7832_v11, %v7605_v63 }
 0x2d9   : > { %6131 = vmatprep.subr.msk.mxu0 %vm1475_vm1, %v7865_v9  ;;  %v1205_v12 = vpop.f32.mrf.mxu0  ;;  %6058 = vmatmul.mubr.msk.f32.gmra.mxu1 %vm1475_vm1, %v7862_v3 }
 0x2da   : > { %v7875_v51 = vadd.f32 %v7832_v11, %v1205_v12  ;;  %9670 = vst [vmem:[#allocation21_spill] sm:$0xff] %v7908_v18 }
 0x2db   : > { %v5997_v63 = vpop.f32.mrf.mxu0 }
 0x2dc   : > { %6060 = vmatprep.mubr.msk.f32.mxu1 %vm1475_vm1, %v7875_v51  ;;  %vm1670_vm2 = vcmp.ge.f32.partialorder %v5997_v63, -0.20029354 }
 0x2dd   : > { %6061 = vmatmul.mubr.msk.f32.gmra.mxu1 %vm1475_vm1, %v7878_v58  ;;  %v1590_v44 = vpop.f32.mrf.mxu0  ;;  %v7938_v57 = vsel %vm1670_vm2, %v7935_v35, -1e+30 }
 0x2de   : > { %6063 = vmatprep.mubr.msk.f32.mxu1 %vm1475_vm1, %v7882_v43  ;;  %vm1669_vm3 = vcmp.ge.f32.partialorder %v1590_v44, -0.20029354  ;;  %9674 = vst [vmem:[#allocation25_spill] sm:$0xff] %v7938_v57 }
 0x2df   : > { %v6000_v36 = vpop.f32.mrf.mxu0  ;;  %v7941_v25 = vsel %vm1669_vm3, %v7935_v35, -1e+30 }
 0x2e0   : > { %9675 = vst [vmem:[#allocation26_spill] sm:$0xff] %v7941_v25  ;;  %vm1672_vm4 = vcmp.ge.f32.partialorder %v6000_v36, -0.20029354 }
 0x2e1   : > { %6064 = vmatmul.mubr.msk.f32.gmra.mxu1 %vm1475_vm1, %v7892_v54  ;;  %v1600_v32 = vpop.f32.mrf.mxu0  ;;  %v7952_v14 = vsel %vm1672_vm4, %v7935_v35, -1e+30 }
 0x2e2   : > { %6066 = vmatprep.mubr.msk.f32.mxu1 %vm1475_vm1, %v7896_v15  ;;  %9676 = vst [vmem:[#allocation27_spill] sm:$0xff] %v7952_v14  ;;  %vm1671_vm5 = vcmp.ge.f32.partialorder %v1600_v32, -0.20029354 }
 0x2e3   : > { %v6003_v13 = vpop.f32.mrf.mxu0  ;;  %v7958_v42 = vsel %vm1671_vm5, %v7935_v35, -1e+30 }
 0x2e4   : > { %vm1674_vm6 = vcmp.ge.f32.partialorder %v6003_v13, -0.20029354  ;;  %9677 = vst [vmem:[#allocation28_spill] sm:$0xff] %v7958_v42 }
 0x2e5   : > { %6067 = vmatmul.mubr.msk.f32.gmra.mxu1 %vm1475_vm1, %v7904_v52  ;;  %v1610_v38 = vpop.f32.mrf.mxu0  ;;  %v7961_v12 = vsel %vm1674_vm6, %v7935_v35, -1e+30 }
 0x2e6   : > { %6069 = vmatprep.mubr.msk.f32.mxu1 %vm1475_vm1, %v7908_v18  ;;  %9678 = vst [vmem:[#allocation29_spill] sm:$0xff] %v7961_v12  ;;  %vm1673_vm7 = vcmp.ge.f32.partialorder %v1610_v38, -0.20029354 }
 0x2e7   : > { %v6006_v23 = vpop.f32.mrf.mxu0 }
 0x2e8   : > { %vm1676_vm8 = vcmp.ge.f32.partialorder %v6006_v23, -0.20029354 }
 0x2e9   : > { %6070 = vmatmul.mubr.msk.f32.gmra.mxu1 %vm1475_vm1, %v7916_v53  ;;  %v1620_v7 = vpop.f32.mrf.mxu0  ;;  %v7975_v13 = vsel %vm1676_vm8, %v7935_v35, -1e+30 }
 0x2ea   : > { %6072 = vmatprep.mubr.msk.f32.mxu1 %vm1475_vm1, %v7920_v16  ;;  %vm1675_vm9 = vcmp.ge.f32.partialorder %v1620_v7, -0.20029354  ;;  %9680 = vst [vmem:[#allocation31_spill] sm:$0xff] %v7975_v13 }
 0x2eb   : > { %v6009_v50 = vpop.f32.mrf.mxu0 }
 0x2ec   : > { %vm1678_vm10 = vcmp.ge.f32.partialorder %v6009_v50, -0.20029354 }
 0x2ed   : > { %6073 = vmatmul.mubr.msk.f32.gmra.mxu1 %vm1475_vm1, %v7928_v48  ;;  %v1630_v11 = vpop.f32.mrf.mxu0 }
 0x2ee   : > { %vm1677_vm11 = vcmp.ge.f32.partialorder %v1630_v11, -0.20029354 }
 0x2ef   : > { %v6012_v17 = vpop.f32.mrf.mxu0 }
 0x2f0   : > { %vm1680_vm12 = vcmp.ge.f32.partialorder %v6012_v17, -0.20029354 }
 0x2f1   : > { %v1640_v44 = vpop.f32.mrf.mxu0 }
 0x2f2   : > { %vm1679_vm13 = vcmp.ge.f32.partialorder %v1640_v44, -0.20029354 }
 0x379   : > { %v6053_v8 = vpop.f32.mrf.mxu1 }
 0x37a   : > { %v1950_v40 = vmul.f32 0.35355338, %v6053_v8 }
 0x37b   : > { %v1870_v2 = vpop.f32.mrf.mxu1 }
 0x37c   : > { %v1949_v60 = vmul.f32 0.35355338, %v1870_v2  ;;  %v7944_v33 = vadd.f32 %v1950_v40, %v7938_v57 }
 0x37e   : > { %1983 = vmax.xlane.f32.xlu1 %v7944_v33  ;;  %v7948_v59 = vadd.f32 %v1949_v60, %v7941_v25  ;;  %v7972_v60 = vsel %vm1673_vm7, %v7935_v35, -1e+30 }
 0x37f   : > { %9679 = vst [vmem:[#allocation30_spill] sm:$0xff] %v7972_v60 }
 0x380   : > { %1981 = vmax.xlane.f32.xlu0 %v7948_v59 }
 0x395   : > { %v6056_v47 = vpop.f32.mrf.mxu1 }
 0x396   : > { %v1952_v29 = vmul.f32 0.35355338, %v6056_v47  ;;  %v6015_v47 = vpop.f32.mrf.mxu0 }
 0x397   : > { %v1880_v61 = vpop.f32.mrf.mxu1  ;;  %vm1682_vm14 = vcmp.ge.f32.partialorder %v6015_v47, -0.20029354 }
 0x398   : > { %v1951_v34 = vmul.f32 0.35355338, %v1880_v61  ;;  %v7955_v28 = vadd.f32 %v1952_v29, %v7952_v14  ;;  %v7982_v61 = vsel %vm1675_vm9, %v7935_v35, -1e+30  ;;  %v8017_v44 = vsel %vm1682_vm14, %v7935_v35, -1e+30 }
 0x399   : > { %v6059_v63 = vpop.f32.mrf.mxu1  ;;  %9681 = vst [vmem:[#allocation32_spill] sm:$0xff] %v7982_v61  ;;  %9686 = vst [vmem:[#allocation37_spill] sm:$0xff] %v8017_v44 }
 0x39a   : > { %v1954_v36 = vmul.f32 0.35355338, %v6059_v63  ;;  %1987 = vmax.xlane.f32.xlu1 %v7955_v28  ;;  %v7965_v8 = vadd.f32 %v1951_v34, %v7958_v42 }
 0x39b   : > { %v1890_v40 = vpop.f32.mrf.mxu1 }
 0x39c   : > { %v1953_v2 = vmul.f32 0.35355338, %v1890_v40  ;;  %1985 = vmax.xlane.f32.xlu0 %v7965_v8  ;;  %v7969_v32 = vadd.f32 %v1954_v36, %v7961_v12  ;;  %v7989_v36 = vsel %vm1678_vm10, %v7935_v35, -1e+30 }
 0x39d   : > { %v6062_v38 = vpop.f32.mrf.mxu1  ;;  %9682 = vst [vmem:[#allocation33_spill] sm:$0xff] %v7989_v36 }
 0x39e   : > { %v1956_v29 = vmul.f32 0.35355338, %v6062_v38  ;;  %1991 = vmax.xlane.f32.xlu1 %v7969_v32  ;;  %v7979_v23 = vadd.f32 %v1953_v2, %v7972_v60  ;;  %v1650_v38 = vpop.f32.mrf.mxu0  ;;  %v7996_v2 = vsel %vm1677_vm11, %v7935_v35, -1e+30 }
 0x39f   : > { %v1900_v34 = vpop.f32.mrf.mxu1  ;;  %9683 = vst [vmem:[#allocation34_spill] sm:$0xff] %v7996_v2  ;;  %vm1681_vm15 = vcmp.ge.f32.partialorder %v1650_v38, -0.20029354 }
 0x3a0   : > { %v1955_v7 = vmul.f32 0.35355338, %v1900_v34  ;;  %1989 = vmax.xlane.f32.xlu0 %v7979_v23  ;;  %v7986_v63 = vadd.f32 %v1956_v29, %v7975_v13  ;;  %v8003_v29 = vsel %vm1680_vm12, %v7935_v35, -1e+30  ;;  %v6018_v13 = vpop.f32.mrf.mxu0  ;;  %v8024_v47 = vsel %vm1681_vm15, %v7935_v35, -1e+30 }
 0x3a1   : > { %v6065_v40 = vpop.f32.mrf.mxu1  ;;  %9684 = vst [vmem:[#allocation35_spill] sm:$0xff] %v8003_v29  ;;  %vm1684_vm2 = vcmp.ge.f32.partialorder %v6018_v13, -0.20029354  ;;  %9687 = vst [vmem:[#allocation38_spill] sm:$0xff] %v8024_v47 }
 0x3a2   : > { %v1958_v12 = vmul.f32 0.35355338, %v6065_v40  ;;  %1995 = vmax.xlane.f32.xlu1 %v7986_v63  ;;  %v7993_v50 = vadd.f32 %v1955_v7, %v7982_v61  ;;  %v8010_v7 = vsel %vm1679_vm13, %v7935_v35, -1e+30 }
 0x3a3   : > { %v1910_v34 = vpop.f32.mrf.mxu1  ;;  %9685 = vst [vmem:[#allocation36_spill] sm:$0xff] %v8010_v7 }
 0x3a4   : > { %v1957_v60 = vmul.f32 0.35355338, %v1910_v34  ;;  %1993 = vmax.xlane.f32.xlu0 %v7993_v50  ;;  %v8000_v11 = vadd.f32 %v1958_v12, %v7989_v36  ;;  %v1660_v36 = vpop.f32.mrf.mxu0 }
 0x3a5   : > { %v6068_v40 = vpop.f32.mrf.mxu1  ;;  %vm1683_vm3 = vcmp.ge.f32.partialorder %v1660_v36, -0.20029354 }
 0x3a6   : > { %v1960_v42 = vmul.f32 0.35355338, %v6068_v40  ;;  %1999 = vmax.xlane.f32.xlu1 %v8000_v11  ;;  %v8007_v17 = vadd.f32 %v1957_v60, %v7996_v2 }
 0x3a7   : > { %v1920_v34 = vpop.f32.mrf.mxu1 }
 0x3a8   : > { %v1959_v61 = vmul.f32 0.35355338, %v1920_v34  ;;  %1997 = vmax.xlane.f32.xlu0 %v8007_v17  ;;  %v8014_v12 = vadd.f32 %v1960_v42, %v8003_v29  ;;  %v8031_v29 = vsel %vm1684_vm2, %v7935_v35, -1e+30 }
 0x3a9   : > { %v6071_v40 = vpop.f32.mrf.mxu1  ;;  %9688 = vst [vmem:[#allocation39_spill] sm:$0xff] %v8031_v29 }
 0x3aa   : > { %v1962_v14 = vmul.f32 0.35355338, %v6071_v40  ;;  %2003 = vmax.xlane.f32.xlu1 %v8014_v12  ;;  %v8021_v60 = vadd.f32 %v1959_v61, %v8010_v7  ;;  %v8038_v61 = vsel %vm1683_vm3, %v7935_v35, -1e+30  ;;  %v8061_v35 = vpop.permute.xlu1 %2395 }
 0x3ab   : > { %v1930_v34 = vpop.f32.mrf.mxu1  ;;  %9689 = vst [vmem:[#allocation40_spill] sm:$0xff] %v8038_v61 }
 0x3ac   : > { %v8027_v42 = vadd.f32 %v1962_v14, %v8017_v44  ;;  %v1961_v38 = vmul.f32 0.35355338, %v1930_v34  ;;  %2001 = vmax.xlane.f32.xlu0 %v8021_v60 }
 0x3ad   : > { %v6074_v40 = vpop.f32.mrf.mxu1 }
 0x3ae   : > { %v1964_v2 = vmul.f32 0.35355338, %v6074_v40  ;;  %2007 = vmax.xlane.f32.xlu1 %v8027_v42  ;;  %v8035_v13 = vadd.f32 %v1961_v38, %v8024_v47 }
 0x3af   : > { %v1940_v7 = vpop.f32.mrf.mxu1 }
 0x3b0   : > { %v8041_v14 = vadd.f32 %v1964_v2, %v8031_v29  ;;  %v1963_v34 = vmul.f32 0.35355338, %v1940_v7  ;;  %2005 = vmax.xlane.f32.xlu0 %v8035_v13 }
 0x3b2   : > { %v8045_v36 = vadd.f32 %v1963_v34, %v8038_v61  ;;  %2011 = vmax.xlane.f32.xlu1 %v8041_v14 }
 0x3b4   : > { %2009 = vmax.xlane.f32.xlu0 %v8045_v36 }
 0x3c3   : > { %2385 = vrot.lane.b32.xlu1 %v7648_v10, %s6971_s22 }
 0x3c7   : > { %2381 = vrot.lane.b32.xlu1 %v7640_v56, %s6971_s22 }
 0x3ca   : > { %2387 = vrot.lane.b32.xlu0 %v7667_v49, %s6971_s22 }
 0x3cb   : > { %2379 = vrot.lane.b32.xlu1 %v7642_v46, %s6971_s22 }
 0x3cf   : > { %2377 = vrot.lane.b32.xlu1 %v7630_v6, %s6971_s22 }
 0x3d3   : > { %2375 = vrot.lane.b32.xlu1 %v7634_v39, %s6971_s22 }
 0x407   : > { %v1984_v2 = vpop.xlane.xlu1 %1983 }
 0x408   : > { %v2014_v7 = vsub.f32 %v7944_v33, %v1984_v2 }
 0x409   : > { %v1982_v38 = vpop.xlane.xlu0 %1981 }
 0x40a   : > { %v2031_v40 = vmul.f32 1.442695, %v2014_v7  ;;  %v2013_v34 = vsub.f32 %v7948_v59, %v1982_v38 }
 0x40c   : > { %6674 = vpow2.f32 %v2031_v40  ;;  %v2029_v61 = vmul.f32 1.442695, %v2013_v34 }
 0x40e   : > { %6676 = vpow2.f32 %v2029_v61 }
 0x419   : > { %v8065_v29 = vpop.eup %6674 }
 0x41a   : > { %2063 = vadd.xlane.f32.xlu0 %v8065_v29 }
 0x41b   : > { %v8068_v47 = vpop.eup %6676 }
 0x41c   : > { %2061 = vadd.xlane.f32.xlu1 %v8068_v47 }
 0x423   : > { %v1988_v44 = vpop.xlane.xlu1 %1987 }
 0x424   : > { %v2016_v25 = vsub.f32 %v7955_v28, %v1988_v44 }
 0x425   : > { %v1986_v57 = vpop.xlane.xlu0 %1985 }
 0x426   : > { %v2035_v33 = vmul.f32 1.442695, %v2016_v25 }
 0x427   : > { %v1992_v2 = vpop.xlane.xlu1 %1991 }
 0x428   : > { %6678 = vpow2.f32 %v2035_v33  ;;  %v2018_v59 = vsub.f32 %v7969_v32, %v1992_v2 }
 0x429   : > { %v1990_v7 = vpop.xlane.xlu0 %1989 }
 0x42a   : > { %v2039_v38 = vmul.f32 1.442695, %v2018_v59  ;;  %v2017_v61 = vsub.f32 %v7979_v23, %v1990_v7 }
 0x42b   : > { %v1996_v40 = vpop.xlane.xlu1 %1995 }
 0x42c   : > { %6680 = vpow2.f32 %v2039_v38  ;;  %v2037_v34 = vmul.f32 1.442695, %v2017_v61  ;;  %v2020_v6 = vsub.f32 %v7986_v63, %v1996_v40 }
 0x42d   : > { %v1994_v56 = vpop.xlane.xlu0 %1993 }
 0x42e   : > { %6682 = vpow2.f32 %v2037_v34  ;;  %v2043_v27 = vmul.f32 1.442695, %v2020_v6  ;;  %v2019_v61 = vsub.f32 %v7993_v50, %v1994_v56 }
 0x42f   : > { %v2000_v10 = vpop.xlane.xlu1 %1999 }
 0x430   : > { %v2022_v28 = vsub.f32 %v8000_v11, %v2000_v10  ;;  %2383 = vrot.lane.b32.xlu0 %v7654_v24, %s6971_s22  ;;  %6684 = vpow2.f32 %v2043_v27  ;;  %v2015_v10 = vsub.f32 %v7965_v8, %v1986_v57  ;;  %v2041_v57 = vmul.f32 1.442695, %v2019_v61 }
 0x431   : > { %v1998_v25 = vpop.xlane.xlu0 %1997 }
 0x432   : > { %v2047_v32 = vmul.f32 1.442695, %v2022_v28  ;;  %v2021_v44 = vsub.f32 %v8007_v17, %v1998_v25  ;;  %v2033_v38 = vmul.f32 1.442695, %v2015_v10 }
 0x433   : > { %v2004_v59 = vpop.xlane.xlu1 %2003 }
 0x434   : > { %6686 = vpow2.f32 %v2047_v32  ;;  %v2045_v63 = vmul.f32 1.442695, %v2021_v44  ;;  %v2024_v8 = vsub.f32 %v8014_v12, %v2004_v59 }
 0x435   : > { %v8079_v23 = vpop.eup %6678  ;;  %v2002_v33 = vpop.xlane.xlu0 %2001 }
 0x436   : > { %2067 = vadd.xlane.f32.xlu1 %v8079_v23  ;;  %v2023_v2 = vsub.f32 %v8021_v60, %v2002_v33  ;;  %6688 = vpow2.f32 %v2045_v63  ;;  %v2051_v28 = vmul.f32 1.442695, %v2024_v8 }
 0x437   : > { %v2008_v60 = vpop.xlane.xlu1 %2007 }
 0x438   : > { %v2049_v27 = vmul.f32 1.442695, %v2023_v2  ;;  %v2026_v56 = vsub.f32 %v8027_v42, %v2008_v60 }
 0x439   : > { %v8083_v6 = vpop.eup %6680  ;;  %v2006_v11 = vpop.xlane.xlu0 %2005 }
 0x43a   : > { %2071 = vadd.xlane.f32.xlu1 %v8083_v6  ;;  %v2025_v17 = vsub.f32 %v8035_v13, %v2006_v11  ;;  %6690 = vpow2.f32 %v2049_v27  ;;  %v2055_v32 = vmul.f32 1.442695, %v2026_v56 }
 0x43b   : > { %v8088_v7 = vpop.eup %6682  ;;  %6692 = vpow2.f32 %v2033_v38  ;;  %v2012_v50 = vpop.xlane.xlu1 %2011 }
 0x43c   : > { %v2053_v40 = vmul.f32 1.442695, %v2025_v17  ;;  %v2028_v44 = vsub.f32 %v8041_v14, %v2012_v50 }
 0x43d   : > { %v8092_v34 = vpop.eup %6684  ;;  %v2010_v59 = vpop.xlane.xlu0 %2009 }
 0x43e   : > { %2069 = vadd.xlane.f32.xlu1 %v8088_v7  ;;  %6694 = vpow2.f32 %v2053_v40  ;;  %v2059_v33 = vmul.f32 1.442695, %v2028_v44  ;;  %v2027_v27 = vsub.f32 %v8045_v36, %v2010_v59  ;;  %v9691_v59 = vld [vmem:[#allocation10_spill] sm:$0xff] }
 0x43f   : > { %6696 = vpow2.f32 %v2041_v57  ;;  %v2386_v38 = vpop.permute.xlu1 %2385 }
 0x440   : > { %6698 = vpow2.f32 %v2051_v28  ;;  %v2057_v17 = vmul.f32 1.442695, %v2027_v27  ;;  %v9692_v27 = vld [vmem:[#allocation8_spill] sm:$0xff] }
 0x441   : > { %v8096_v13 = vpop.eup %6686  ;;  %6700 = vpow2.f32 %v2055_v32  ;;  %v2388_v57 = vpop.permute.xlu0 %2387 }
 0x442   : > { %2075 = vadd.xlane.f32.xlu1 %v8092_v34  ;;  %6702 = vpow2.f32 %v2059_v33 }
 0x443   : > { %v8100_v25 = vpop.eup %6688  ;;  %6704 = vpow2.f32 %v2057_v17  ;;  %v2382_v61 = vpop.permute.xlu1 %2381  ;;  %v9693_v17 = vld [vmem:[#allocation6_spill] sm:$0xff] }
 0x446   : > { %2079 = vadd.xlane.f32.xlu1 %v8096_v13 }
 0x447   : > { %v8104_v12 = vpop.eup %6690  ;;  %v8153_v60 = vpop.permute.xlu1 %2379 }
 0x448   : > { %v8106_v63 = vpop.eup %6692 }
 0x44a   : > { %2077 = vadd.xlane.f32.xlu1 %v8100_v25 }
 0x44b   : > { %v8110_v42 = vpop.eup %6694  ;;  %v8159_v40 = vpop.permute.xlu1 %2377 }
 0x44c   : > { %v8112_v2 = vpop.eup %6696 }
 0x44d   : > { %v8116_v14 = vpop.eup %6698 }
 0x44e   : > { %2081 = vadd.xlane.f32.xlu1 %v8104_v12  ;;  %v8119_v10 = vpop.eup %6700 }
 0x44f   : > { %2065 = vadd.xlane.f32.xlu0 %v8106_v63  ;;  %v8122_v11 = vpop.eup %6702  ;;  %v8163_v8 = vpop.permute.xlu1 %2375 }
 0x450   : > { %v8150_v36 = vpop.eup %6704 }
 0x452   : > { %2085 = vadd.xlane.f32.xlu1 %v8110_v42 }
 0x453   : > { %2073 = vadd.xlane.f32.xlu0 %v8112_v2 }
 0x457   : > { %2083 = vadd.xlane.f32.xlu0 %v8116_v14 }
 0x45b   : > { %2087 = vadd.xlane.f32.xlu0 %v8119_v10 }
 0x45f   : > { %2091 = vadd.xlane.f32.xlu0 %v8122_v11 }
 0x463   : > { %2371 = vrot.lane.b32.xlu1 %v7626_v20, %s6971_s22 }
 0x467   : > { %2369 = vrot.lane.b32.xlu1 %v7616_v0, %s6971_s22 }
 0x46b   : > { %2367 = vrot.lane.b32.xlu1 %v7618_v1, %s6971_s22 }
 0x46f   : > { %2335 = vrot.lane.b32.xlu1 %v7837_v37, %s6971_s22 }
 0x475   : > { %2373 = vrot.lane.b32.xlu0 %v7622_v41, %s6971_s22 }
 0x479   : > { %2341 = vrot.lane.b32.xlu0 %v7850_v62, %s6971_s22 }
 0x47d   : > { %2345 = vrot.lane.b32.xlu0 %v7862_v3, %s6971_s22 }
 0x481   : > { %2349 = vrot.lane.b32.xlu0 %v7878_v58, %s6971_s22 }
 0x485   : > { %2353 = vrot.lane.b32.xlu0 %v7892_v54, %s6971_s22 }
 0x489   : > { %2357 = vrot.lane.b32.xlu0 %v7904_v52, %s6971_s22 }
 0x48d   : > { %2361 = vrot.lane.b32.xlu0 %v7916_v53, %s6971_s22 }
 0x491   : > { %2365 = vrot.lane.b32.xlu0 %v7928_v48, %s6971_s22 }
 0x493   : > { %2089 = vadd.xlane.f32.xlu1 %v8150_v36 }
 0x495   : > { %2830 = vrot.lane.b32.xlu0 %v7677_v21, %s6972_s24 }
 0x499   : > { %2826 = vrot.lane.b32.xlu0 %v7675_v26, %s6972_s24 }
 0x49d   : > { %2820 = vrot.lane.b32.xlu0 %v7667_v49, %s6972_s24 }
 0x4a1   : > { %2816 = vrot.lane.b32.xlu0 %v7654_v24, %s6972_s24 }
 0x4a3   : > { %v2064_v28 = vpop.xlane.xlu0 %2063 }
 0x4a4   : > { %2337 = vrot.lane.b32.xlu1 %v7840_v22, %s6971_s22  ;;  %6706 = vrcp.f32 %v2064_v28 }
 0x4a5   : > { %v2062_v56 = vpop.xlane.xlu1 %2061  ;;  %2812 = vrot.lane.b32.xlu0 %v7642_v46, %s6972_s24 }
 0x4a6   : > { %6708 = vrcp.f32 %v2062_v56 }
 0x4a8   : > { %2339 = vrot.lane.b32.xlu1 %v7847_v31, %s6971_s22 }
 0x4a9   : > { %2808 = vrot.lane.b32.xlu0 %v7634_v39, %s6972_s24 }
 0x4ac   : > { %2343 = vrot.lane.b32.xlu1 %v7858_v55, %s6971_s22 }
 0x4b0   : > { %2347 = vrot.lane.b32.xlu1 %v7875_v51, %s6971_s22 }
 0x4b1   : > { %v6707_v50 = vpop.eup %6706 }
 0x4b2   : > { %v2126_v33 = vmul.f32 %v6707_v50, %v8065_v29 }
 0x4b3   : > { %v6709_v32 = vpop.eup %6708 }
 0x4b4   : > { %2351 = vrot.lane.b32.xlu1 %v7882_v43, %s6971_s22  ;;  %v2125_v44 = vmul.f32 %v6709_v32, %v8068_v47 }
 0x4b6   : > { %6107 = vmatprep.mubr.f32.mxu0 %v2125_v44 }
 0x4b7   : > { %6108 = vmatmul.mubr.f32.vlgmr.msra.gmra.mxu0 %v2126_v33 }
 0x4b8   : > { %6132 = vmatpush3.xpose.msk.msra.mxu0 %vm1475_vm1, %v7865_v9  ;;  %2355 = vrot.lane.b32.xlu1 %v7896_v15, %s6971_s22 }
 0x4b9   : > { %6133 = vmatprep.subr.msk.mxu0 %vm1475_vm1, %v8061_v35 }
 0x4bc   : > { %6134 = vmatpush3.xpose.msk.msra.mxu0 %vm1475_vm1, %v8061_v35  ;;  %2359 = vrot.lane.b32.xlu1 %v7908_v18, %s6971_s22  ;;  %v2384_v35 = vpop.permute.xlu0 %2383 }
 0x4bd   : > { %6135 = vmatprep.subr.msk.mxu0 %vm1475_vm1, %v7827_v5 }
 0x4bf   : > { %v2068_v29 = vpop.xlane.xlu1 %2067 }
 0x4c0   : > { %6136 = vmatpush3.xpose.msk.msra.mxu0 %vm1475_vm1, %v7827_v5  ;;  %2363 = vrot.lane.b32.xlu1 %v7920_v16, %s6971_s22  ;;  %v9690_v5 = vld [vmem:[#allocation11_spill] sm:$0xff]  ;;  %6710 = vrcp.f32 %v2068_v29 }
 0x4c1   : > { %6137 = vmatprep.subr.msk.mxu0 %vm1475_vm1, %v7834_v19 }
 0x4c3   : > { %v2072_v9 = vpop.xlane.xlu1 %2071 }
 0x4c4   : > { %6138 = vmatpush3.xpose.msk.msra.mxu0 %vm1475_vm1, %v7834_v19  ;;  %2828 = vrot.lane.b32.xlu1 %v7683_v45, %s6972_s24 }
 0x4c5   : > { %6139 = vmatprep.subr.msk.mxu0 %vm1475_vm1, %v7825_v4 }
 0x4c7   : > { %v2070_v47 = vpop.xlane.xlu1 %2069 }
 0x4c8   : > { %6140 = vmatpush3.xpose.msk.msra.mxu0 %vm1475_vm1, %v7825_v4  ;;  %2824 = vrot.lane.b32.xlu1 %v7681_v30, %s6972_s24  ;;  %6712 = vrcp.f32 %v2070_v47 }
 0x4c9   : > { %6141 = vmatprep.subr.msk.mxu0 %vm1475_vm1, %v2388_v57 }
 0x4cb   : > { %v2076_v19 = vpop.xlane.xlu1 %2075 }
 0x4cc   : > { %6142 = vmatpush3.xpose.msk.msra.mxu0 %vm1475_vm1, %v2388_v57  ;;  %2822 = vrot.lane.b32.xlu1 %v9690_v5, %s6972_s24 }
 0x4cd   : > { %6143 = vmatprep.subr.msk.mxu0 %vm1475_vm1, %v2386_v38  ;;  %v6711_v50 = vpop.eup %6710 }
 0x4cf   : > { %v2080_v4 = vpop.xlane.xlu1 %2079 }
 0x4d0   : > { %6144 = vmatpush3.xpose.msk.msra.mxu0 %vm1475_vm1, %v2386_v38  ;;  %2818 = vrot.lane.b32.xlu1 %v9691_v59, %s6972_s24 }
 0x4d1   : > { %6145 = vmatprep.subr.msk.mxu0 %vm1475_vm1, %v2384_v35 }
 0x4d3   : > { %v2078_v57 = vpop.xlane.xlu1 %2077 }
 0x4d4   : > { %6146 = vmatpush3.xpose.msk.msra.mxu0 %vm1475_vm1, %v2384_v35  ;;  %2814 = vrot.lane.b32.xlu1 %v9692_v27, %s6972_s24 }
 0x4d5   : > { %6147 = vmatprep.subr.msk.mxu0 %vm1475_vm1, %v2382_v61  ;;  %v6713_v32 = vpop.eup %6712 }
 0x4d7   : > { %v2082_v56 = vpop.xlane.xlu1 %2081 }
 0x4d8   : > { %6148 = vmatpush3.xpose.msk.msra.mxu0 %vm1475_vm1, %v2382_v61  ;;  %2810 = vrot.lane.b32.xlu1 %v9693_v17, %s6972_s24  ;;  %v2066_v38 = vpop.xlane.xlu0 %2065 }
 0x4d9   : > { %6149 = vmatprep.subr.msk.mxu0 %vm1475_vm1, %v8153_v60  ;;  %6714 = vrcp.f32 %v2066_v38 }
 0x4da   : > { %6716 = vrcp.f32 %v2072_v9 }
 0x4db   : > { %v2086_v44 = vpop.xlane.xlu1 %2085 }
 0x4dc   : > { %6150 = vmatpush3.xpose.msk.msra.mxu0 %vm1475_vm1, %v8153_v60  ;;  %v2074_v28 = vpop.xlane.xlu0 %2073 }
 0x4dd   : > { %6151 = vmatprep.subr.msk.mxu0 %vm1475_vm1, %v8159_v40  ;;  %6718 = vrcp.f32 %v2074_v28 }
 0x4de   : > { %6720 = vrcp.f32 %v2076_v19  ;;  %v2129_v19 = vmul.f32 %v6713_v32, %v8088_v7 }
 0x4df   : > { %6722 = vrcp.f32 %v2078_v57 }
 0x4e0   : > { %6152 = vmatpush3.xpose.msk.msra.mxu0 %vm1475_vm1, %v8159_v40  ;;  %v2084_v61 = vpop.xlane.xlu0 %2083  ;;  %6724 = vrcp.f32 %v2080_v4  ;;  %v2128_v40 = vmul.f32 %v6711_v50, %v8079_v23  ;;  %v2372_v4 = vpop.permute.xlu1 %2371 }
 0x4e1   : > { %6153 = vmatprep.subr.msk.mxu0 %vm1475_vm1, %v8163_v8  ;;  %6726 = vrcp.f32 %v2082_v56 }
 0x4e2   : > { %6728 = vrcp.f32 %v2084_v61 }
 0x4e3   : > { %6730 = vrcp.f32 %v2086_v44 }
 0x4e4   : > { %6154 = vmatpush3.xpose.msk.msra.mxu0 %vm1475_vm1, %v8163_v8  ;;  %v2088_v60 = vpop.xlane.xlu0 %2087  ;;  %v2370_v61 = vpop.permute.xlu1 %2369 }
 0x4e5   : > { %6732 = vrcp.f32 %v2088_v60 }
 0x4e6   : > { %v6715_v33 = vpop.eup %6714 }
 0x4e7   : > { %v2127_v29 = vmul.f32 %v6715_v33, %v8106_v63  ;;  %v6717_v47 = vpop.eup %6716 }
 0x4e8   : > { %v2092_v9 = vpop.xlane.xlu0 %2091  ;;  %v2130_v38 = vmul.f32 %v6717_v47, %v8083_v6 }
 0x4e9   : > { %6110 = vmatprep.mubr.f32.mxu0 %v2127_v29  ;;  %6734 = vrcp.f32 %v2092_v9 }
 0x4ea   : > { %v6719_v35 = vpop.eup %6718  ;;  %6111 = vmatmul.mubr.f32.gmra.mxu0 %v2128_v40 }
 0x4eb   : > { %6113 = vmatprep.mubr.f32.mxu0 %v2129_v19  ;;  %v6721_v57 = vpop.eup %6720  ;;  %v2131_v63 = vmul.f32 %v6719_v35, %v8112_v2 }
 0x4ec   : > { %v2374_v8 = vpop.permute.xlu0 %2373  ;;  %v6723_v28 = vpop.eup %6722  ;;  %v2132_v7 = vmul.f32 %v6721_v57, %v8092_v34 }
 0x4ed   : > { %6155 = vmatprep.subr.msk.mxu0 %vm1475_vm1, %v2374_v8  ;;  %v6725_v56 = vpop.eup %6724  ;;  %v2133_v50 = vmul.f32 %v6723_v28, %v8100_v25  ;;  %v2368_v34 = vpop.permute.xlu1 %2367 }
 0x4ee   : > { %6114 = vmatmul.mubr.f32.gmra.mxu0 %v2130_v38  ;;  %v6727_v6 = vpop.eup %6726  ;;  %v2134_v60 = vmul.f32 %v6725_v56, %v8096_v13  ;;  %v2334_v13 = vld [vmem:[%s9569_s9] sm:$0xff] }
 0x4ef   : > { %6156 = vmatpush3.xpose.msk.msra.mxu0 %vm1475_vm1, %v2374_v8  ;;  %6116 = vmatprep.mubr.f32.mxu0 %v2131_v63  ;;  %v6729_v32 = vpop.eup %6728  ;;  %v2135_v44 = vmul.f32 %v6727_v6, %v8104_v12 }
 0x4f0   : > { %6157 = vmatprep.subr.msk.mxu0 %vm1475_vm1, %v2372_v4  ;;  %v2342_v23 = vpop.permute.xlu0 %2341  ;;  %v6731_v33 = vpop.eup %6730  ;;  %v2136_v29 = vmul.f32 %v6729_v32, %v8116_v14 }
 0x4f1   : > { %v2137_v47 = vmul.f32 %v6731_v33, %v8110_v42  ;;  %v2336_v42 = vpop.permute.xlu1 %2335 }
 0x4f2   : > { %6117 = vmatmul.mubr.f32.gmra.mxu0 %v2132_v7  ;;  %v6733_v40 = vpop.eup %6732 }
 0x4f3   : > { %6158 = vmatpush3.xpose.msk.msra.mxu0 %vm1475_vm1, %v2372_v4  ;;  %6119 = vmatprep.mubr.f32.mxu0 %v2133_v50  ;;  %v2138_v19 = vmul.f32 %v6733_v40, %v8119_v10 }
 0x4f4   : > { %6159 = vmatprep.subr.msk.mxu0 %vm1475_vm1, %v2370_v61  ;;  %v2346_v2 = vpop.permute.xlu0 %2345 }
 0x4f6   : > { %6120 = vmatmul.mubr.f32.gmra.mxu0 %v2134_v60  ;;  %v6735_v7 = vpop.eup %6734 }
 0x4f7   : > { %6160 = vmatpush3.xpose.msk.msra.mxu0 %vm1475_vm1, %v2370_v61  ;;  %6122 = vmatprep.mubr.f32.mxu0 %v2135_v44  ;;  %v2140_v50 = vmul.f32 %v6735_v7, %v8122_v11 }
 0x4f8   : > { %6161 = vmatprep.subr.msk.mxu0 %vm1475_vm1, %v2368_v34  ;;  %v2350_v25 = vpop.permute.xlu0 %2349 }
 0x4fa   : > { %6123 = vmatmul.mubr.f32.gmra.mxu0 %v2136_v29 }
 0x4fb   : > { %6162 = vmatpush3.xpose.msk.msra.mxu0 %vm1475_vm1, %v2368_v34  ;;  %6125 = vmatprep.mubr.f32.mxu0 %v2137_v47 }
 0x4fc   : > { %v2354_v12 = vpop.permute.xlu0 %2353  ;;  %6269 = vmatprep.subr.mxu0 %v2334_v13 }
 0x4fe   : > { %6126 = vmatmul.mubr.f32.gmra.mxu0 %v2138_v19 }
 0x500   : > { %v2358_v35 = vpop.permute.xlu0 %2357 }
 0x504   : > { %v2362_v4 = vpop.permute.xlu0 %2361 }
 0x508   : > { %v2366_v8 = vpop.permute.xlu0 %2365 }
 0x50c   : > { %v2831_v14 = vpop.permute.xlu0 %2830 }
 0x50d   : > { %6187 = vmatprep.subr.mxu1 %v2831_v14 }
 0x50e   : > { %6188 = vmatpush3.msra.mxu1 %v2831_v14 }
 0x51c   : > { %v2090_v38 = vpop.xlane.xlu1 %2089 }
 0x51d   : > { %6736 = vrcp.f32 %v2090_v38 }
 0x520   : > { %v2338_v57 = vpop.permute.xlu1 %2337 }
 0x524   : > { %v2340_v63 = vpop.permute.xlu1 %2339 }
 0x528   : > { %v2344_v28 = vpop.permute.xlu1 %2343 }
 0x52a   : > { %v6737_v56 = vpop.eup %6736 }
 0x52b   : > { %v2139_v61 = vmul.f32 %v6737_v56, %v8150_v36  ;;  %v2827_v36 = vpop.permute.xlu0 %2826 }
 0x52c   : > { %v2348_v10 = vpop.permute.xlu1 %2347 }
 0x52d   : > { %6128 = vmatprep.mubr.f32.mxu0 %v2139_v61 }
 0x52e   : > { %6129 = vmatmul.mubr.f32.gmra.mxu0 %v2140_v50 }
 0x52f   : > { %6163 = vmatprep.mubr.msk.f32.mxu0 %vm1475_vm1, %v2336_v42 }
 0x530   : > { %v2352_v6 = vpop.permute.xlu1 %2351 }
 0x532   : > { %6164 = vmatmul.mubr.msk.f32.vlgmr.msra.gmra.mxu0 %vm1475_vm1, %v2338_v57 }
 0x533   : > { %6166 = vmatprep.mubr.msk.f32.mxu0 %vm1475_vm1, %v2340_v63  ;;  %6270 = vmatpush3.msra.mxu0 %v2334_v13 }
 0x534   : > { %v2356_v9 = vpop.permute.xlu1 %2355 }
 0x536   : > { %6167 = vmatmul.mubr.msk.f32.gmra.mxu0 %vm1475_vm1, %v2342_v23  ;;  %v2821_v23 = vpop.permute.xlu0 %2820 }
 0x537   : > { %6169 = vmatprep.mubr.msk.f32.mxu0 %vm1475_vm1, %v2344_v28 }
 0x538   : > { %v2360_v60 = vpop.permute.xlu1 %2359 }
 0x53a   : > { %6170 = vmatmul.mubr.msk.f32.gmra.mxu0 %vm1475_vm1, %v2346_v2  ;;  %v2817_v33 = vpop.permute.xlu0 %2816 }
 0x53b   : > { %6172 = vmatprep.mubr.msk.f32.mxu0 %vm1475_vm1, %v2348_v10 }
 0x53c   : > { %v2364_v11 = vpop.permute.xlu1 %2363 }
 0x53e   : > { %6173 = vmatmul.mubr.msk.f32.gmra.mxu0 %vm1475_vm1, %v2350_v25  ;;  %v2813_v25 = vpop.permute.xlu0 %2812 }
 0x53f   : > { %6175 = vmatprep.mubr.msk.f32.mxu0 %vm1475_vm1, %v2352_v6 }
 0x540   : > { %v2829_v32 = vpop.permute.xlu1 %2828 }
 0x541   : > { %6189 = vmatprep.subr.mxu1 %v2829_v32 }
 0x542   : > { %6176 = vmatmul.mubr.msk.f32.gmra.mxu0 %vm1475_vm1, %v2354_v12  ;;  %6190 = vmatpush3.msra.mxu1 %v2829_v32  ;;  %v2809_v47 = vpop.permute.xlu0 %2808 }
 0x543   : > { %6178 = vmatprep.mubr.msk.f32.mxu0 %vm1475_vm1, %v2356_v9  ;;  %6191 = vmatprep.subr.mxu1 %v2827_v36 }
 0x544   : > { %v2825_v44 = vpop.permute.xlu1 %2824  ;;  %6192 = vmatpush3.msra.mxu1 %v2827_v36 }
 0x545   : > { %6193 = vmatprep.subr.mxu1 %v2825_v44 }
 0x546   : > { %6179 = vmatmul.mubr.msk.f32.gmra.mxu0 %vm1475_vm1, %v2358_v35  ;;  %6194 = vmatpush3.msra.mxu1 %v2825_v44 }
 0x547   : > { %6181 = vmatprep.mubr.msk.f32.mxu0 %vm1475_vm1, %v2360_v60  ;;  %v9694_v60 = vld [vmem:[#allocation25_spill] sm:$0xff] }
 0x548   : > { %v2823_v2 = vpop.permute.xlu1 %2822 }
 0x549   : > { %6195 = vmatprep.subr.mxu1 %v2823_v2 }
 0x54a   : > { %6182 = vmatmul.mubr.msk.f32.gmra.mxu0 %vm1475_vm1, %v2362_v4  ;;  %6196 = vmatpush3.msra.mxu1 %v2823_v2 }
 0x54b   : > { %6184 = vmatprep.mubr.msk.f32.mxu0 %vm1475_vm1, %v2364_v11  ;;  %6197 = vmatprep.subr.mxu1 %v2821_v23 }
 0x54c   : > { %v2819_v34 = vpop.permute.xlu1 %2818  ;;  %6198 = vmatpush3.msra.mxu1 %v2821_v23  ;;  %v9695_v23 = vld [vmem:[#allocation26_spill] sm:$0xff] }
 0x54d   : > { %6199 = vmatprep.subr.mxu1 %v2819_v34 }
 0x54e   : > { %6185 = vmatmul.mubr.msk.f32.gmra.mxu0 %vm1475_vm1, %v2366_v8  ;;  %6200 = vmatpush3.msra.mxu1 %v2819_v34 }
 0x54f   : > { %6201 = vmatprep.subr.mxu1 %v2817_v33 }
 0x550   : > { %v2815_v29 = vpop.permute.xlu1 %2814  ;;  %6202 = vmatpush3.msra.mxu1 %v2817_v33 }
 0x551   : > { %6203 = vmatprep.subr.mxu1 %v2815_v29 }
 0x552   : > { %6204 = vmatpush3.msra.mxu1 %v2815_v29  ;;  %v9696_v29 = vld [vmem:[#allocation27_spill] sm:$0xff] }
 0x553   : > { %6205 = vmatprep.subr.mxu1 %v2813_v25 }
 0x554   : > { %v2811_v40 = vpop.permute.xlu1 %2810  ;;  %6206 = vmatpush3.msra.mxu1 %v2813_v25 }
 0x555   : > { %6207 = vmatprep.subr.mxu1 %v2811_v40 }
 0x556   : > { %6208 = vmatpush3.msra.mxu1 %v2811_v40 }
 0x557   : > { %6209 = vmatprep.subr.mxu1 %v2809_v47 }
 0x558   : > { %6210 = vmatpush3.msra.mxu1 %v2809_v47  ;;  %v9697_v47 = vld [vmem:[#allocation28_spill] sm:$0xff] }
 0x577   : > { %v6109_v13 = vpop.f32.mrf.mxu0 }
 0x579   : > { %v2255_v12 = vpop.f32.mrf.mxu0 }
 0x57a   : > { %6271 = vmatprep.mubr.msk.f32.mxu0 %vm1475_vm1, %v2255_v12 }
 0x57b   : > { %6272 = vmatmul.mubr.msk.f32.vlgmr.msra.gmra.mxu0 %vm1475_vm1, %v6109_v13 }
 0x5aa   : > { %v6112_v19 = vpop.f32.mrf.mxu0 }
 0x5ac   : > { %v2265_v35 = vpop.f32.mrf.mxu0 }
 0x5ad   : > { %6274 = vmatprep.mubr.msk.f32.mxu0 %vm1475_vm1, %v2265_v35 }
 0x5ae   : > { %v6115_v4 = vpop.f32.mrf.mxu0  ;;  %6275 = vmatmul.mubr.msk.f32.gmra.mxu0 %vm1475_vm1, %v6112_v19 }
 0x5b0   : > { %v2275_v8 = vpop.f32.mrf.mxu0 }
 0x5b1   : > { %6277 = vmatprep.mubr.msk.f32.mxu0 %vm1475_vm1, %v2275_v8  ;;  %v9698_v8 = vld [vmem:[#allocation29_spill] sm:$0xff] }
 0x5b2   : > { %v6118_v14 = vpop.f32.mrf.mxu0  ;;  %6278 = vmatmul.mubr.msk.f32.gmra.mxu0 %vm1475_vm1, %v6115_v4 }
 0x5b4   : > { %v2285_v42 = vpop.f32.mrf.mxu0 }
 0x5b5   : > { %6280 = vmatprep.mubr.msk.f32.mxu0 %vm1475_vm1, %v2285_v42  ;;  %v9699_v42 = vld [vmem:[#allocation30_spill] sm:$0xff] }
 0x5b6   : > { %v6121_v38 = vpop.f32.mrf.mxu0  ;;  %6281 = vmatmul.mubr.msk.f32.gmra.mxu0 %vm1475_vm1, %v6118_v14 }
 0x5b8   : > { %v2295_v57 = vpop.f32.mrf.mxu0 }
 0x5b9   : > { %6283 = vmatprep.mubr.msk.f32.mxu0 %vm1475_vm1, %v2295_v57 }
 0x5ba   : > { %v6124_v63 = vpop.f32.mrf.mxu0  ;;  %6284 = vmatmul.mubr.msk.f32.gmra.mxu0 %vm1475_vm1, %v6121_v38 }
 0x5bc   : > { %v2305_v28 = vpop.f32.mrf.mxu0 }
 0x5bd   : > { %6286 = vmatprep.mubr.msk.f32.mxu0 %vm1475_vm1, %v2305_v28 }
 0x5be   : > { %v6127_v7 = vpop.f32.mrf.mxu0  ;;  %6287 = vmatmul.mubr.msk.f32.gmra.mxu0 %vm1475_vm1, %v6124_v63 }
 0x5c0   : > { %v2315_v56 = vpop.f32.mrf.mxu0 }
 0x5c1   : > { %6289 = vmatprep.mubr.msk.f32.mxu0 %vm1475_vm1, %v2315_v56  ;;  %v9700_v56 = vld [vmem:[#allocation31_spill] sm:$0xff] }
 0x5c2   : > { %6290 = vmatmul.mubr.msk.f32.gmra.mxu0 %vm1475_vm1, %v6127_v7 }
 0x5ee   : > { %v6130_v61 = vpop.f32.mrf.mxu0 }
 0x5f0   : > { %v2325_v10 = vpop.f32.mrf.mxu0 }
 0x5f1   : > { %6292 = vmatprep.mubr.msk.f32.mxu0 %vm1475_vm1, %v2325_v10  ;;  %v9701_v10 = vld [vmem:[#allocation32_spill] sm:$0xff] }
 0x5f2   : > { %v6165_v50 = vpop.f32.mrf.mxu0  ;;  %6293 = vmatmul.mubr.msk.f32.gmra.mxu0 %vm1475_vm1, %v6130_v61 }
 0x5f3   : > { %v2609_v6 = vmul.f32 0.35355338, %v6165_v50 }
 0x5f4   : > { %v2529_v9 = vpop.f32.mrf.mxu0 }
 0x5f5   : > { %v8297_v11 = vadd.f32 %v2609_v6, %v9694_v60  ;;  %v2608_v36 = vmul.f32 0.35355338, %v2529_v9 }
 0x5f6   : > { %v6168_v32 = vpop.f32.mrf.mxu0 }
 0x5f7   : > { %v8300_v44 = vadd.f32 %v2608_v36, %v9695_v23  ;;  %v2611_v2 = vmul.f32 0.35355338, %v6168_v32  ;;  %2642 = vmax.xlane.f32.xlu0 %v8297_v11 }
 0x5f8   : > { %v2539_v33 = vpop.f32.mrf.mxu0 }
 0x5f9   : > { %v2610_v34 = vmul.f32 0.35355338, %v2539_v33  ;;  %2640 = vmax.xlane.f32.xlu1 %v8300_v44  ;;  %v8305_v40 = vadd.f32 %v2611_v2, %v9696_v29  ;;  %v9702_v2 = vld [vmem:[#allocation33_spill] sm:$0xff] }
 0x5fa   : > { %v6171_v25 = vpop.f32.mrf.mxu0 }
 0x5fb   : > { %v8308_v13 = vadd.f32 %v2610_v34, %v9697_v47  ;;  %v2613_v12 = vmul.f32 0.35355338, %v6171_v25  ;;  %v9703_v34 = vld [vmem:[#allocation34_spill] sm:$0xff] }
 0x5fc   : > { %v2549_v19 = vpop.f32.mrf.mxu0 }
 0x5fd   : > { %v2612_v35 = vmul.f32 0.35355338, %v2549_v19  ;;  %2646 = vmax.xlane.f32.xlu1 %v8305_v40  ;;  %2644 = vmax.xlane.f32.xlu0 %v8308_v13  ;;  %v8313_v14 = vadd.f32 %v2613_v12, %v9698_v8 }
 0x5fe   : > { %v6174_v4 = vpop.f32.mrf.mxu0 }
 0x5ff   : > { %v8316_v38 = vadd.f32 %v2612_v35, %v9699_v42  ;;  %v2615_v57 = vmul.f32 0.35355338, %v6174_v4 }
 0x600   : > { %v2559_v63 = vpop.f32.mrf.mxu0 }
 0x601   : > { %v2614_v28 = vmul.f32 0.35355338, %v2559_v63  ;;  %2650 = vmax.xlane.f32.xlu1 %v8313_v14  ;;  %2648 = vmax.xlane.f32.xlu0 %v8316_v38  ;;  %v8321_v61 = vadd.f32 %v2615_v57, %v9700_v56  ;;  %v9704_v57 = vld [vmem:[#allocation35_spill] sm:$0xff] }
 0x602   : > { %v6177_v7 = vpop.f32.mrf.mxu0 }
 0x603   : > { %v8324_v50 = vadd.f32 %v2614_v28, %v9701_v10  ;;  %v2617_v6 = vmul.f32 0.35355338, %v6177_v7  ;;  %v9705_v28 = vld [vmem:[#allocation36_spill] sm:$0xff] }
 0x604   : > { %v2569_v9 = vpop.f32.mrf.mxu0 }
 0x605   : > { %v2616_v36 = vmul.f32 0.35355338, %v2569_v9  ;;  %2654 = vmax.xlane.f32.xlu1 %v8321_v61  ;;  %2652 = vmax.xlane.f32.xlu0 %v8324_v50  ;;  %v8329_v33 = vadd.f32 %v2617_v6, %v9702_v2 }
 0x606   : > { %v6180_v32 = vpop.f32.mrf.mxu0 }
 0x607   : > { %v8332_v25 = vadd.f32 %v2616_v36, %v9703_v34  ;;  %v2619_v12 = vmul.f32 0.35355338, %v6180_v32  ;;  %v9706_v32 = vld [vmem:[#allocation37_spill] sm:$0xff]  ;;  %v9707_v34 = vld [vmem:[#allocation38_spill] sm:$0xff] }
 0x608   : > { %v2579_v19 = vpop.f32.mrf.mxu0 }
 0x609   : > { %v2618_v35 = vmul.f32 0.35355338, %v2579_v19  ;;  %2658 = vmax.xlane.f32.xlu1 %v8329_v33  ;;  %2656 = vmax.xlane.f32.xlu0 %v8332_v25  ;;  %v8337_v63 = vadd.f32 %v2619_v12, %v9704_v57 }
 0x60a   : > { %v6183_v4 = vpop.f32.mrf.mxu0 }
 0x60b   : > { %v8340_v7 = vadd.f32 %v2618_v35, %v9705_v28  ;;  %v2621_v9 = vmul.f32 0.35355338, %v6183_v4  ;;  %v9708_v35 = vld [vmem:[#allocation39_spill] sm:$0xff] }
 0x60c   : > { %v2589_v6 = vpop.f32.mrf.mxu0 }
 0x60d   : > { %v2620_v2 = vmul.f32 0.35355338, %v2589_v6  ;;  %2662 = vmax.xlane.f32.xlu1 %v8337_v63  ;;  %2660 = vmax.xlane.f32.xlu0 %v8340_v7  ;;  %v8345_v19 = vadd.f32 %v2621_v9, %v9706_v32  ;;  %v9709_v6 = vld [vmem:[#allocation40_spill] sm:$0xff] }
 0x60e   : > { %v6186_v36 = vpop.f32.mrf.mxu0 }
 0x60f   : > { %v8348_v10 = vadd.f32 %v2620_v2, %v9707_v34  ;;  %v2623_v56 = vmul.f32 0.35355338, %v6186_v36 }
 0x610   : > { %v2599_v12 = vpop.f32.mrf.mxu0 }
 0x611   : > { %v2622_v57 = vmul.f32 0.35355338, %v2599_v12  ;;  %2666 = vmax.xlane.f32.xlu1 %v8345_v19  ;;  %2664 = vmax.xlane.f32.xlu0 %v8348_v10  ;;  %v8353_v4 = vadd.f32 %v2623_v56, %v9708_v35 }
 0x613   : > { %v8356_v28 = vadd.f32 %v2622_v57, %v9709_v6 }
 0x615   : > { %2670 = vmax.xlane.f32.xlu1 %v8353_v4  ;;  %2668 = vmax.xlane.f32.xlu0 %v8356_v28 }
 0x626   : > { %2806 = vrot.lane.b32.xlu1 %v7622_v41, %s6972_s24 }
 0x62b   : > { %2804 = vrot.lane.b32.xlu0 %v7626_v20, %s6972_s24 }
 0x680   : > { %v2643_v2 = vpop.xlane.xlu0 %2642 }
 0x681   : > { %v2673_v9 = vsub.f32 %v8297_v11, %v2643_v2 }
 0x682   : > { %v2641_v36 = vpop.xlane.xlu1 %2640 }
 0x683   : > { %v2690_v12 = vmul.f32 1.442695, %v2673_v9  ;;  %v2672_v56 = vsub.f32 %v8300_v44, %v2641_v36 }
 0x685   : > { %6738 = vpow2.f32 %v2690_v12  ;;  %v2688_v57 = vmul.f32 1.442695, %v2672_v56 }
 0x686   : > { %v2647_v6 = vpop.xlane.xlu1 %2646  ;;  %v2645_v35 = vpop.xlane.xlu0 %2644 }
 0x687   : > { %6740 = vpow2.f32 %v2688_v57  ;;  %v2675_v48 = vsub.f32 %v8305_v40, %v2647_v6  ;;  %v2674_v16 = vsub.f32 %v8308_v13, %v2645_v35 }
 0x68a   : > { %v2651_v34 = vpop.xlane.xlu1 %2650  ;;  %v2649_v32 = vpop.xlane.xlu0 %2648 }
 0x68b   : > { %v2676_v53 = vsub.f32 %v8316_v38, %v2649_v32  ;;  %v2677_v18 = vsub.f32 %v8313_v14, %v2651_v34 }
 0x68d   : > { %v2698_v15 = vmul.f32 1.442695, %v2677_v18 }
 0x68e   : > { %v2655_v42 = vpop.xlane.xlu1 %2654  ;;  %v2653_v8 = vpop.xlane.xlu0 %2652 }
 0x68f   : > { %v2678_v52 = vsub.f32 %v8324_v50, %v2653_v8 }
 0x691   : > { %v2700_v54 = vmul.f32 1.442695, %v2678_v52 }
 0x692   : > { %v8366_v47 = vpop.eup %6738  ;;  %v2659_v29 = vpop.xlane.xlu1 %2658 }
 0x693   : > { %9710 = vst [vmem:[#allocation41_spill] sm:$0xff] %v8366_v47  ;;  %v2657_v23 = vpop.xlane.xlu0 %2656  ;;  %2722 = vadd.xlane.f32.xlu0 %v8366_v47  ;;  %v2694_v47 = vmul.f32 1.442695, %v2675_v48  ;;  %v2681_v48 = vsub.f32 %v8329_v33, %v2659_v29 }
 0x694   : > { %v8369_v11 = vpop.eup %6740  ;;  %v2680_v40 = vsub.f32 %v8332_v25, %v2657_v23 }
 0x695   : > { %9711 = vst [vmem:[#allocation42_spill] sm:$0xff] %v8369_v11  ;;  %2720 = vadd.xlane.f32.xlu1 %v8369_v11  ;;  %v2692_v11 = vmul.f32 1.442695, %v2674_v16  ;;  %6742 = vpow2.f32 %v2694_v47 }
 0x696   : > { %v2663_v44 = vpop.xlane.xlu1 %2662  ;;  %v2704_v16 = vmul.f32 1.442695, %v2680_v40 }
 0x697   : > { %v2661_v2 = vpop.xlane.xlu0 %2660  ;;  %6744 = vpow2.f32 %v2692_v11  ;;  %v2683_v47 = vsub.f32 %v8337_v63, %v2663_v44 }
 0x698   : > { %v2682_v14 = vsub.f32 %v8340_v7, %v2661_v2 }
 0x699   : > { %v2710_v52 = vmul.f32 1.442695, %v2683_v47 }
 0x69a   : > { %v2667_v9 = vpop.xlane.xlu1 %2666  ;;  %v2708_v18 = vmul.f32 1.442695, %v2682_v14  ;;  %v9718_v47 = vld [vmem:[#allocation41_spill] sm:$0xff] }
 0x69b   : > { %v2665_v36 = vpop.xlane.xlu0 %2664 }
 0x69c   : > { %v2684_v8 = vsub.f32 %v8348_v10, %v2665_v36 }
 0x69e   : > { %v2671_v12 = vpop.xlane.xlu1 %2670  ;;  %v2712_v23 = vmul.f32 1.442695, %v2684_v8  ;;  %v9719_v8 = vld [vmem:[#allocation23_spill] sm:$0xff] }
 0x69f   : > { %v2669_v56 = vpop.xlane.xlu0 %2668  ;;  %v2687_v10 = vsub.f32 %v8353_v4, %v2671_v12  ;;  %v2993_v12 = vld [vmem:[%s9569_s9 + $0x8] sm:$0xff] }
 0x6a0   : > { %v2686_v29 = vsub.f32 %v8356_v28, %v2669_v56  ;;  %v9712_v56 = vld [vmem:[#allocation18_spill] sm:$0xff] }
 0x6a1   : > { %v2718_v25 = vmul.f32 1.442695, %v2687_v10 }
 0x6a2   : > { %v2807_v57 = vpop.permute.xlu1 %2806  ;;  %v2716_v33 = vmul.f32 1.442695, %v2686_v29 }
 0x6a3   : > { %6211 = vmatprep.subr.mxu1 %v2807_v57  ;;  %v2805_v60 = vpop.permute.xlu0 %2804 }
 0x6a4   : > { %6212 = vmatpush3.msra.mxu1 %v2807_v57  ;;  %v2696_v57 = vmul.f32 1.442695, %v2676_v53  ;;  %v2706_v53 = vmul.f32 1.442695, %v2681_v48 }
 0x6a5   : > { %6213 = vmatprep.subr.mxu1 %v2805_v60 }
 0x6a6   : > { %2802 = vrot.lane.b32.xlu1 %v7616_v0, %s6972_s24  ;;  %6214 = vmatpush3.msra.mxu1 %v2805_v60  ;;  %v2679_v60 = vsub.f32 %v8321_v61, %v2655_v42  ;;  %6746 = vpow2.f32 %v2696_v57  ;;  %v8387_v42 = vpop.eup %6742  ;;  %v9713_v57 = vld [vmem:[#allocation19_spill] sm:$0xff] }
 0x6a7   : > { %6748 = vpow2.f32 %v2698_v15  ;;  %v2685_v15 = vsub.f32 %v8345_v19, %v2667_v9 }
 0x6a8   : > { %v2702_v13 = vmul.f32 1.442695, %v2679_v60  ;;  %6750 = vpow2.f32 %v2700_v54  ;;  %v8391_v54 = vpop.eup %6744  ;;  %v9714_v60 = vld [vmem:[#allocation20_spill] sm:$0xff] }
 0x6a9   : > { %2800 = vrot.lane.b32.xlu0 %v7618_v1, %s6972_s24  ;;  %v2714_v61 = vmul.f32 1.442695, %v2685_v15 }
 0x6aa   : > { %6752 = vpow2.f32 %v2702_v13  ;;  %v9715_v13 = vld [vmem:[#allocation21_spill] sm:$0xff] }
 0x6ab   : > { %6754 = vpow2.f32 %v2704_v16  ;;  %v9716_v16 = vld [vmem:[#allocation42_spill] sm:$0xff] }
 0x6ac   : > { %6756 = vpow2.f32 %v2706_v53  ;;  %v9717_v53 = vld [vmem:[#allocation22_spill] sm:$0xff] }
 0x6ad   : > { %6758 = vpow2.f32 %v2708_v18 }
 0x6ae   : > { %6760 = vpow2.f32 %v2710_v52  ;;  %v9720_v52 = vld [vmem:[#allocation24_spill] sm:$0xff] }
 0x6af   : > { %6762 = vpow2.f32 %v2712_v23 }
 0x6b0   : > { %6764 = vpow2.f32 %v2714_v61 }
 0x6b1   : > { %6766 = vpow2.f32 %v2716_v33 }
 0x6b2   : > { %6768 = vpow2.f32 %v2718_v25 }
 0x6b3   : > { %v8395_v38 = vpop.eup %6746 }
 0x6b4   : > { %v8399_v50 = vpop.eup %6748 }
 0x6b5   : > { %v8402_v34 = vpop.eup %6750 }
 0x6b7   : > { %v8405_v63 = vpop.eup %6752 }
 0x6b8   : > { %v8408_v28 = vpop.eup %6754 }
 0x6b9   : > { %v8411_v7 = vpop.eup %6756 }
 0x6ba   : > { %v8414_v32 = vpop.eup %6758 }
 0x6bb   : > { %v8417_v19 = vpop.eup %6760 }
 0x6bc   : > { %v8420_v35 = vpop.eup %6762 }
 0x6bd   : > { %v8423_v4 = vpop.eup %6764 }
 0x6be   : > { %v8426_v6 = vpop.eup %6766 }
 0x6bf   : > { %v8429_v11 = vpop.eup %6768 }
 0x6c8   : > { %2726 = vadd.xlane.f32.xlu0 %v8387_v42 }
 0x6ca   : > { %2724 = vadd.xlane.f32.xlu1 %v8391_v54 }
 0x6cc   : > { %2728 = vadd.xlane.f32.xlu0 %v8395_v38 }
 0x6ce   : > { %2730 = vadd.xlane.f32.xlu1 %v8399_v50 }
 0x6d0   : > { %2732 = vadd.xlane.f32.xlu0 %v8402_v34 }
 0x6d2   : > { %2734 = vadd.xlane.f32.xlu1 %v8405_v63 }
 0x6d4   : > { %2736 = vadd.xlane.f32.xlu0 %v8408_v28 }
 0x6d6   : > { %2738 = vadd.xlane.f32.xlu1 %v8411_v7 }
 0x6d8   : > { %2740 = vadd.xlane.f32.xlu0 %v8414_v32 }
 0x6da   : > { %2742 = vadd.xlane.f32.xlu1 %v8417_v19 }
 0x6dc   : > { %2744 = vadd.xlane.f32.xlu0 %v8420_v35 }
 0x6de   : > { %2746 = vadd.xlane.f32.xlu1 %v8423_v4 }
 0x6e0   : > { %2748 = vadd.xlane.f32.xlu0 %v8426_v6 }
 0x6e2   : > { %2750 = vadd.xlane.f32.xlu1 %v8429_v11 }
 0x6f3   : > { %3440 = vrot.lane.b32.xlu1 %v7683_v45, %s6973_s30 }
 0x6f6   : > { %3442 = vrot.lane.b32.xlu0 %v7677_v21, %s6973_s30 }
 0x6f7   : > { %3438 = vrot.lane.b32.xlu1 %v7675_v26, %s6973_s30 }
 0x6fa   : > { %3436 = vrot.lane.b32.xlu0 %v7681_v30, %s6973_s30 }
 0x6fb   : > { %3434 = vrot.lane.b32.xlu1 %v9690_v5, %s6973_s30 }
 0x6fe   : > { %3432 = vrot.lane.b32.xlu0 %v7667_v49, %s6973_s30 }
 0x6ff   : > { %3430 = vrot.lane.b32.xlu1 %v9691_v59, %s6973_s30 }
 0x702   : > { %3428 = vrot.lane.b32.xlu0 %v7654_v24, %s6973_s30 }
 0x703   : > { %3426 = vrot.lane.b32.xlu1 %v9692_v27, %s6973_s30 }
 0x706   : > { %3424 = vrot.lane.b32.xlu0 %v7642_v46, %s6973_s30 }
 0x707   : > { %3422 = vrot.lane.b32.xlu1 %v9693_v17, %s6973_s30 }
 0x70a   : > { %3420 = vrot.lane.b32.xlu0 %v7634_v39, %s6973_s30 }
 0x70b   : > { %3418 = vrot.lane.b32.xlu1 %v7622_v41, %s6973_s30 }
 0x70e   : > { %3416 = vrot.lane.b32.xlu0 %v7626_v20, %s6973_s30 }
 0x70f   : > { %3414 = vrot.lane.b32.xlu1 %v7616_v0, %s6973_s30 }
 0x712   : > { %3412 = vrot.lane.b32.xlu0 %v7618_v1, %s6973_s30 }
 0x713   : > { %3380 = vrot.lane.b32.xlu1 %v7837_v37, %s6973_s30 }
 0x716   : > { %3382 = vrot.lane.b32.xlu0 %v7840_v22, %s6973_s30 }
 0x717   : > { %3384 = vrot.lane.b32.xlu1 %v7847_v31, %s6973_s30 }
 0x71a   : > { %3386 = vrot.lane.b32.xlu0 %v7850_v62, %s6973_s30 }
 0x71b   : > { %3388 = vrot.lane.b32.xlu1 %v7858_v55, %s6973_s30 }
 0x71c   : > { %v2723_v44 = vpop.xlane.xlu0 %2722 }
 0x71d   : > { %6770 = vrcp.f32 %v2723_v44 }
 0x71e   : > { %v2721_v2 = vpop.xlane.xlu1 %2720  ;;  %3390 = vrot.lane.b32.xlu0 %v7862_v3, %s6973_s30 }
 0x71f   : > { %6772 = vrcp.f32 %v2721_v2  ;;  %3392 = vrot.lane.b32.xlu1 %v7875_v51, %s6973_s30 }
 0x720   : > { %v2801_v36 = vpop.permute.xlu0 %2800 }
 0x722   : > { %v2803_v9 = vpop.permute.xlu1 %2802  ;;  %3394 = vrot.lane.b32.xlu0 %v7878_v58, %s6973_s30 }
 0x723   : > { %3396 = vrot.lane.b32.xlu1 %v7882_v43, %s6973_s30  ;;  %6215 = vmatprep.subr.mxu1 %v2803_v9 }
 0x724   : > { %6216 = vmatpush3.msra.mxu1 %v2803_v9 }
 0x725   : > { %6217 = vmatprep.subr.mxu1 %v2801_v36 }
 0x726   : > { %3398 = vrot.lane.b32.xlu0 %v9712_v56, %s6973_s30  ;;  %6218 = vmatpush3.msra.mxu1 %v2801_v36 }
 0x727   : > { %3400 = vrot.lane.b32.xlu1 %v9713_v57, %s6973_s30  ;;  %6243 = vmatprep.subr.mxu1 %v2993_v12 }
 0x72a   : > { %3402 = vrot.lane.b32.xlu0 %v9714_v60, %s6973_s30  ;;  %v6771_v40 = vpop.eup %6770 }
 0x72b   : > { %3404 = vrot.lane.b32.xlu1 %v9715_v13, %s6973_s30  ;;  %v2785_v18 = vmul.f32 %v6771_v40, %v9718_v47 }
 0x72c   : > { %v6773_v48 = vpop.eup %6772 }
 0x72d   : > { %v2784_v14 = vmul.f32 %v6773_v48, %v9716_v16 }
 0x72e   : > { %3406 = vrot.lane.b32.xlu0 %v9717_v53, %s6973_s30 }
 0x72f   : > { %6219 = vmatprep.mubr.f32.mxu1 %v2784_v14  ;;  %3408 = vrot.lane.b32.xlu1 %v9719_v8, %s6973_s30 }
 0x730   : > { %6220 = vmatmul.mubr.f32.vlgmr.msra.gmra.mxu1 %v2785_v18 }
 0x731   : > { %6244 = vmatpush3.msra.mxu1 %v2993_v12 }
 0x732   : > { %3410 = vrot.lane.b32.xlu0 %v9720_v52, %s6973_s30 }
 0x733   : > { %4310 = vrot.lane.b32.xlu1 %v7677_v21, %s6974_s17 }
 0x736   : > { %4308 = vrot.lane.b32.xlu0 %v7683_v45, %s6974_s17 }
 0x737   : > { %4306 = vrot.lane.b32.xlu1 %v7675_v26, %s6974_s17 }
 0x73a   : > { %4304 = vrot.lane.b32.xlu0 %v7681_v30, %s6974_s17 }
 0x73b   : > { %4302 = vrot.lane.b32.xlu1 %v9690_v5, %s6974_s17 }
 0x73e   : > { %4300 = vrot.lane.b32.xlu0 %v7667_v49, %s6974_s17 }
 0x73f   : > { %4298 = vrot.lane.b32.xlu1 %v9691_v59, %s6974_s17 }
 0x742   : > { %4296 = vrot.lane.b32.xlu0 %v7654_v24, %s6974_s17 }
 0x743   : > { %4294 = vrot.lane.b32.xlu1 %v9692_v27, %s6974_s17 }
 0x746   : > { %4292 = vrot.lane.b32.xlu0 %v7642_v46, %s6974_s17 }
 0x747   : > { %4290 = vrot.lane.b32.xlu1 %v9693_v17, %s6974_s17 }
 0x74a   : > { %4288 = vrot.lane.b32.xlu0 %v7634_v39, %s6974_s17 }
 0x74b   : > { %4286 = vrot.lane.b32.xlu1 %v7622_v41, %s6974_s17 }
 0x74e   : > { %4284 = vrot.lane.b32.xlu0 %v7626_v20, %s6974_s17 }
 0x74f   : > { %4282 = vrot.lane.b32.xlu1 %v7616_v0, %s6974_s17 }
 0x751   : > { %v2727_v15 = vpop.xlane.xlu0 %2726 }
 0x752   : > { %4280 = vrot.lane.b32.xlu0 %v7618_v1, %s6974_s17  ;;  %6774 = vrcp.f32 %v2727_v15 }
 0x753   : > { %4248 = vrot.lane.b32.xlu1 %v7837_v37, %s6974_s17  ;;  %v2725_v23 = vpop.xlane.xlu1 %2724 }
 0x754   : > { %6776 = vrcp.f32 %v2725_v23 }
 0x755   : > { %v2729_v29 = vpop.xlane.xlu0 %2728 }
 0x756   : > { %6778 = vrcp.f32 %v2729_v29  ;;  %4250 = vrot.lane.b32.xlu0 %v7840_v22, %s6974_s17 }
 0x757   : > { %4252 = vrot.lane.b32.xlu1 %v7847_v31, %s6974_s17  ;;  %v2731_v61 = vpop.xlane.xlu1 %2730 }
 0x758   : > { %6780 = vrcp.f32 %v2731_v61 }
 0x759   : > { %v2733_v10 = vpop.xlane.xlu0 %2732 }
 0x75a   : > { %6782 = vrcp.f32 %v2733_v10  ;;  %4254 = vrot.lane.b32.xlu0 %v7850_v62, %s6974_s17 }
 0x75b   : > { %4256 = vrot.lane.b32.xlu1 %v7858_v55, %s6974_s17  ;;  %v2735_v37 = vpop.xlane.xlu1 %2734 }
 0x75c   : > { %6784 = vrcp.f32 %v2735_v37 }
 0x75d   : > { %v2737_v33 = vpop.xlane.xlu0 %2736 }
 0x75e   : > { %6786 = vrcp.f32 %v2737_v33  ;;  %4258 = vrot.lane.b32.xlu0 %v7862_v3, %s6974_s17 }
 0x75f   : > { %4260 = vrot.lane.b32.xlu1 %v7875_v51, %s6974_s17  ;;  %v2739_v22 = vpop.xlane.xlu1 %2738  ;;  %v6775_v31 = vpop.eup %6774 }
 0x760   : > { %6788 = vrcp.f32 %v2739_v22  ;;  %v2787_v3 = vmul.f32 %v6775_v31, %v8387_v42 }
 0x761   : > { %v6777_v25 = vpop.eup %6776  ;;  %v2741_v44 = vpop.xlane.xlu0 %2740 }
 0x762   : > { %6790 = vrcp.f32 %v2741_v44  ;;  %4262 = vrot.lane.b32.xlu0 %v7878_v58, %s6974_s17  ;;  %v2786_v62 = vmul.f32 %v6777_v25, %v8391_v54 }
 0x763   : > { %v6779_v55 = vpop.eup %6778  ;;  %4264 = vrot.lane.b32.xlu1 %v7882_v43, %s6974_s17  ;;  %v2743_v2 = vpop.xlane.xlu1 %2742 }
 0x764   : > { %6792 = vrcp.f32 %v2743_v2  ;;  %6222 = vmatprep.mubr.f32.mxu1 %v2786_v62  ;;  %v2788_v51 = vmul.f32 %v6779_v55, %v8395_v38 }
 0x765   : > { %v6781_v9 = vpop.eup %6780  ;;  %6223 = vmatmul.mubr.f32.gmra.mxu1 %v2787_v3  ;;  %v2745_v36 = vpop.xlane.xlu0 %2744 }
 0x766   : > { %6794 = vrcp.f32 %v2745_v36  ;;  %4266 = vrot.lane.b32.xlu0 %v9712_v56, %s6974_s17  ;;  %6225 = vmatprep.mubr.f32.mxu1 %v2788_v51  ;;  %v2789_v58 = vmul.f32 %v6781_v9, %v8399_v50 }
 0x767   : > { %v6783_v54 = vpop.eup %6782  ;;  %4268 = vrot.lane.b32.xlu1 %v9713_v57, %s6974_s17  ;;  %v2747_v43 = vpop.xlane.xlu1 %2746 }
 0x768   : > { %6796 = vrcp.f32 %v2747_v43  ;;  %v2790_v42 = vmul.f32 %v6783_v54, %v8402_v34 }
 0x769   : > { %v6785_v12 = vpop.eup %6784  ;;  %6226 = vmatmul.mubr.f32.gmra.mxu1 %v2789_v58  ;;  %v2749_v38 = vpop.xlane.xlu0 %2748 }
 0x76a   : > { %6798 = vrcp.f32 %v2749_v38  ;;  %4270 = vrot.lane.b32.xlu0 %v9714_v60, %s6974_s17  ;;  %6228 = vmatprep.mubr.f32.mxu1 %v2790_v42  ;;  %v2791_v56 = vmul.f32 %v6785_v12, %v8405_v63 }
 0x76b   : > { %v6787_v40 = vpop.eup %6786  ;;  %4272 = vrot.lane.b32.xlu1 %v9715_v13, %s6974_s17  ;;  %v2751_v50 = vpop.xlane.xlu1 %2750 }
 0x76c   : > { %6800 = vrcp.f32 %v2751_v50  ;;  %v2792_v57 = vmul.f32 %v6787_v40, %v8408_v28 }
 0x76d   : > { %v6789_v48 = vpop.eup %6788  ;;  %6229 = vmatmul.mubr.f32.gmra.mxu1 %v2791_v56  ;;  %v8566_v34 = vpop.permute.xlu0 %3442 }
 0x76e   : > { %4274 = vrot.lane.b32.xlu0 %v9717_v53, %s6974_s17  ;;  %6231 = vmatprep.mubr.f32.mxu1 %v2792_v57  ;;  %v2793_v60 = vmul.f32 %v6789_v48, %v8411_v7 }
 0x76f   : > { %v6791_v16 = vpop.eup %6790  ;;  %6295 = vmatprep.subr.msk.mxu1 %vm1475_vm1, %v8566_v34  ;;  %4276 = vrot.lane.b32.xlu1 %v9719_v8, %s6974_s17  ;;  %v8575_v63 = vpop.permute.xlu1 %3440 }
 0x770   : > { %v2794_v28 = vmul.f32 %v6791_v16, %v8414_v32 }
 0x771   : > { %v6793_v13 = vpop.eup %6792  ;;  %6232 = vmatmul.mubr.f32.gmra.mxu1 %v2793_v60  ;;  %v8578_v14 = vpop.permute.xlu0 %3436 }
 0x772   : > { %4278 = vrot.lane.b32.xlu0 %v9720_v52, %s6974_s17  ;;  %6234 = vmatprep.mubr.f32.mxu1 %v2794_v28  ;;  %v2795_v7 = vmul.f32 %v6793_v13, %v8417_v19 }
 0x773   : > { %v6795_v53 = vpop.eup %6794  ;;  %3873 = vrot.lane.b32.xlu1 %v7683_v45, %s6975_s18  ;;  %v8585_v47 = vpop.permute.xlu1 %3438 }
 0x774   : > { %v2796_v18 = vmul.f32 %v6795_v53, %v8420_v35 }
 0x775   : > { %v6797_v32 = vpop.eup %6796  ;;  %6235 = vmatmul.mubr.f32.gmra.mxu1 %v2795_v7  ;;  %v8588_v8 = vpop.permute.xlu0 %3432 }
 0x776   : > { %3875 = vrot.lane.b32.xlu0 %v7677_v21, %s6975_s18  ;;  %6237 = vmatprep.mubr.f32.mxu1 %v2796_v18  ;;  %v2797_v52 = vmul.f32 %v6797_v32, %v8423_v4 }
 0x777   : > { %v6799_v19 = vpop.eup %6798  ;;  %3869 = vrot.lane.b32.xlu1 %v7681_v30, %s6975_s18  ;;  %v8595_v15 = vpop.permute.xlu1 %3434 }
 0x778   : > { %v2798_v23 = vmul.f32 %v6799_v19, %v8426_v6 }
 0x779   : > { %v6801_v29 = vpop.eup %6800  ;;  %6238 = vmatmul.mubr.f32.gmra.mxu1 %v2797_v52  ;;  %v8598_v35 = vpop.permute.xlu0 %3428 }
 0x77a   : > { %3871 = vrot.lane.b32.xlu0 %v7675_v26, %s6975_s18  ;;  %6240 = vmatprep.mubr.f32.mxu1 %v2798_v23  ;;  %v2799_v61 = vmul.f32 %v6801_v29, %v8429_v11 }
 0x77b   : > { %3865 = vrot.lane.b32.xlu1 %v7667_v49, %s6975_s18  ;;  %v8605_v4 = vpop.permute.xlu1 %3430 }
 0x77d   : > { %6241 = vmatmul.mubr.f32.gmra.mxu1 %v2799_v61  ;;  %v8607_v10 = vpop.permute.xlu0 %3424 }
 0x77e   : > { %3867 = vrot.lane.b32.xlu0 %v9690_v5, %s6975_s18 }
 0x77f   : > { %3861 = vrot.lane.b32.xlu1 %v7654_v24, %s6975_s18  ;;  %v8613_v6 = vpop.permute.xlu1 %3426 }
 0x781   : > { %v8615_v37 = vpop.permute.xlu0 %3420 }
 0x782   : > { %3863 = vrot.lane.b32.xlu0 %v9691_v59, %s6975_s18 }
 0x783   : > { %3857 = vrot.lane.b32.xlu1 %v7642_v46, %s6975_s18  ;;  %v8621_v11 = vpop.permute.xlu1 %3422 }
 0x785   : > { %v8623_v33 = vpop.permute.xlu0 %3416 }
 0x786   : > { %3859 = vrot.lane.b32.xlu0 %v9692_v27, %s6975_s18 }
 0x787   : > { %v8627_v22 = vpop.permute.xlu1 %3418 }
 0x789   : > { %v8629_v31 = vpop.permute.xlu0 %3412 }
 0x78b   : > { %v8631_v25 = vpop.permute.xlu1 %3414 }
 0x78d   : > { %v8633_v44 = vpop.permute.xlu0 %3382 }
 0x78f   : > { %v8635_v62 = vpop.permute.xlu1 %3380 }
 0x791   : > { %v8637_v55 = vpop.permute.xlu0 %3386 }
 0x793   : > { %v8639_v2 = vpop.permute.xlu1 %3384 }
 0x795   : > { %v8641_v3 = vpop.permute.xlu0 %3390 }
 0x797   : > { %v8643_v51 = vpop.permute.xlu1 %3388 }
 0x799   : > { %v8645_v9 = vpop.permute.xlu0 %3394 }
 0x79b   : > { %v8647_v36 = vpop.permute.xlu1 %3392 }
 0x79d   : > { %v8649_v58 = vpop.permute.xlu0 %3398 }
 0x79f   : > { %v8651_v54 = vpop.permute.xlu1 %3396 }
 0x7a1   : > { %v8653_v43 = vpop.permute.xlu0 %3402 }
 0x7a3   : > { %v8655_v42 = vpop.permute.xlu1 %3400 }
 0x7a5   : > { %v8657_v12 = vpop.permute.xlu0 %3406 }
 0x7a7   : > { %v8659_v38 = vpop.permute.xlu1 %3404 }
 0x7a9   : > { %v8661_v56 = vpop.permute.xlu0 %3410 }
 0x7ab   : > { %v8663_v40 = vpop.permute.xlu1 %3408 }
 0x7ad   : > { %v8665_v50 = vpop.permute.xlu0 %4308 }
 0x7af   : > { %v8667_v57 = vpop.permute.xlu1 %4310 }
 0x7b1   : > { %v8669_v48 = vpop.permute.xlu0 %4304 }
 0x7b3   : > { %v8671_v60 = vpop.permute.xlu1 %4306 }
 0x7b5   : > { %v8673_v16 = vpop.permute.xlu0 %4300 }
 0x7b7   : > { %v8675_v28 = vpop.permute.xlu1 %4302 }
 0x7b9   : > { %v8677_v13 = vpop.permute.xlu0 %4296 }
 0x7bb   : > { %v8679_v7 = vpop.permute.xlu1 %4298 }
 0x7bd   : > { %v8681_v53 = vpop.permute.xlu0 %4292 }
 0x7bf   : > { %v8683_v18 = vpop.permute.xlu1 %4294 }
 0x7c1   : > { %v8685_v32 = vpop.permute.xlu0 %4288 }
 0x7c3   : > { %v8687_v52 = vpop.permute.xlu1 %4290 }
 0x7c5   : > { %v8689_v19 = vpop.permute.xlu0 %4284 }
 0x7c7   : > { %v8691_v23 = vpop.permute.xlu1 %4286 }
 0x7c9   : > { %v8693_v29 = vpop.permute.xlu0 %4280 }
 0x7cb   : > { %v8695_v61 = vpop.permute.xlu1 %4282 }
 0x7cd   : > { %v8697_v27 = vpop.permute.xlu0 %4250 }
 0x7cf   : > { %v8699_v59 = vpop.permute.xlu1 %4248 }
 0x7d1   : > { %v8701_v46 = vpop.permute.xlu0 %4254 }
 0x7d3   : > { %v8703_v5 = vpop.permute.xlu1 %4252 }
 0x7d5   : > { %v8705_v24 = vpop.permute.xlu0 %4258 }
 0x7d6   : > { %9721 = vst [vmem:[#allocation18_spill] sm:$0xff] %v8705_v24 }
 0x7d7   : > { %v8707_v26 = vpop.permute.xlu1 %4256 }
 0x7d9   : > { %v8709_v49 = vpop.permute.xlu0 %4262 }
 0x7da   : > { %9722 = vst [vmem:[#allocation19_spill] sm:$0xff] %v8709_v49 }
 0x7db   : > { %v8711_v21 = vpop.permute.xlu1 %4260 }
 0x7dc   : > { %9723 = vst [vmem:[#allocation20_spill] sm:$0xff] %v8711_v21 }
 0x7dd   : > { %v8713_v30 = vpop.permute.xlu0 %4266 }
 0x7de   : > { %9724 = vst [vmem:[#allocation21_spill] sm:$0xff] %v8713_v30 }
 0x7df   : > { %v8715_v45 = vpop.permute.xlu1 %4264 }
 0x7e0   : > { %9725 = vst [vmem:[#allocation42_spill] sm:$0xff] %v8715_v45 }
 0x7e1   : > { %v8717_v0 = vpop.permute.xlu0 %4270 }
 0x7e2   : > { %9726 = vst [vmem:[#allocation22_spill] sm:$0xff] %v8717_v0 }
 0x7e3   : > { %v8719_v41 = vpop.permute.xlu1 %4268 }
 0x7e5   : > { %v8721_v1 = vpop.permute.xlu0 %4274 }
 0x7e7   : > { %v8723_v17 = vpop.permute.xlu1 %4272 }
 0x7e9   : > { %v8725_v20 = vpop.permute.xlu0 %4278 }
 0x7ea   : > { %9727 = vst [vmem:[#allocation41_spill] sm:$0xff] %v8725_v20 }
 0x7eb   : > { %v8727_v39 = vpop.permute.xlu1 %4276 }
 0x7ed   : > { %v3876_v24 = vpop.permute.xlu0 %3875 }
 0x7ee   : > { %6351 = vmatprep.subr.mxu0 %v3876_v24 }
 0x7ef   : > { %v3874_v49 = vpop.permute.xlu1 %3873  ;;  %6352 = vmatpush3.msra.mxu0 %v3876_v24 }
 0x7f0   : > { %v6221_v21 = vpop.f32.mrf.mxu1  ;;  %6353 = vmatprep.subr.mxu0 %v3874_v49 }
 0x7f1   : > { %6354 = vmatpush3.msra.mxu0 %v3874_v49  ;;  %v3872_v30 = vpop.permute.xlu0 %3871 }
 0x7f2   : > { %v2914_v45 = vpop.f32.mrf.mxu1  ;;  %6355 = vmatprep.subr.mxu0 %v3872_v30 }
 0x7f3   : > { %v3870_v0 = vpop.permute.xlu1 %3869  ;;  %6245 = vmatprep.mubr.msk.f32.mxu1 %vm1475_vm1, %v2914_v45  ;;  %6356 = vmatpush3.msra.mxu0 %v3872_v30 }
 0x7f4   : > { %6246 = vmatmul.mubr.msk.f32.vlgmr.msra.gmra.mxu1 %vm1475_vm1, %v6221_v21  ;;  %6357 = vmatprep.subr.mxu0 %v3870_v0 }
 0x7f5   : > { %6296 = vmatpush3.xpose.msk.msra.mxu1 %vm1475_vm1, %v8566_v34  ;;  %6358 = vmatpush3.msra.mxu0 %v3870_v0  ;;  %v3868_v20 = vpop.permute.xlu0 %3867 }
 0x7f6   : > { %6297 = vmatprep.subr.msk.mxu1 %vm1475_vm1, %v8575_v63  ;;  %6359 = vmatprep.subr.mxu0 %v3868_v20 }
 0x7f7   : > { %v3866_v24 = vpop.permute.xlu1 %3865  ;;  %6360 = vmatpush3.msra.mxu0 %v3868_v20 }
 0x7f8   : > { %6361 = vmatprep.subr.mxu0 %v3866_v24 }
 0x7f9   : > { %6298 = vmatpush3.xpose.msk.msra.mxu1 %vm1475_vm1, %v8575_v63  ;;  %6362 = vmatpush3.msra.mxu0 %v3866_v24  ;;  %v3864_v49 = vpop.permute.xlu0 %3863 }
 0x7fa   : > { %6299 = vmatprep.subr.msk.mxu1 %vm1475_vm1, %v8585_v47  ;;  %6363 = vmatprep.subr.mxu0 %v3864_v49 }
 0x7fb   : > { %v3862_v21 = vpop.permute.xlu1 %3861  ;;  %6364 = vmatpush3.msra.mxu0 %v3864_v49  ;;  %v9748_v49 = vld [vmem:[#allocation30_spill] sm:$0xff] }
 0x7fc   : > { %6365 = vmatprep.subr.mxu0 %v3862_v21 }
 0x7fd   : > { %6300 = vmatpush3.xpose.msk.msra.mxu1 %vm1475_vm1, %v8585_v47  ;;  %6366 = vmatpush3.msra.mxu0 %v3862_v21  ;;  %v3860_v0 = vpop.permute.xlu0 %3859 }
 0x7fe   : > { %6301 = vmatprep.subr.msk.mxu1 %vm1475_vm1, %v8578_v14  ;;  %6367 = vmatprep.subr.mxu0 %v3860_v0 }
 0x7ff   : > { %v3858_v20 = vpop.permute.xlu1 %3857  ;;  %6368 = vmatpush3.msra.mxu0 %v3860_v0 }
 0x800   : > { %6369 = vmatprep.subr.mxu0 %v3858_v20 }
 0x801   : > { %6302 = vmatpush3.xpose.msk.msra.mxu1 %vm1475_vm1, %v8578_v14  ;;  %6370 = vmatpush3.msra.mxu0 %v3858_v20 }
 0x802   : > { %6303 = vmatprep.subr.msk.mxu1 %vm1475_vm1, %v8595_v15 }
 0x805   : > { %6304 = vmatpush3.xpose.msk.msra.mxu1 %vm1475_vm1, %v8595_v15 }
 0x806   : > { %6305 = vmatprep.subr.msk.mxu1 %vm1475_vm1, %v8588_v8 }
 0x809   : > { %6306 = vmatpush3.xpose.msk.msra.mxu1 %vm1475_vm1, %v8588_v8 }
 0x80a   : > { %6307 = vmatprep.subr.msk.mxu1 %vm1475_vm1, %v8605_v4 }
 0x80d   : > { %6308 = vmatpush3.xpose.msk.msra.mxu1 %vm1475_vm1, %v8605_v4 }
 0x80e   : > { %6309 = vmatprep.subr.msk.mxu1 %vm1475_vm1, %v8598_v35 }
 0x811   : > { %6310 = vmatpush3.xpose.msk.msra.mxu1 %vm1475_vm1, %v8598_v35 }
 0x812   : > { %6311 = vmatprep.subr.msk.mxu1 %vm1475_vm1, %v8613_v6 }
 0x815   : > { %6312 = vmatpush3.xpose.msk.msra.mxu1 %vm1475_vm1, %v8613_v6 }
 0x816   : > { %6313 = vmatprep.subr.msk.mxu1 %vm1475_vm1, %v8607_v10 }
 0x819   : > { %6314 = vmatpush3.xpose.msk.msra.mxu1 %vm1475_vm1, %v8607_v10 }
 0x81a   : > { %6315 = vmatprep.subr.msk.mxu1 %vm1475_vm1, %v8621_v11 }
 0x81d   : > { %6316 = vmatpush3.xpose.msk.msra.mxu1 %vm1475_vm1, %v8621_v11 }
 0x81e   : > { %6317 = vmatprep.subr.msk.mxu1 %vm1475_vm1, %v8615_v37 }
 0x821   : > { %6318 = vmatpush3.xpose.msk.msra.mxu1 %vm1475_vm1, %v8615_v37 }
 0x822   : > { %6319 = vmatprep.subr.msk.mxu1 %vm1475_vm1, %v8627_v22 }
 0x825   : > { %6320 = vmatpush3.xpose.msk.msra.mxu1 %vm1475_vm1, %v8627_v22  ;;  %v6224_v30 = vpop.f32.mrf.mxu1  ;;  %v9730_v22 = vld [vmem:[#allocation19_spill] sm:$0xff] }
 0x826   : > { %6321 = vmatprep.subr.msk.mxu1 %vm1475_vm1, %v8623_v33 }
 0x827   : > { %v2924_v45 = vpop.f32.mrf.mxu1 }
 0x828   : > { %6248 = vmatprep.mubr.msk.f32.mxu1 %vm1475_vm1, %v2924_v45 }
 0x829   : > { %6322 = vmatpush3.xpose.msk.msra.mxu1 %vm1475_vm1, %v8623_v33  ;;  %v6227_v34 = vpop.f32.mrf.mxu1  ;;  %v9729_v33 = vld [vmem:[#allocation20_spill] sm:$0xff] }
 0x82a   : > { %6249 = vmatmul.mubr.msk.f32.gmra.mxu1 %vm1475_vm1, %v6224_v30  ;;  %6323 = vmatprep.subr.msk.mxu1 %vm1475_vm1, %v8631_v25 }
 0x82b   : > { %v2934_v63 = vpop.f32.mrf.mxu1 }
 0x82c   : > { %6251 = vmatprep.mubr.msk.f32.mxu1 %vm1475_vm1, %v2934_v63 }
 0x82d   : > { %6324 = vmatpush3.xpose.msk.msra.mxu1 %vm1475_vm1, %v8631_v25  ;;  %v6230_v14 = vpop.f32.mrf.mxu1 }
 0x82e   : > { %6252 = vmatmul.mubr.msk.f32.gmra.mxu1 %vm1475_vm1, %v6227_v34  ;;  %6325 = vmatprep.subr.msk.mxu1 %vm1475_vm1, %v8629_v31  ;;  %v9749_v34 = vld [vmem:[#allocation31_spill] sm:$0xff] }
 0x82f   : > { %v2944_v47 = vpop.f32.mrf.mxu1 }
 0x830   : > { %6254 = vmatprep.mubr.msk.f32.mxu1 %vm1475_vm1, %v2944_v47 }
 0x831   : > { %6326 = vmatpush3.xpose.msk.msra.mxu1 %vm1475_vm1, %v8629_v31  ;;  %v6233_v8 = vpop.f32.mrf.mxu1  ;;  %v9731_v31 = vld [vmem:[#allocation42_spill] sm:$0xff] }
 0x832   : > { %6255 = vmatmul.mubr.msk.f32.gmra.mxu1 %vm1475_vm1, %v6230_v14  ;;  %6433 = vmatprep.subr.msk.mxu1 %vm1475_vm1, %v8667_v57  ;;  %v9750_v14 = vld [vmem:[#allocation32_spill] sm:$0xff] }
 0x833   : > { %v2954_v15 = vpop.f32.mrf.mxu1 }
 0x834   : > { %6257 = vmatprep.mubr.msk.f32.mxu1 %vm1475_vm1, %v2954_v15 }
 0x835   : > { %v6236_v35 = vpop.f32.mrf.mxu1 }
 0x836   : > { %6258 = vmatmul.mubr.msk.f32.gmra.mxu1 %vm1475_vm1, %v6233_v8 }
 0x837   : > { %v2964_v4 = vpop.f32.mrf.mxu1 }
 0x838   : > { %6260 = vmatprep.mubr.msk.f32.mxu1 %vm1475_vm1, %v2964_v4 }
 0x839   : > { %v6239_v10 = vpop.f32.mrf.mxu1 }
 0x83a   : > { %6261 = vmatmul.mubr.msk.f32.gmra.mxu1 %vm1475_vm1, %v6236_v35 }
 0x83b   : > { %v2974_v6 = vpop.f32.mrf.mxu1 }
 0x83c   : > { %6263 = vmatprep.mubr.msk.f32.mxu1 %vm1475_vm1, %v2974_v6 }
 0x83d   : > { %v6242_v37 = vpop.f32.mrf.mxu1 }
 0x83e   : > { %6264 = vmatmul.mubr.msk.f32.gmra.mxu1 %vm1475_vm1, %v6239_v10  ;;  %v9751_v10 = vld [vmem:[#allocation33_spill] sm:$0xff] }
 0x83f   : > { %v2984_v11 = vpop.f32.mrf.mxu1 }
 0x840   : > { %6266 = vmatprep.mubr.msk.f32.mxu1 %vm1475_vm1, %v2984_v11 }
 0x842   : > { %6267 = vmatmul.mubr.msk.f32.gmra.mxu1 %vm1475_vm1, %v6242_v37  ;;  %v9752_v37 = vld [vmem:[#allocation34_spill] sm:$0xff] }
 0x843   : > { %6327 = vmatprep.mubr.msk.f32.mxu1 %vm1475_vm1, %v8635_v62 }
 0x846   : > { %6328 = vmatmul.mubr.msk.f32.vlgmr.msra.gmra.mxu1 %vm1475_vm1, %v8633_v44 }
 0x847   : > { %6434 = vmatpush3.xpose.msk.msra.mxu1 %vm1475_vm1, %v8667_v57  ;;  %6330 = vmatprep.mubr.msk.f32.mxu1 %vm1475_vm1, %v8639_v2  ;;  %v9744_v57 = vld [vmem:[#allocation26_spill] sm:$0xff] }
 0x848   : > { %6435 = vmatprep.subr.msk.mxu1 %vm1475_vm1, %v8665_v50 }
 0x84a   : > { %6331 = vmatmul.mubr.msk.f32.gmra.mxu1 %vm1475_vm1, %v8637_v55 }
 0x84b   : > { %6436 = vmatpush3.xpose.msk.msra.mxu1 %vm1475_vm1, %v8665_v50  ;;  %6333 = vmatprep.mubr.msk.f32.mxu1 %vm1475_vm1, %v8643_v51 }
 0x84c   : > { %6437 = vmatprep.subr.msk.mxu1 %vm1475_vm1, %v8671_v60 }
 0x84e   : > { %6334 = vmatmul.mubr.msk.f32.gmra.mxu1 %vm1475_vm1, %v8641_v3 }
 0x84f   : > { %6438 = vmatpush3.xpose.msk.msra.mxu1 %vm1475_vm1, %v8671_v60  ;;  %6336 = vmatprep.mubr.msk.f32.mxu1 %vm1475_vm1, %v8647_v36 }
 0x850   : > { %6439 = vmatprep.subr.msk.mxu1 %vm1475_vm1, %v8669_v48 }
 0x852   : > { %6337 = vmatmul.mubr.msk.f32.gmra.mxu1 %vm1475_vm1, %v8645_v9 }
 0x853   : > { %6440 = vmatpush3.xpose.msk.msra.mxu1 %vm1475_vm1, %v8669_v48  ;;  %6339 = vmatprep.mubr.msk.f32.mxu1 %vm1475_vm1, %v8651_v54 }
 0x854   : > { %6441 = vmatprep.subr.msk.mxu1 %vm1475_vm1, %v8675_v28 }
 0x856   : > { %6340 = vmatmul.mubr.msk.f32.gmra.mxu1 %vm1475_vm1, %v8649_v58 }
 0x857   : > { %6442 = vmatpush3.xpose.msk.msra.mxu1 %vm1475_vm1, %v8675_v28  ;;  %6342 = vmatprep.mubr.msk.f32.mxu1 %vm1475_vm1, %v8655_v42 }
 0x858   : > { %6443 = vmatprep.subr.msk.mxu1 %vm1475_vm1, %v8673_v16 }
 0x85a   : > { %6343 = vmatmul.mubr.msk.f32.gmra.mxu1 %vm1475_vm1, %v8653_v43 }
 0x85b   : > { %6444 = vmatpush3.xpose.msk.msra.mxu1 %vm1475_vm1, %v8673_v16  ;;  %6345 = vmatprep.mubr.msk.f32.mxu1 %vm1475_vm1, %v8659_v38  ;;  %v9743_v38 = vld [vmem:[#allocation25_spill] sm:$0xff] }
 0x85c   : > { %6445 = vmatprep.subr.msk.mxu1 %vm1475_vm1, %v8679_v7 }
 0x85e   : > { %6346 = vmatmul.mubr.msk.f32.gmra.mxu1 %vm1475_vm1, %v8657_v12 }
 0x85f   : > { %6446 = vmatpush3.xpose.msk.msra.mxu1 %vm1475_vm1, %v8679_v7  ;;  %6348 = vmatprep.mubr.msk.f32.mxu1 %vm1475_vm1, %v8663_v40  ;;  %v9745_v7 = vld [vmem:[#allocation27_spill] sm:$0xff] }
 0x860   : > { %6447 = vmatprep.subr.msk.mxu1 %vm1475_vm1, %v8677_v13 }
 0x862   : > { %6349 = vmatmul.mubr.msk.f32.gmra.mxu1 %vm1475_vm1, %v8661_v56 }
 0x863   : > { %6448 = vmatpush3.xpose.msk.msra.mxu1 %vm1475_vm1, %v8677_v13  ;;  %6465 = vmatprep.mubr.msk.f32.mxu1 %vm1475_vm1, %v8699_v59  ;;  %v9728_v59 = vld [vmem:[#allocation18_spill] sm:$0xff] }
 0x864   : > { %6449 = vmatprep.subr.msk.mxu1 %vm1475_vm1, %v8683_v18 }
 0x867   : > { %6450 = vmatpush3.xpose.msk.msra.mxu1 %vm1475_vm1, %v8683_v18  ;;  %v9746_v18 = vld [vmem:[#allocation28_spill] sm:$0xff] }
 0x868   : > { %6451 = vmatprep.subr.msk.mxu1 %vm1475_vm1, %v8681_v53 }
 0x86b   : > { %6452 = vmatpush3.xpose.msk.msra.mxu1 %vm1475_vm1, %v8681_v53 }
 0x86c   : > { %6453 = vmatprep.subr.msk.mxu1 %vm1475_vm1, %v8687_v52 }
 0x86f   : > { %6454 = vmatpush3.xpose.msk.msra.mxu1 %vm1475_vm1, %v8687_v52 }
 0x870   : > { %6455 = vmatprep.subr.msk.mxu1 %vm1475_vm1, %v8685_v32 }
 0x873   : > { %6456 = vmatpush3.xpose.msk.msra.mxu1 %vm1475_vm1, %v8685_v32 }
 0x874   : > { %6457 = vmatprep.subr.msk.mxu1 %vm1475_vm1, %v8691_v23 }
 0x877   : > { %6458 = vmatpush3.xpose.msk.msra.mxu1 %vm1475_vm1, %v8691_v23 }
 0x878   : > { %6459 = vmatprep.subr.msk.mxu1 %vm1475_vm1, %v8689_v19 }
 0x87b   : > { %6460 = vmatpush3.xpose.msk.msra.mxu1 %vm1475_vm1, %v8689_v19 }
 0x87c   : > { %6461 = vmatprep.subr.msk.mxu1 %vm1475_vm1, %v8695_v61 }
 0x87f   : > { %6462 = vmatpush3.xpose.msk.msra.mxu1 %vm1475_vm1, %v8695_v61  ;;  %v9747_v61 = vld [vmem:[#allocation29_spill] sm:$0xff] }
 0x880   : > { %6463 = vmatprep.subr.msk.mxu1 %vm1475_vm1, %v8693_v29 }
 0x883   : > { %6464 = vmatpush3.xpose.msk.msra.mxu1 %vm1475_vm1, %v8693_v29 }
 0x886   : > { %6466 = vmatmul.mubr.msk.f32.vlgmr.msra.gmra.mxu1 %vm1475_vm1, %v8697_v27  ;;  %v9732_v27 = vld [vmem:[#allocation21_spill] sm:$0xff] }
 0x887   : > { %6468 = vmatprep.mubr.msk.f32.mxu1 %vm1475_vm1, %v8703_v5 }
 0x88a   : > { %6469 = vmatmul.mubr.msk.f32.gmra.mxu1 %vm1475_vm1, %v8701_v46  ;;  %v9733_v46 = vld [vmem:[#allocation22_spill] sm:$0xff] }
 0x88b   : > { %6471 = vmatprep.mubr.msk.f32.mxu1 %vm1475_vm1, %v8707_v26  ;;  %v9734_v26 = vld [vmem:[#allocation41_spill] sm:$0xff] }
 0x88e   : > { %6472 = vmatmul.mubr.msk.f32.gmra.mxu1 %vm1475_vm1, %v9728_v59 }
 0x88f   : > { %6474 = vmatprep.mubr.msk.f32.mxu1 %vm1475_vm1, %v9729_v33 }
 0x892   : > { %6475 = vmatmul.mubr.msk.f32.gmra.mxu1 %vm1475_vm1, %v9730_v22 }
 0x893   : > { %6477 = vmatprep.mubr.msk.f32.mxu1 %vm1475_vm1, %v9731_v31 }
 0x896   : > { %6478 = vmatmul.mubr.msk.f32.gmra.mxu1 %vm1475_vm1, %v9732_v27  ;;  %v9753_v27 = vld [vmem:[#allocation35_spill] sm:$0xff] }
 0x897   : > { %6480 = vmatprep.mubr.msk.f32.mxu1 %vm1475_vm1, %v8719_v41 }
 0x89a   : > { %6481 = vmatmul.mubr.msk.f32.gmra.mxu1 %vm1475_vm1, %v9733_v46 }
 0x89b   : > { %6483 = vmatprep.mubr.msk.f32.mxu1 %vm1475_vm1, %v8723_v17 }
 0x89e   : > { %6484 = vmatmul.mubr.msk.f32.gmra.mxu1 %vm1475_vm1, %v8721_v1 }
 0x89f   : > { %6486 = vmatprep.mubr.msk.f32.mxu1 %vm1475_vm1, %v8727_v39 }
 0x8a2   : > { %6487 = vmatmul.mubr.msk.f32.gmra.mxu1 %vm1475_vm1, %v9734_v26  ;;  %v9754_v26 = vld [vmem:[#allocation36_spill] sm:$0xff] }
 0x8b4   : > { %v8935_v5 = vpop.f32.mrf.mxu1 }
 0x8b6   : > { %v8937_v25 = vpop.f32.mrf.mxu1 }
 0x8ea   : > { %v8939_v41 = vpop.f32.mrf.mxu1 }
 0x8ec   : > { %v8941_v44 = vpop.f32.mrf.mxu1 }
 0x8ee   : > { %v8943_v62 = vpop.f32.mrf.mxu1 }
 0x8f0   : > { %v8945_v17 = vpop.f32.mrf.mxu1 }
 0x8f2   : > { %v8947_v55 = vpop.f32.mrf.mxu1 }
 0x8f4   : > { %v8949_v1 = vpop.f32.mrf.mxu1 }
 0x8f6   : > { %v8951_v39 = vpop.f32.mrf.mxu1 }
 0x8f7   : > { %9735 = vst [vmem:[#allocation23_spill] sm:$0xff] %v8951_v39 }
 0x8f8   : > { %v8953_v2 = vpop.f32.mrf.mxu1 }
 0x8f9   : > { %9736 = vst [vmem:[#allocation24_spill] sm:$0xff] %v8953_v2 }
 0x8fa   : > { %v8955_v3 = vpop.f32.mrf.mxu1 }
 0x8fb   : > { %9737 = vst [vmem:[#allocation18_spill] sm:$0xff] %v8955_v3 }
 0x8fc   : > { %v8957_v51 = vpop.f32.mrf.mxu1 }
 0x8fd   : > { %9738 = vst [vmem:[#allocation20_spill] sm:$0xff] %v8957_v51 }
 0x8fe   : > { %v8959_v9 = vpop.f32.mrf.mxu1 }
 0x8ff   : > { %9739 = vst [vmem:[#allocation19_spill] sm:$0xff] %v8959_v9 }
 0x900   : > { %v8961_v36 = vpop.f32.mrf.mxu1 }
 0x901   : > { %9740 = vst [vmem:[#allocation42_spill] sm:$0xff] %v8961_v36 }
 0x902   : > { %v8963_v58 = vpop.f32.mrf.mxu1 }
 0x903   : > { %9741 = vst [vmem:[#allocation21_spill] sm:$0xff] %v8963_v58 }
 0x904   : > { %v8965_v54 = vpop.f32.mrf.mxu1 }
 0x905   : > { %9742 = vst [vmem:[#allocation22_spill] sm:$0xff] %v8965_v54 }
 0x906   : > { %v6329_v43 = vpop.f32.mrf.mxu1 }
 0x907   : > { %v3654_v42 = vmul.f32 0.35355338, %v6329_v43 }
 0x908   : > { %v3574_v12 = vpop.f32.mrf.mxu1 }
 0x909   : > { %v8968_v56 = vadd.f32 %v3654_v42, %v9743_v38  ;;  %v3653_v40 = vmul.f32 0.35355338, %v3574_v12 }
 0x90a   : > { %v6332_v50 = vpop.f32.mrf.mxu1 }
 0x90b   : > { %v8971_v48 = vadd.f32 %v3653_v40, %v9744_v57  ;;  %v3656_v60 = vmul.f32 0.35355338, %v6332_v50  ;;  %3687 = vmax.xlane.f32.xlu0 %v8968_v56 }
 0x90c   : > { %v3584_v16 = vpop.f32.mrf.mxu1 }
 0x90d   : > { %v3655_v28 = vmul.f32 0.35355338, %v3584_v16  ;;  %3685 = vmax.xlane.f32.xlu1 %v8971_v48  ;;  %v8976_v53 = vadd.f32 %v3656_v60, %v9745_v7  ;;  %v9755_v60 = vld [vmem:[#allocation37_spill] sm:$0xff] }
 0x90e   : > { %v6335_v13 = vpop.f32.mrf.mxu1 }
 0x90f   : > { %v8979_v32 = vadd.f32 %v3655_v28, %v9746_v18  ;;  %v3658_v52 = vmul.f32 0.35355338, %v6335_v13  ;;  %v9756_v28 = vld [vmem:[#allocation38_spill] sm:$0xff] }
 0x910   : > { %v3594_v19 = vpop.f32.mrf.mxu1 }
 0x911   : > { %v3657_v23 = vmul.f32 0.35355338, %v3594_v19  ;;  %3691 = vmax.xlane.f32.xlu1 %v8976_v53  ;;  %3689 = vmax.xlane.f32.xlu0 %v8979_v32  ;;  %v8984_v24 = vadd.f32 %v3658_v52, %v9747_v61 }
 0x912   : > { %v6338_v29 = vpop.f32.mrf.mxu1 }
 0x913   : > { %v8987_v21 = vadd.f32 %v3657_v23, %v9748_v49  ;;  %v3660_v0 = vmul.f32 0.35355338, %v6338_v29  ;;  %v9757_v29 = vld [vmem:[#allocation39_spill] sm:$0xff] }
 0x914   : > { %v3604_v20 = vpop.f32.mrf.mxu1 }
 0x915   : > { %v3659_v30 = vmul.f32 0.35355338, %v3604_v20  ;;  %3695 = vmax.xlane.f32.xlu1 %v8984_v24  ;;  %3693 = vmax.xlane.f32.xlu0 %v8987_v21  ;;  %v8992_v63 = vadd.f32 %v3660_v0, %v9749_v34  ;;  %v9758_v20 = vld [vmem:[#allocation40_spill] sm:$0xff] }
 0x916   : > { %v6341_v45 = vpop.f32.mrf.mxu1 }
 0x917   : > { %v8995_v47 = vadd.f32 %v3659_v30, %v9750_v14  ;;  %v3662_v8 = vmul.f32 0.35355338, %v6341_v45  ;;  %v9759_v45 = vld [vmem:[#allocation7_spill] sm:$0xff] }
 0x918   : > { %v3614_v15 = vpop.f32.mrf.mxu1 }
 0x919   : > { %v3661_v35 = vmul.f32 0.35355338, %v3614_v15  ;;  %3699 = vmax.xlane.f32.xlu1 %v8992_v63  ;;  %3697 = vmax.xlane.f32.xlu0 %v8995_v47  ;;  %v9000_v6 = vadd.f32 %v3662_v8, %v9751_v10  ;;  %v9760_v8 = vld [vmem:[#allocation5_spill] sm:$0xff]  ;;  %v9761_v15 = vld [vmem:[#allocation6_spill] sm:$0xff] }
 0x91a   : > { %v6344_v4 = vpop.f32.mrf.mxu1 }
 0x91b   : > { %v9003_v11 = vadd.f32 %v3661_v35, %v9752_v37  ;;  %v3664_v59 = vmul.f32 0.35355338, %v6344_v4  ;;  %v9762_v35 = vld [vmem:[#allocation3_spill] sm:$0xff]  ;;  %v9763_v4 = vld [vmem:[#allocation4_spill] sm:$0xff] }
 0x91c   : > { %v3624_v33 = vpop.f32.mrf.mxu1 }
 0x91d   : > { %v3663_v22 = vmul.f32 0.35355338, %v3624_v33  ;;  %3703 = vmax.xlane.f32.xlu1 %v9000_v6  ;;  %3701 = vmax.xlane.f32.xlu0 %v9003_v11  ;;  %v9008_v46 = vadd.f32 %v3664_v59, %v9753_v27  ;;  %v9764_v59 = vld [vmem:[#allocation2_spill] sm:$0xff] }
 0x91e   : > { %v6347_v31 = vpop.f32.mrf.mxu1 }
 0x91f   : > { %v9011_v43 = vadd.f32 %v3663_v22, %v9754_v26  ;;  %v3666_v42 = vmul.f32 0.35355338, %v6347_v31 }
 0x920   : > { %v3634_v12 = vpop.f32.mrf.mxu1 }
 0x921   : > { %v3665_v40 = vmul.f32 0.35355338, %v3634_v12  ;;  %3707 = vmax.xlane.f32.xlu1 %v9008_v46  ;;  %3705 = vmax.xlane.f32.xlu0 %v9011_v43  ;;  %v9016_v16 = vadd.f32 %v3666_v42, %v9755_v60 }
 0x922   : > { %v6350_v50 = vpop.f32.mrf.mxu1 }
 0x923   : > { %v9019_v13 = vadd.f32 %v3665_v40, %v9756_v28  ;;  %v3668_v52 = vmul.f32 0.35355338, %v6350_v50 }
 0x924   : > { %v3644_v19 = vpop.f32.mrf.mxu1 }
 0x925   : > { %v3667_v23 = vmul.f32 0.35355338, %v3644_v19  ;;  %3711 = vmax.xlane.f32.xlu1 %v9016_v16  ;;  %3709 = vmax.xlane.f32.xlu0 %v9019_v13  ;;  %v9024_v0 = vadd.f32 %v3668_v52, %v9757_v29 }
 0x927   : > { %v9027_v30 = vadd.f32 %v3667_v23, %v9758_v20 }
 0x929   : > { %3715 = vmax.xlane.f32.xlu1 %v9024_v0  ;;  %3713 = vmax.xlane.f32.xlu0 %v9027_v30 }
 0x93a   : > { %3853 = vrot.lane.b32.xlu1 %v9759_v45, %s6975_s18 }
 0x93e   : > { %3849 = vrot.lane.b32.xlu1 %v9760_v8, %s6975_s18 }
 0x93f   : > { %3855 = vrot.lane.b32.xlu0 %v9761_v15, %s6975_s18 }
 0x942   : > { %3845 = vrot.lane.b32.xlu1 %v9762_v35, %s6975_s18 }
 0x943   : > { %3851 = vrot.lane.b32.xlu0 %v9763_v4, %s6975_s18 }
 0x947   : > { %3847 = vrot.lane.b32.xlu0 %v9764_v59, %s6975_s18 }
 0x994   : > { %v3688_v33 = vpop.xlane.xlu0 %3687 }
 0x995   : > { %v3718_v22 = vsub.f32 %v8968_v56, %v3688_v33 }
 0x996   : > { %v3686_v31 = vpop.xlane.xlu1 %3685 }
 0x997   : > { %v3735_v42 = vmul.f32 1.442695, %v3718_v22  ;;  %v3717_v12 = vsub.f32 %v8971_v48, %v3686_v31  ;;  %v9049_v22 = vpop.f32.mrf.mxu1 }
 0x999   : > { %6802 = vpow2.f32 %v3735_v42  ;;  %v3733_v40 = vmul.f32 1.442695, %v3717_v12 }
 0x99a   : > { %v3692_v50 = vpop.xlane.xlu1 %3691  ;;  %v3690_v52 = vpop.xlane.xlu0 %3689 }
 0x99b   : > { %6804 = vpow2.f32 %v3733_v40  ;;  %v3720_v19 = vsub.f32 %v8976_v53, %v3692_v50  ;;  %v3719_v23 = vsub.f32 %v8979_v32, %v3690_v52  ;;  %v9053_v40 = vpop.f32.mrf.mxu1 }
 0x99d   : > { %v3739_v54 = vmul.f32 1.442695, %v3720_v19  ;;  %v3737_v58 = vmul.f32 1.442695, %v3719_v23 }
 0x99e   : > { %v3696_v36 = vpop.xlane.xlu1 %3695  ;;  %v3694_v9 = vpop.xlane.xlu0 %3693 }
 0x99f   : > { %6806 = vpow2.f32 %v3739_v54  ;;  %v3722_v56 = vsub.f32 %v8984_v24, %v3696_v36  ;;  %v3721_v33 = vsub.f32 %v8987_v21, %v3694_v9 }
 0x9a0   : > { %6808 = vpow2.f32 %v3737_v58 }
 0x9a1   : > { %v3743_v48 = vmul.f32 1.442695, %v3722_v56  ;;  %v3741_v31 = vmul.f32 1.442695, %v3721_v33 }
 0x9a2   : > { %v3700_v42 = vpop.xlane.xlu1 %3699  ;;  %v3698_v12 = vpop.xlane.xlu0 %3697 }
 0x9a3   : > { %6810 = vpow2.f32 %v3743_v48  ;;  %v3724_v53 = vsub.f32 %v8992_v63, %v3700_v42  ;;  %v3723_v32 = vsub.f32 %v8995_v47, %v3698_v12  ;;  %v9062_v63 = vpop.f32.mrf.mxu1 }
 0x9a4   : > { %6812 = vpow2.f32 %v3741_v31 }
 0x9a5   : > { %v3747_v54 = vmul.f32 1.442695, %v3724_v53  ;;  %v3745_v50 = vmul.f32 1.442695, %v3723_v32 }
 0x9a6   : > { %v9055_v36 = vpop.eup %6802  ;;  %v3704_v9 = vpop.xlane.xlu1 %3703 }
 0x9a7   : > { %v3702_v24 = vpop.xlane.xlu0 %3701  ;;  %6814 = vpow2.f32 %v3747_v54  ;;  %v3726_v58 = vsub.f32 %v9000_v6, %v3704_v9  ;;  %3767 = vadd.xlane.f32.xlu0 %v9055_v36 }
 0x9a8   : > { %v3725_v21 = vsub.f32 %v9003_v11, %v3702_v24  ;;  %v9060_v52 = vpop.eup %6804  ;;  %6816 = vpow2.f32 %v3745_v50  ;;  %v9069_v11 = vpop.f32.mrf.mxu1 }
 0x9a9   : > { %v3751_v47 = vmul.f32 1.442695, %v3726_v58  ;;  %3765 = vadd.xlane.f32.xlu1 %v9060_v52  ;;  %v4523_v51 = vmul.f32 0.35355338, %v9069_v11 }
 0x9aa   : > { %v3749_v19 = vmul.f32 1.442695, %v3725_v21  ;;  %v3708_v23 = vpop.xlane.xlu1 %3707  ;;  %v9079_v50 = vpop.f32.mrf.mxu1 }
 0x9ab   : > { %v3706_v56 = vpop.xlane.xlu0 %3705  ;;  %6818 = vpow2.f32 %v3751_v47  ;;  %v3728_v33 = vsub.f32 %v9008_v46, %v3708_v23 }
 0x9ac   : > { %v3727_v6 = vsub.f32 %v9011_v43, %v3706_v56  ;;  %v9067_v48 = vpop.eup %6806  ;;  %6820 = vpow2.f32 %v3749_v19  ;;  %v4462_v23 = vpop.f32.mrf.mxu1 }
 0x9ad   : > { %v9071_v31 = vpop.eup %6808  ;;  %v3755_v42 = vmul.f32 1.442695, %v3728_v33  ;;  %3771 = vadd.xlane.f32.xlu0 %v9067_v48  ;;  %v4525_v2 = vmul.f32 0.35355338, %v4462_v23 }
 0x9ae   : > { %v3753_v12 = vmul.f32 1.442695, %v3727_v6  ;;  %3769 = vadd.xlane.f32.xlu1 %v9071_v31  ;;  %v3712_v53 = vpop.xlane.xlu1 %3711 }
 0x9af   : > { %v3710_v32 = vpop.xlane.xlu0 %3709  ;;  %6822 = vpow2.f32 %v3755_v42  ;;  %v3730_v46 = vsub.f32 %v9016_v16, %v3712_v53 }
 0x9b0   : > { %v3729_v43 = vsub.f32 %v9019_v13, %v3710_v32  ;;  %v9077_v54 = vpop.eup %6810  ;;  %6824 = vpow2.f32 %v3753_v12 }
 0x9b1   : > { %v9081_v9 = vpop.eup %6812  ;;  %v3759_v24 = vmul.f32 1.442695, %v3730_v46  ;;  %3775 = vadd.xlane.f32.xlu0 %v9077_v54 }
 0x9b2   : > { %v3757_v58 = vmul.f32 1.442695, %v3729_v43  ;;  %3773 = vadd.xlane.f32.xlu1 %v9081_v9  ;;  %v3716_v21 = vpop.xlane.xlu1 %3715 }
 0x9b3   : > { %v3714_v47 = vpop.xlane.xlu0 %3713  ;;  %6826 = vpow2.f32 %v3759_v24  ;;  %v3732_v16 = vsub.f32 %v9024_v0, %v3716_v21  ;;  %v6476_v0 = vpop.f32.mrf.mxu1 }
 0x9b4   : > { %v3731_v13 = vsub.f32 %v9027_v30, %v3714_v47  ;;  %v9087_v19 = vpop.eup %6814  ;;  %6828 = vpow2.f32 %v3757_v58 }
 0x9b5   : > { %v9089_v56 = vpop.eup %6816  ;;  %v3763_v33 = vmul.f32 1.442695, %v3732_v16  ;;  %3779 = vadd.xlane.f32.xlu0 %v9087_v19  ;;  %v4472_v24 = vpop.f32.mrf.mxu1 }
 0x9b6   : > { %v3761_v6 = vmul.f32 1.442695, %v3731_v13  ;;  %3777 = vadd.xlane.f32.xlu1 %v9089_v56  ;;  %v3854_v42 = vpop.permute.xlu1 %3853 }
 0x9b7   : > { %v3856_v12 = vpop.permute.xlu0 %3855  ;;  %6830 = vpow2.f32 %v3763_v33  ;;  %v6479_v16 = vpop.f32.mrf.mxu1 }
 0x9b8   : > { %6371 = vmatprep.subr.mxu0 %v3856_v12  ;;  %v9093_v53 = vpop.eup %6818  ;;  %6832 = vpow2.f32 %v3761_v6  ;;  %v4521_v6 = vmul.f32 0.35355338, %v9053_v40  ;;  %v4524_v40 = vmul.f32 0.35355338, %v9062_v63  ;;  %v4527_v63 = vmul.f32 0.35355338, %v4472_v24 }
 0x9b9   : > { %6372 = vmatpush3.msra.mxu0 %v3856_v12  ;;  %v9095_v30 = vpop.eup %6820  ;;  %3783 = vadd.xlane.f32.xlu0 %v9093_v53  ;;  %v4522_v12 = vmul.f32 0.35355338, %v9049_v22  ;;  %v9130_v22 = vadd.f32 %v4523_v51, %v9746_v18  ;;  %v4528_v51 = vmul.f32 0.35355338, %v6476_v0 }
 0x9ba   : > { %6373 = vmatprep.subr.mxu0 %v3854_v42  ;;  %3781 = vadd.xlane.f32.xlu1 %v9095_v30  ;;  %v3850_v32 = vpop.permute.xlu1 %3849  ;;  %v9133_v39 = vadd.f32 %v4524_v40, %v9745_v7  ;;  %v9147_v7 = vadd.f32 %v4527_v63, %v9750_v14  ;;  %v9766_v63 = vld [vmem:[#allocation16_spill] sm:$0xff] }
 0x9bb   : > { %6374 = vmatpush3.msra.mxu0 %v3854_v42  ;;  %v3852_v46 = vpop.permute.xlu0 %3851  ;;  %v9150_v23 = vadd.f32 %v4528_v51, %v9749_v34  ;;  %v9767_v51 = vld [vmem:[#allocation15_spill] sm:$0xff] }
 0x9bc   : > { %6375 = vmatprep.subr.mxu0 %v3852_v46  ;;  %v9099_v43 = vpop.eup %6822 }
 0x9bd   : > { %6376 = vmatpush3.msra.mxu0 %v3852_v46  ;;  %v9101_v58 = vpop.eup %6824  ;;  %3787 = vadd.xlane.f32.xlu0 %v9099_v43 }
 0x9be   : > { %6377 = vmatprep.subr.mxu0 %v3850_v32  ;;  %3785 = vadd.xlane.f32.xlu1 %v9101_v58  ;;  %v3846_v13 = vpop.permute.xlu1 %3845 }
 0x9bf   : > { %6378 = vmatpush3.msra.mxu0 %v3850_v32  ;;  %v3848_v21 = vpop.permute.xlu0 %3847  ;;  %v4482_v32 = vpop.f32.mrf.mxu1 }
 0x9c0   : > { %6379 = vmatprep.subr.mxu0 %v3848_v21  ;;  %v9105_v47 = vpop.eup %6826 }
 0x9c1   : > { %6380 = vmatpush3.msra.mxu0 %v3848_v21  ;;  %v9107_v33 = vpop.eup %6828  ;;  %3791 = vadd.xlane.f32.xlu0 %v9105_v47  ;;  %v9120_v21 = vadd.f32 %v4521_v6, %v9744_v57  ;;  %v6482_v3 = vpop.f32.mrf.mxu1  ;;  %v4526_v57 = vmul.f32 0.35355338, %v9079_v50  ;;  %v4529_v50 = vmul.f32 0.35355338, %v4482_v32 }
 0x9c2   : > { %6381 = vmatprep.subr.mxu0 %v3846_v13  ;;  %3789 = vadd.xlane.f32.xlu1 %v9107_v33  ;;  %v4532_v24 = vmul.f32 0.35355338, %v6482_v3 }
 0x9c3   : > { %6382 = vmatpush3.msra.mxu0 %v3846_v13  ;;  %v9124_v13 = vadd.f32 %v4522_v12, %v9743_v38  ;;  %v4492_v11 = vpop.f32.mrf.mxu1  ;;  %v9139_v38 = vadd.f32 %v4525_v2, %v9748_v49  ;;  %v9142_v6 = vadd.f32 %v4526_v57, %v9747_v61  ;;  %v4530_v12 = vmul.f32 0.35355338, %v6479_v16 }
 0x9c4   : > { %v9112_v42 = vpop.eup %6830  ;;  %v9155_v61 = vadd.f32 %v4529_v50, %v9752_v37  ;;  %v4531_v49 = vmul.f32 0.35355338, %v4492_v11  ;;  %v9166_v32 = vadd.f32 %v4532_v24, %v9753_v27  ;;  %v9771_v50 = vld [vmem:[#allocation11_spill] sm:$0xff] }
 0x9c5   : > { %v9115_v46 = vpop.eup %6832  ;;  %3795 = vadd.xlane.f32.xlu0 %v9112_v42  ;;  %v6485_v18 = vpop.f32.mrf.mxu1  ;;  %v9158_v0 = vadd.f32 %v4530_v12, %v9751_v10  ;;  %v9772_v12 = vld [vmem:[#allocation9_spill] sm:$0xff] }
 0x9c6   : > { %3793 = vadd.xlane.f32.xlu1 %v9115_v46  ;;  %v9163_v34 = vadd.f32 %v4531_v49, %v9754_v26  ;;  %v4534_v40 = vmul.f32 0.35355338, %v6485_v18  ;;  %v9770_v18 = vld [vmem:[#allocation12_spill] sm:$0xff] }
 0x9c7   : > { %v4502_v2 = vpop.f32.mrf.mxu1  ;;  %v9774_v49 = vld [vmem:[#allocation8_spill] sm:$0xff] }
 0x9c8   : > { %v4533_v16 = vmul.f32 0.35355338, %v4502_v2  ;;  %v9174_v57 = vadd.f32 %v4534_v40, %v9755_v60  ;;  %v4038_v60 = vld [vmem:[%s9569_s9 + $0x10] sm:$0xff]  ;;  %v9773_v2 = vld [vmem:[#allocation10_spill] sm:$0xff] }
 0x9c9   : > { %4553 = vmax.xlane.f32.xlu0 %v9120_v21  ;;  %v6488_v14 = vpop.f32.mrf.mxu1  ;;  %6407 = vmatprep.subr.mxu0 %v4038_v60 }
 0x9ca   : > { %4555 = vmax.xlane.f32.xlu1 %v9124_v13  ;;  %v9171_v3 = vadd.f32 %v4533_v16, %v9756_v28  ;;  %v4536_v11 = vmul.f32 0.35355338, %v6488_v14  ;;  %v9765_v28 = vld [vmem:[#allocation17_spill] sm:$0xff] }
 0x9cb   : > { %v4512_v37 = vpop.f32.mrf.mxu1 }
 0x9cc   : > { %v4535_v10 = vmul.f32 0.35355338, %v4512_v37  ;;  %v9182_v26 = vadd.f32 %v4536_v11, %v9757_v29  ;;  %v9769_v29 = vld [vmem:[#allocation14_spill] sm:$0xff] }
 0x9cd   : > { %4557 = vmax.xlane.f32.xlu0 %v9130_v22 }
 0x9ce   : > { %4559 = vmax.xlane.f32.xlu1 %v9133_v39  ;;  %v9179_v27 = vadd.f32 %v4535_v10, %v9758_v20  ;;  %v9768_v20 = vld [vmem:[#allocation13_spill] sm:$0xff] }
 0x9d1   : > { %4561 = vmax.xlane.f32.xlu0 %v9139_v38 }
 0x9d2   : > { %4563 = vmax.xlane.f32.xlu1 %v9142_v6 }
 0x9d5   : > { %4565 = vmax.xlane.f32.xlu0 %v9147_v7 }
 0x9d6   : > { %4567 = vmax.xlane.f32.xlu1 %v9150_v23 }
 0x9d9   : > { %4569 = vmax.xlane.f32.xlu0 %v9155_v61 }
 0x9da   : > { %4571 = vmax.xlane.f32.xlu1 %v9158_v0 }
 0x9dd   : > { %4573 = vmax.xlane.f32.xlu0 %v9163_v34 }
 0x9de   : > { %4575 = vmax.xlane.f32.xlu1 %v9166_v32 }
 0x9e1   : > { %4577 = vmax.xlane.f32.xlu0 %v9171_v3 }
 0x9e2   : > { %4579 = vmax.xlane.f32.xlu1 %v9174_v57 }
 0x9e5   : > { %4581 = vmax.xlane.f32.xlu0 %v9179_v27 }
 0x9e6   : > { %4583 = vmax.xlane.f32.xlu1 %v9182_v26 }
 0x9f7   : > { %4741 = vrot.lane.b32.xlu1 %v9765_v28, %s6976_s21 }
 0x9fb   : > { %4737 = vrot.lane.b32.xlu1 %v9766_v63, %s6976_s21  ;;  %4743 = vrot.lane.b32.xlu0 %v9767_v51, %s6976_s21 }
 0x9ff   : > { %4733 = vrot.lane.b32.xlu1 %v9768_v20, %s6976_s21  ;;  %4739 = vrot.lane.b32.xlu0 %v9769_v29, %s6976_s21 }
 0xa03   : > { %4729 = vrot.lane.b32.xlu1 %v9770_v18, %s6976_s21  ;;  %4735 = vrot.lane.b32.xlu0 %v9771_v50, %s6976_s21 }
 0xa07   : > { %4725 = vrot.lane.b32.xlu1 %v9772_v12, %s6976_s21  ;;  %4731 = vrot.lane.b32.xlu0 %v9773_v2, %s6976_s21 }
 0xa0b   : > { %4721 = vrot.lane.b32.xlu1 %v9759_v45, %s6976_s21  ;;  %4727 = vrot.lane.b32.xlu0 %v9774_v49, %s6976_s21 }
 0xa0f   : > { %4717 = vrot.lane.b32.xlu1 %v9760_v8, %s6976_s21  ;;  %4723 = vrot.lane.b32.xlu0 %v9761_v15, %s6976_s21 }
 0xa13   : > { %4713 = vrot.lane.b32.xlu1 %v9762_v35, %s6976_s21  ;;  %4719 = vrot.lane.b32.xlu0 %v9763_v4, %s6976_s21 }
 0xa17   : > { %4715 = vrot.lane.b32.xlu0 %v9764_v59, %s6976_s21 }
 0xa30   : > { %v3768_v24 = vpop.xlane.xlu0 %3767 }
 0xa31   : > { %6834 = vrcp.f32 %v3768_v24 }
 0xa32   : > { %v3766_v14 = vpop.xlane.xlu1 %3765 }
 0xa33   : > { %6836 = vrcp.f32 %v3766_v14 }
 0xa36   : > { %v3772_v16 = vpop.xlane.xlu0 %3771 }
 0xa37   : > { %v3770_v40 = vpop.xlane.xlu1 %3769  ;;  %6838 = vrcp.f32 %v3772_v16 }
 0xa38   : > { %6840 = vrcp.f32 %v3770_v40 }
 0xa3a   : > { %v3776_v45 = vpop.xlane.xlu0 %3775 }
 0xa3b   : > { %v3774_v37 = vpop.xlane.xlu1 %3773  ;;  %6842 = vrcp.f32 %v3776_v45 }
 0xa3c   : > { %6844 = vrcp.f32 %v3774_v37 }
 0xa3e   : > { %v3780_v8 = vpop.xlane.xlu0 %3779  ;;  %v6835_v15 = vpop.eup %6834 }
 0xa3f   : > { %v3778_v10 = vpop.xlane.xlu1 %3777  ;;  %6846 = vrcp.f32 %v3780_v8  ;;  %v3830_v11 = vmul.f32 %v6835_v15, %v9055_v36 }
 0xa40   : > { %v6837_v35 = vpop.eup %6836  ;;  %6848 = vrcp.f32 %v3778_v10 }
 0xa41   : > { %v3829_v4 = vmul.f32 %v6837_v35, %v9060_v52 }
 0xa42   : > { %v3784_v59 = vpop.xlane.xlu0 %3783 }
 0xa43   : > { %v3782_v28 = vpop.xlane.xlu1 %3781  ;;  %6850 = vrcp.f32 %v3784_v59  ;;  %6383 = vmatprep.mubr.f32.mxu0 %v3829_v4 }
 0xa44   : > { %v6839_v63 = vpop.eup %6838  ;;  %6852 = vrcp.f32 %v3782_v28  ;;  %6384 = vmatmul.mubr.f32.vlgmr.msra.gmra.mxu0 %v3830_v11 }
 0xa45   : > { %v6841_v51 = vpop.eup %6840  ;;  %v3832_v20 = vmul.f32 %v6839_v63, %v9067_v48  ;;  %6408 = vmatpush3.msra.mxu0 %v4038_v60 }
 0xa46   : > { %v3788_v29 = vpop.xlane.xlu0 %3787  ;;  %v3831_v18 = vmul.f32 %v6841_v51, %v9071_v31 }
 0xa47   : > { %v3786_v50 = vpop.xlane.xlu1 %3785  ;;  %6854 = vrcp.f32 %v3788_v29 }
 0xa48   : > { %v6843_v12 = vpop.eup %6842  ;;  %6856 = vrcp.f32 %v3786_v50  ;;  %6386 = vmatprep.mubr.f32.mxu0 %v3831_v18 }
 0xa49   : > { %v6845_v52 = vpop.eup %6844  ;;  %6387 = vmatmul.mubr.f32.gmra.mxu0 %v3832_v20  ;;  %v3834_v36 = vmul.f32 %v6843_v12, %v9077_v54 }
 0xa4a   : > { %v3792_v2 = vpop.xlane.xlu0 %3791  ;;  %v3833_v49 = vmul.f32 %v6845_v52, %v9081_v9 }
 0xa4b   : > { %v3790_v24 = vpop.xlane.xlu1 %3789  ;;  %6858 = vrcp.f32 %v3792_v2 }
 0xa4c   : > { %v6847_v14 = vpop.eup %6846  ;;  %6860 = vrcp.f32 %v3790_v24  ;;  %6389 = vmatprep.mubr.f32.mxu0 %v3833_v49 }
 0xa4d   : > { %v6849_v48 = vpop.eup %6848  ;;  %6390 = vmatmul.mubr.f32.gmra.mxu0 %v3834_v36  ;;  %v3836_v31 = vmul.f32 %v6847_v14, %v9087_v19 }
 0xa4e   : > { %v3796_v60 = vpop.xlane.xlu0 %3795  ;;  %v3835_v16 = vmul.f32 %v6849_v48, %v9089_v56 }
 0xa4f   : > { %v3794_v40 = vpop.xlane.xlu1 %3793  ;;  %6862 = vrcp.f32 %v3796_v60 }
 0xa50   : > { %v6851_v45 = vpop.eup %6850  ;;  %6864 = vrcp.f32 %v3794_v40  ;;  %6392 = vmatprep.mubr.f32.mxu0 %v3835_v16 }
 0xa51   : > { %v6853_v54 = vpop.eup %6852  ;;  %6393 = vmatmul.mubr.f32.gmra.mxu0 %v3836_v31  ;;  %v3838_v9 = vmul.f32 %v6851_v45, %v9093_v53 }
 0xa52   : > { %v4554_v37 = vpop.xlane.xlu0 %4553  ;;  %v3837_v8 = vmul.f32 %v6853_v54, %v9095_v30 }
 0xa53   : > { %v4556_v15 = vpop.xlane.xlu1 %4555  ;;  %v4585_v10 = vsub.f32 %v9120_v21, %v4554_v37 }
 0xa54   : > { %v6855_v35 = vpop.eup %6854  ;;  %v4586_v19 = vsub.f32 %v9124_v13, %v4556_v15  ;;  %6395 = vmatprep.mubr.f32.mxu0 %v3837_v8 }
 0xa55   : > { %v6857_v56 = vpop.eup %6856  ;;  %v4601_v4 = vmul.f32 1.442695, %v4585_v10  ;;  %6396 = vmatmul.mubr.f32.gmra.mxu0 %v3838_v9  ;;  %v3840_v59 = vmul.f32 %v6855_v35, %v9099_v43 }
 0xa56   : > { %v4603_v11 = vmul.f32 1.442695, %v4586_v19  ;;  %v4558_v28 = vpop.xlane.xlu0 %4557  ;;  %v3839_v63 = vmul.f32 %v6857_v56, %v9101_v58 }
 0xa57   : > { %6866 = vpow2.f32 %v4601_v4  ;;  %v4560_v53 = vpop.xlane.xlu1 %4559  ;;  %v4587_v30 = vsub.f32 %v9130_v22, %v4558_v28 }
 0xa58   : > { %v6859_v51 = vpop.eup %6858  ;;  %6868 = vpow2.f32 %v4603_v11  ;;  %v4588_v21 = vsub.f32 %v9133_v39, %v4560_v53  ;;  %6398 = vmatprep.mubr.f32.mxu0 %v3839_v63 }
 0xa59   : > { %v6861_v13 = vpop.eup %6860  ;;  %v4605_v20 = vmul.f32 1.442695, %v4587_v30  ;;  %6399 = vmatmul.mubr.f32.gmra.mxu0 %v3840_v59  ;;  %v3842_v29 = vmul.f32 %v6859_v51, %v9105_v47 }
 0xa5a   : > { %v4607_v18 = vmul.f32 1.442695, %v4588_v21  ;;  %v4562_v43 = vpop.xlane.xlu0 %4561  ;;  %v3841_v50 = vmul.f32 %v6861_v13, %v9107_v33 }
 0xa5b   : > { %6870 = vpow2.f32 %v4605_v20  ;;  %v4564_v58 = vpop.xlane.xlu1 %4563  ;;  %v4589_v12 = vsub.f32 %v9139_v38, %v4562_v43 }
 0xa5c   : > { %v6863_v52 = vpop.eup %6862  ;;  %6872 = vpow2.f32 %v4607_v18  ;;  %v4590_v22 = vsub.f32 %v9142_v6, %v4564_v58  ;;  %6401 = vmatprep.mubr.f32.mxu0 %v3841_v50  ;;  %v9285_v58 = vpop.f32.mrf.mxu0 }
 0xa5d   : > { %v6865_v39 = vpop.eup %6864  ;;  %v4609_v36 = vmul.f32 1.442695, %v4589_v12  ;;  %6402 = vmatmul.mubr.f32.gmra.mxu0 %v3842_v29  ;;  %v3844_v2 = vmul.f32 %v6863_v52, %v9112_v42 }
 0xa5e   : > { %v4611_v49 = vmul.f32 1.442695, %v4590_v22  ;;  %v4566_v47 = vpop.xlane.xlu0 %4565  ;;  %v3843_v24 = vmul.f32 %v6865_v39, %v9115_v46  ;;  %v9287_v12 = vpop.f32.mrf.mxu0 }
 0xa5f   : > { %6874 = vpow2.f32 %v4609_v36  ;;  %v4568_v33 = vpop.xlane.xlu1 %4567  ;;  %v4591_v14 = vsub.f32 %v9147_v7, %v4566_v47 }
 0xa60   : > { %6876 = vpow2.f32 %v4611_v49  ;;  %v4592_v38 = vsub.f32 %v9150_v23, %v4568_v33  ;;  %6404 = vmatprep.mubr.f32.mxu0 %v3843_v24  ;;  %v9289_v52 = vpop.f32.mrf.mxu0 }
 0xa61   : > { %v4613_v48 = vmul.f32 1.442695, %v4591_v14  ;;  %6405 = vmatmul.mubr.f32.gmra.mxu0 %v3844_v2 }
 0xa62   : > { %v4615_v6 = vmul.f32 1.442695, %v4592_v38  ;;  %v4570_v31 = vpop.xlane.xlu0 %4569  ;;  %v9291_v22 = vpop.f32.mrf.mxu0 }
 0xa63   : > { %6878 = vpow2.f32 %v4613_v48  ;;  %v4572_v60 = vpop.xlane.xlu1 %4571  ;;  %v4593_v42 = vsub.f32 %v9155_v61, %v4570_v31 }
 0xa64   : > { %v9230_v16 = vpop.eup %6866  ;;  %6880 = vpow2.f32 %v4615_v6  ;;  %v4594_v46 = vsub.f32 %v9158_v0, %v4572_v60  ;;  %v9293_v36 = vpop.f32.mrf.mxu0 }
 0xa65   : > { %v9233_v40 = vpop.eup %6868  ;;  %v4617_v7 = vmul.f32 1.442695, %v4593_v42  ;;  %4633 = vadd.xlane.f32.xlu1 %v9230_v16 }
 0xa66   : > { %v4619_v23 = vmul.f32 1.442695, %v4594_v46  ;;  %4635 = vadd.xlane.f32.xlu0 %v9233_v40  ;;  %v4574_v45 = vpop.xlane.xlu0 %4573  ;;  %v9295_v49 = vpop.f32.mrf.mxu0 }
 0xa67   : > { %6882 = vpow2.f32 %v4617_v7  ;;  %v4576_v54 = vpop.xlane.xlu1 %4575  ;;  %v4595_v9 = vsub.f32 %v9163_v34, %v4574_v45 }
 0xa68   : > { %v9238_v37 = vpop.eup %6870  ;;  %6884 = vpow2.f32 %v4619_v23  ;;  %v4596_v61 = vsub.f32 %v9166_v32, %v4576_v54  ;;  %v9297_v24 = vpop.f32.mrf.mxu0 }
 0xa69   : > { %v9241_v8 = vpop.eup %6872  ;;  %v4621_v0 = vmul.f32 1.442695, %v4595_v9  ;;  %4637 = vadd.xlane.f32.xlu1 %v9238_v37 }
 0xa6a   : > { %v4623_v15 = vmul.f32 1.442695, %v4596_v61  ;;  %4639 = vadd.xlane.f32.xlu0 %v9241_v8  ;;  %v4578_v10 = vpop.xlane.xlu0 %4577  ;;  %v9299_v14 = vpop.f32.mrf.mxu0 }
 0xa6b   : > { %6886 = vpow2.f32 %v4621_v0  ;;  %v4580_v35 = vpop.xlane.xlu1 %4579  ;;  %v4597_v19 = vsub.f32 %v9171_v3, %v4578_v10 }
 0xa6c   : > { %v9246_v56 = vpop.eup %6874  ;;  %6888 = vpow2.f32 %v4623_v15  ;;  %v4598_v34 = vsub.f32 %v9174_v57, %v4580_v35  ;;  %v9301_v6 = vpop.f32.mrf.mxu0 }
 0xa6d   : > { %v9249_v4 = vpop.eup %6876  ;;  %v4625_v32 = vmul.f32 1.442695, %v4597_v19  ;;  %4641 = vadd.xlane.f32.xlu1 %v9246_v56 }
 0xa6e   : > { %v4627_v59 = vmul.f32 1.442695, %v4598_v34  ;;  %4643 = vadd.xlane.f32.xlu0 %v9249_v4  ;;  %v4582_v11 = vpop.xlane.xlu0 %4581  ;;  %v9303_v60 = vpop.f32.mrf.mxu0 }
 0xa6f   : > { %6890 = vpow2.f32 %v4625_v32  ;;  %v4584_v28 = vpop.xlane.xlu1 %4583  ;;  %v4599_v63 = vsub.f32 %v9179_v27, %v4582_v11 }
 0xa70   : > { %v9254_v53 = vpop.eup %6878  ;;  %6892 = vpow2.f32 %v4627_v59  ;;  %v4600_v3 = vsub.f32 %v9182_v26, %v4584_v28  ;;  %v9307_v46 = vpop.f32.mrf.mxu0 }
 0xa71   : > { %v9257_v30 = vpop.eup %6880  ;;  %v4629_v57 = vmul.f32 1.442695, %v4599_v63  ;;  %4645 = vadd.xlane.f32.xlu1 %v9254_v53 }
 0xa72   : > { %v4631_v51 = vmul.f32 1.442695, %v4600_v3  ;;  %4647 = vadd.xlane.f32.xlu0 %v9257_v30  ;;  %v4744_v21 = vpop.permute.xlu0 %4743  ;;  %v9311_v45 = vpop.f32.mrf.mxu0 }
 0xa73   : > { %6894 = vpow2.f32 %v4629_v57  ;;  %6489 = vmatprep.subr.mxu0 %v4744_v21  ;;  %v4742_v39 = vpop.permute.xlu1 %4741 }
 0xa74   : > { %v9261_v13 = vpop.eup %6882  ;;  %6896 = vpow2.f32 %v4631_v51  ;;  %v9315_v9 = vpop.f32.mrf.mxu0 }
 0xa75   : > { %v9263_v27 = vpop.eup %6884  ;;  %4649 = vadd.xlane.f32.xlu1 %v9261_v13 }
 0xa76   : > { %4651 = vadd.xlane.f32.xlu0 %v9263_v27  ;;  %v4740_v47 = vpop.permute.xlu0 %4739  ;;  %v9319_v0 = vpop.f32.mrf.mxu0 }
 0xa77   : > { %v4738_v2 = vpop.permute.xlu1 %4737  ;;  %9775 = vst [vmem:[#allocation41_spill] sm:$0xff] %v9319_v0 }
 0xa78   : > { %v9267_v26 = vpop.eup %6886  ;;  %v9323_v10 = vpop.f32.mrf.mxu0 }
 0xa79   : > { %v9269_v20 = vpop.eup %6888  ;;  %4653 = vadd.xlane.f32.xlu1 %v9267_v26  ;;  %9776 = vst [vmem:[#allocation25_spill] sm:$0xff] %v9323_v10 }
 0xa7a   : > { %4655 = vadd.xlane.f32.xlu0 %v9269_v20  ;;  %v4736_v38 = vpop.permute.xlu0 %4735  ;;  %v9327_v19 = vpop.f32.mrf.mxu0 }
 0xa7b   : > { %v4734_v33 = vpop.permute.xlu1 %4733  ;;  %9777 = vst [vmem:[#allocation26_spill] sm:$0xff] %v9327_v19 }
 0xa7c   : > { %v9273_v29 = vpop.eup %6890 }
 0xa7d   : > { %v9275_v18 = vpop.eup %6892  ;;  %4657 = vadd.xlane.f32.xlu1 %v9273_v29 }
 0xa7e   : > { %4659 = vadd.xlane.f32.xlu0 %v9275_v18  ;;  %v4732_v31 = vpop.permute.xlu0 %4731 }
 0xa7f   : > { %v4730_v48 = vpop.permute.xlu1 %4729 }
 0xa80   : > { %v9279_v43 = vpop.eup %6894 }
 0xa81   : > { %v9281_v50 = vpop.eup %6896  ;;  %4661 = vadd.xlane.f32.xlu1 %v9279_v43 }
 0xa82   : > { %4663 = vadd.xlane.f32.xlu0 %v9281_v50  ;;  %v4728_v7 = vpop.permute.xlu0 %4727 }
 0xa83   : > { %v9305_v42 = vpop.permute.xlu1 %4725 }
 0xa86   : > { %v9313_v54 = vpop.permute.xlu0 %4723 }
 0xa87   : > { %v9309_v23 = vpop.permute.xlu1 %4721 }
 0xa8a   : > { %v9321_v15 = vpop.permute.xlu0 %4719 }
 0xa8b   : > { %v9317_v61 = vpop.permute.xlu1 %4717 }
 0xa8e   : > { %v9329_v34 = vpop.permute.xlu0 %4715 }
 0xa8f   : > { %v9325_v35 = vpop.permute.xlu1 %4713 }
 0xaee   : > { %v4634_v32 = vpop.xlane.xlu1 %4633 }
 0xaef   : > { %v4636_v11 = vpop.xlane.xlu0 %4635  ;;  %6898 = vrcp.f32 %v4634_v32 }
 0xaf0   : > { %6900 = vrcp.f32 %v4636_v11 }
 0xaf2   : > { %v4638_v63 = vpop.xlane.xlu1 %4637 }
 0xaf3   : > { %v4640_v51 = vpop.xlane.xlu0 %4639  ;;  %6902 = vrcp.f32 %v4638_v63 }
 0xaf4   : > { %6904 = vrcp.f32 %v4640_v51 }
 0xaf6   : > { %v4642_v10 = vpop.xlane.xlu1 %4641 }
 0xaf7   : > { %6906 = vrcp.f32 %v4642_v10 }
 0xb04   : > { %v6385_v59 = vpop.f32.mrf.mxu0 }
 0xb06   : > { %v3959_v28 = vpop.f32.mrf.mxu0 }
 0xb07   : > { %6409 = vmatprep.mubr.msk.f32.mxu0 %vm1475_vm1, %v3959_v28  ;;  %v4646_v28 = vpop.xlane.xlu1 %4645 }
 0xb08   : > { %6410 = vmatmul.mubr.msk.f32.vlgmr.msra.gmra.mxu0 %vm1475_vm1, %v6385_v59 }
 0xb09   : > { %v6388_v3 = vpop.f32.mrf.mxu0  ;;  %6490 = vmatpush3.msra.mxu0 %v4744_v21  ;;  %v4644_v21 = vpop.xlane.xlu0 %4643 }
 0xb0a   : > { %6491 = vmatprep.subr.mxu0 %v4742_v39  ;;  %6908 = vrcp.f32 %v4644_v21 }
 0xb0b   : > { %v3969_v57 = vpop.f32.mrf.mxu0  ;;  %6492 = vmatpush3.msra.mxu0 %v4742_v39  ;;  %6910 = vrcp.f32 %v4646_v28 }
 0xb0c   : > { %6412 = vmatprep.mubr.msk.f32.mxu0 %vm1475_vm1, %v3969_v57  ;;  %6493 = vmatprep.subr.mxu0 %v4740_v47 }
 0xb0d   : > { %v6391_v19 = vpop.f32.mrf.mxu0  ;;  %6413 = vmatmul.mubr.msk.f32.gmra.mxu0 %vm1475_vm1, %v6388_v3 }
 0xb0e   : > { %6494 = vmatpush3.msra.mxu0 %v4740_v47 }
 0xb0f   : > { %6495 = vmatprep.subr.mxu0 %v4738_v2  ;;  %v3979_v0 = vpop.f32.mrf.mxu0 }
 0xb10   : > { %6496 = vmatpush3.msra.mxu0 %v4738_v2  ;;  %6415 = vmatprep.mubr.msk.f32.mxu0 %vm1475_vm1, %v3979_v0  ;;  %v4648_v0 = vpop.xlane.xlu0 %4647 }
 0xb11   : > { %6497 = vmatprep.subr.mxu0 %v4736_v38  ;;  %v6394_v59 = vpop.f32.mrf.mxu0  ;;  %6416 = vmatmul.mubr.msk.f32.gmra.mxu0 %vm1475_vm1, %v6391_v19  ;;  %6912 = vrcp.f32 %v4648_v0 }
 0xb12   : > { %6498 = vmatpush3.msra.mxu0 %v4736_v38 }
 0xb13   : > { %6499 = vmatprep.subr.mxu0 %v4734_v33  ;;  %v3989_v39 = vpop.f32.mrf.mxu0 }
 0xb14   : > { %6500 = vmatpush3.msra.mxu0 %v4734_v33  ;;  %6418 = vmatprep.mubr.msk.f32.mxu0 %vm1475_vm1, %v3989_v39  ;;  %v4650_v33 = vpop.xlane.xlu1 %4649 }
 0xb15   : > { %6501 = vmatprep.subr.mxu0 %v4732_v31  ;;  %v6397_v47 = vpop.f32.mrf.mxu0  ;;  %6419 = vmatmul.mubr.msk.f32.gmra.mxu0 %vm1475_vm1, %v6394_v59  ;;  %6914 = vrcp.f32 %v4650_v33 }
 0xb16   : > { %6502 = vmatpush3.msra.mxu0 %v4732_v31  ;;  %v4652_v31 = vpop.xlane.xlu0 %4651 }
 0xb17   : > { %6503 = vmatprep.subr.mxu0 %v4730_v48  ;;  %v3999_v2 = vpop.f32.mrf.mxu0  ;;  %6916 = vrcp.f32 %v4652_v31 }
 0xb18   : > { %6504 = vmatpush3.msra.mxu0 %v4730_v48  ;;  %6421 = vmatprep.mubr.msk.f32.mxu0 %vm1475_vm1, %v3999_v2  ;;  %v4654_v10 = vpop.xlane.xlu1 %4653 }
 0xb19   : > { %6505 = vmatprep.subr.mxu0 %v4728_v7  ;;  %v6400_v38 = vpop.f32.mrf.mxu0  ;;  %6422 = vmatmul.mubr.msk.f32.gmra.mxu0 %vm1475_vm1, %v6397_v47  ;;  %6918 = vrcp.f32 %v4654_v10 }
 0xb1a   : > { %6506 = vmatpush3.msra.mxu0 %v4728_v7  ;;  %v4656_v63 = vpop.xlane.xlu0 %4655 }
 0xb1b   : > { %6507 = vmatprep.subr.mxu0 %v9305_v42  ;;  %v4009_v19 = vpop.f32.mrf.mxu0  ;;  %6920 = vrcp.f32 %v4656_v63 }
 0xb1c   : > { %6508 = vmatpush3.msra.mxu0 %v9305_v42  ;;  %6424 = vmatprep.mubr.msk.f32.mxu0 %vm1475_vm1, %v4009_v19  ;;  %v6899_v42 = vpop.eup %6898 }
 0xb1d   : > { %6509 = vmatprep.subr.mxu0 %v9313_v54  ;;  %v6403_v48 = vpop.f32.mrf.mxu0  ;;  %6425 = vmatmul.mubr.msk.f32.gmra.mxu0 %vm1475_vm1, %v6400_v38  ;;  %v6901_v11 = vpop.eup %6900 }
 0xb1e   : > { %6510 = vmatpush3.msra.mxu0 %v9313_v54  ;;  %v6903_v3 = vpop.eup %6902  ;;  %v4698_v57 = vmul.f32 %v6901_v11, %v9233_v40  ;;  %v4660_v59 = vpop.xlane.xlu0 %4659 }
 0xb1f   : > { %6511 = vmatprep.subr.mxu0 %v9309_v23  ;;  %v4019_v7 = vpop.f32.mrf.mxu0  ;;  %v6905_v51 = vpop.eup %6904 }
 0xb20   : > { %6512 = vmatpush3.msra.mxu0 %v9309_v23  ;;  %6427 = vmatprep.mubr.msk.f32.mxu0 %vm1475_vm1, %v4019_v7  ;;  %v4697_v23 = vmul.f32 %v6899_v42, %v9230_v16  ;;  %v4699_v16 = vmul.f32 %v6903_v3, %v9238_v37 }
 0xb21   : > { %6513 = vmatprep.subr.mxu0 %v9321_v15  ;;  %v6406_v32 = vpop.f32.mrf.mxu0  ;;  %6428 = vmatmul.mubr.msk.f32.gmra.mxu0 %vm1475_vm1, %v6403_v48 }
 0xb22   : > { %6514 = vmatpush3.msra.mxu0 %v9321_v15  ;;  %v4658_v15 = vpop.xlane.xlu1 %4657  ;;  %v4664_v37 = vpop.xlane.xlu0 %4663 }
 0xb23   : > { %6515 = vmatprep.subr.mxu0 %v9317_v61  ;;  %v4029_v54 = vpop.f32.mrf.mxu0  ;;  %6922 = vrcp.f32 %v4658_v15 }
 0xb24   : > { %6516 = vmatpush3.msra.mxu0 %v9317_v61  ;;  %6430 = vmatprep.mubr.msk.f32.mxu0 %vm1475_vm1, %v4029_v54  ;;  %v6907_v61 = vpop.eup %6906  ;;  %6924 = vrcp.f32 %v4660_v59 }
 0xb25   : > { %6517 = vmatprep.subr.mxu0 %v9329_v34  ;;  %6431 = vmatmul.mubr.msk.f32.gmra.mxu0 %vm1475_vm1, %v6406_v32  ;;  %v6909_v21 = vpop.eup %6908  ;;  %v4701_v39 = vmul.f32 %v6907_v61, %v9246_v56 }
 0xb26   : > { %6518 = vmatpush3.msra.mxu0 %v9329_v34  ;;  %6521 = vmatprep.mubr.f32.mxu0 %v4697_v23  ;;  %v4700_v34 = vmul.f32 %v6905_v51, %v9241_v8  ;;  %v6911_v28 = vpop.eup %6910  ;;  %v4662_v47 = vpop.xlane.xlu1 %4661  ;;  %v4702_v40 = vmul.f32 %v6909_v21, %v9249_v4  ;;  %v3312_v23 = vadd.f32 %v9291_v22, %v8941_v44 }
 0xb27   : > { %6519 = vmatprep.subr.mxu0 %v9325_v35  ;;  %6926 = vrcp.f32 %v4662_v47  ;;  %v4703_v2 = vmul.f32 %v6911_v28, %v9254_v53  ;;  %v3332_v22 = vadd.f32 %v9299_v14, %v8949_v1  ;;  %v9781_v14 = vld [vmem:[#allocation20_spill] sm:$0xff] }
 0xb28   : > { %6520 = vmatpush3.msra.mxu0 %v9325_v35  ;;  %v6913_v35 = vpop.eup %6912  ;;  %6928 = vrcp.f32 %v4664_v37  ;;  %v3352_v47 = vadd.f32 %v9311_v45, %v9781_v14 }
 0xb29   : > { %6522 = vmatmul.mubr.f32.vlgmr.msra.gmra.mxu0 %v4698_v57  ;;  %v6915_v0 = vpop.eup %6914  ;;  %v4704_v8 = vmul.f32 %v6913_v35, %v9257_v30  ;;  %v9782_v35 = vld [vmem:[#allocation19_spill] sm:$0xff] }
 0xb2a   : > { %6524 = vmatprep.mubr.f32.mxu0 %v4699_v16  ;;  %v6917_v38 = vpop.eup %6916  ;;  %v4705_v56 = vmul.f32 %v6915_v0, %v9261_v13  ;;  %v3367_v37 = vadd.f32 %v9315_v9, %v9782_v35  ;;  %v9783_v0 = vld [vmem:[#allocation42_spill] sm:$0xff]  ;;  %v6933_v35 = vld [vmem:[%s7071_s15 + $0x10] sm:$0xff] }
 0xb2b   : > { %v6919_v33 = vpop.eup %6918  ;;  %v4706_v19 = vmul.f32 %v6917_v38, %v9263_v27 }
 0xb2c   : > { %v6921_v4 = vpop.eup %6920  ;;  %v4707_v48 = vmul.f32 %v6919_v33, %v9267_v26  ;;  %v4906_v26 = vld [vmem:[%s9569_s9 + $0x18] sm:$0xff] }
 0xb2d   : > { %6525 = vmatmul.mubr.f32.gmra.mxu0 %v4700_v34  ;;  %v4708_v53 = vmul.f32 %v6921_v4, %v9269_v20  ;;  %6545 = vmatprep.subr.mxu0 %v4906_v26  ;;  %v3307_v20 = vadd.f32 %v9285_v58, %v8935_v5  ;;  %v3327_v5 = vadd.f32 %v9293_v36, %v8943_v62  ;;  %v9778_v36 = vld [vmem:[#allocation23_spill] sm:$0xff]  ;;  %v9785_v33 = vld [vmem:[#allocation21_spill] sm:$0xff] }
 0xb2e   : > { %6527 = vmatprep.mubr.f32.mxu0 %v4701_v39  ;;  %6546 = vmatpush3.msra.mxu0 %v4906_v26  ;;  %v3347_v61 = vadd.f32 %v9301_v6, %v9778_v36 }
 0xb30   : > { %v6923_v31 = vpop.eup %6922 }
 0xb31   : > { %6528 = vmatmul.mubr.f32.gmra.mxu0 %v4702_v40  ;;  %v6925_v7 = vpop.eup %6924  ;;  %v4709_v42 = vmul.f32 %v6923_v31, %v9273_v29  ;;  %v9787_v31 = vld [vmem:[#allocation22_spill] sm:$0xff] }
 0xb32   : > { %6530 = vmatprep.mubr.f32.mxu0 %v4703_v2  ;;  %v4710_v13 = vmul.f32 %v6925_v7, %v9275_v18  ;;  %v3302_v18 = vadd.f32 %v9287_v12, %v8937_v25  ;;  %v3322_v12 = vadd.f32 %v9295_v49, %v8945_v17  ;;  %v9779_v49 = vld [vmem:[#allocation24_spill] sm:$0xff] }
 0xb33   : > { %v3342_v34 = vadd.f32 %v9303_v60, %v9779_v49  ;;  %v6931_v49 = vld [vmem:[%s7071_s15] sm:$0xff] }
 0xb34   : > { %v6927_v30 = vpop.eup %6926 }
 0xb35   : > { %6531 = vmatmul.mubr.f32.gmra.mxu0 %v4704_v8  ;;  %v6929_v10 = vpop.eup %6928  ;;  %v4711_v32 = vmul.f32 %v6927_v30, %v9279_v43  ;;  %v9784_v8 = vld [vmem:[#allocation41_spill] sm:$0xff] }
 0xb36   : > { %6533 = vmatprep.mubr.f32.mxu0 %v4705_v56  ;;  %v4712_v27 = vmul.f32 %v6929_v10, %v9281_v50  ;;  %v3317_v50 = vadd.f32 %v9289_v52, %v8939_v41  ;;  %v3337_v41 = vadd.f32 %v9297_v24, %v8947_v55  ;;  %v9780_v24 = vld [vmem:[#allocation18_spill] sm:$0xff]  ;;  %v3362_v38 = vadd.f32 %v9784_v8, %v9783_v0  ;;  %v6934_v8 = vld [vmem:[%s7071_s15 + $0x28] sm:$0xff] }
 0xb37   : > { %v3357_v39 = vadd.f32 %v9307_v46, %v9780_v24 }
 0xb39   : > { %6534 = vmatmul.mubr.f32.gmra.mxu0 %v4706_v19  ;;  %v9786_v19 = vld [vmem:[#allocation25_spill] sm:$0xff] }
 0xb3a   : > { %6536 = vmatprep.mubr.f32.mxu0 %v4707_v48  ;;  %v3377_v4 = vadd.f32 %v9786_v19, %v9785_v33  ;;  %v6935_v19 = vld [vmem:[%s7071_s15 + $0x20] sm:$0xff] }
 0xb3d   : > { %6537 = vmatmul.mubr.f32.gmra.mxu0 %v4708_v53  ;;  %v9788_v53 = vld [vmem:[#allocation26_spill] sm:$0xff] }
 0xb3e   : > { %6539 = vmatprep.mubr.f32.mxu0 %v4709_v42  ;;  %v3372_v7 = vadd.f32 %v9788_v53, %v9787_v31  ;;  %v6936_v53 = vld [vmem:[%s7071_s15 + $0x38] sm:$0xff] }
 0xb41   : > { %6540 = vmatmul.mubr.f32.gmra.mxu0 %v4710_v13 }
 0xb42   : > { %6542 = vmatprep.mubr.f32.mxu0 %v4711_v32 }
 0xb45   : > { %6543 = vmatmul.mubr.f32.gmra.mxu0 %v4712_v27 }
 0xbc8   : > { %v6411_v29 = vpop.f32.mrf.mxu0 }
 0xbc9   : > { %v9384_v54 = vadd.f32 %v6411_v29, %v3307_v20 }
 0xbca   : > { %v4153_v43 = vpop.f32.mrf.mxu0 }
 0xbcb   : > { %v9386_v11 = vadd.f32 %v4153_v43, %v3302_v18 }
 0xbcd   : > { %v6414_v63 = vpop.f32.mrf.mxu0 }
 0xbce   : > { %v9392_v3 = vadd.f32 %v6414_v63, %v3317_v50 }
 0xbcf   : > { %v4163_v15 = vpop.f32.mrf.mxu0 }
 0xbd0   : > { %v9396_v58 = vadd.f32 %v4163_v15, %v3312_v23 }
 0xbd1   : > { %v6417_v25 = vpop.f32.mrf.mxu0 }
 0xbd2   : > { %v9400_v57 = vadd.f32 %v6417_v25, %v3327_v5 }
 0xbd3   : > { %v4173_v51 = vpop.f32.mrf.mxu0 }
 0xbd4   : > { %v9404_v52 = vadd.f32 %v4173_v51, %v3322_v12 }
 0xbd5   : > { %v6420_v44 = vpop.f32.mrf.mxu0 }
 0xbd6   : > { %v9408_v16 = vadd.f32 %v6420_v44, %v3337_v41  ;;  %v9464_v44 = vld [vmem:[%s9570_s10] ss:$0 sm:$0xff] }
 0xbd7   : > { %v4183_v62 = vpop.f32.mrf.mxu0 }
 0xbd8   : > { %v9412_v59 = vadd.f32 %v4183_v62, %v3332_v22  ;;  %v6930_v62 = vld [vmem:[%s7071_s15 + $0x8] sm:$0xff] }
 0xbd9   : > { %v6423_v17 = vpop.f32.mrf.mxu0 }
 0xbda   : > { %v9416_v21 = vadd.f32 %v6423_v17, %v3347_v61 }
 0xbdb   : > { %v4193_v55 = vpop.f32.mrf.mxu0 }
 0xbdc   : > { %v9420_v28 = vadd.f32 %v4193_v55, %v3342_v34 }
 0xbdd   : > { %v6426_v1 = vpop.f32.mrf.mxu0 }
 0xbde   : > { %v9424_v40 = vadd.f32 %v6426_v1, %v3357_v39  ;;  %v6932_v39 = vld [vmem:[%s7071_s15 + $0x18] sm:$0xff] }
 0xbdf   : > { %v4203_v6 = vpop.f32.mrf.mxu0 }
 0xbe0   : > { %v9428_v2 = vadd.f32 %v4203_v6, %v3352_v47 }
 0xbe1   : > { %v6429_v60 = vpop.f32.mrf.mxu0 }
 0xbe2   : > { %v9432_v56 = vadd.f32 %v6429_v60, %v3367_v37 }
 0xbe3   : > { %v4213_v46 = vpop.f32.mrf.mxu0 }
 0xbe4   : > { %v9436_v48 = vadd.f32 %v4213_v46, %v3362_v38 }
 0xbe5   : > { %v6432_v45 = vpop.f32.mrf.mxu0 }
 0xbe6   : > { %v9440_v42 = vadd.f32 %v6432_v45, %v3377_v4 }
 0xbe7   : > { %v4223_v9 = vpop.f32.mrf.mxu0 }
 0xbe8   : > { %v9442_v30 = vadd.f32 %v4223_v9, %v3372_v7 }
 0xbe9   : > { %v6523_v13 = vpop.f32.mrf.mxu0 }
 0xbeb   : > { %v4827_v10 = vpop.f32.mrf.mxu0 }
 0xbec   : > { %6547 = vmatprep.mubr.msk.f32.mxu0 %vm1475_vm1, %v4827_v10  ;;  %v6937_v10 = vld [vmem:[%s7071_s15 + $0x30] sm:$0xff] }
 0xbed   : > { %v6526_v32 = vpop.f32.mrf.mxu0  ;;  %6548 = vmatmul.mubr.msk.f32.vlgmr.msra.gmra.mxu0 %vm1475_vm1, %v6523_v13 }
 0xbef   : > { %v4837_v27 = vpop.f32.mrf.mxu0 }
 0xbf0   : > { %6550 = vmatprep.mubr.msk.f32.mxu0 %vm1475_vm1, %v4837_v27 }
 0xbf1   : > { %v6529_v26 = vpop.f32.mrf.mxu0  ;;  %6551 = vmatmul.mubr.msk.f32.gmra.mxu0 %vm1475_vm1, %v6526_v32 }
 0xbf3   : > { %v4847_v20 = vpop.f32.mrf.mxu0 }
 0xbf4   : > { %6553 = vmatprep.mubr.msk.f32.mxu0 %vm1475_vm1, %v4847_v20  ;;  %v6938_v20 = vld [vmem:[%s7071_s15 + $0x48] sm:$0xff] }
 0xbf5   : > { %v6532_v29 = vpop.f32.mrf.mxu0  ;;  %6554 = vmatmul.mubr.msk.f32.gmra.mxu0 %vm1475_vm1, %v6529_v26 }
 0xbf7   : > { %v4857_v18 = vpop.f32.mrf.mxu0 }
 0xbf8   : > { %6556 = vmatprep.mubr.msk.f32.mxu0 %vm1475_vm1, %v4857_v18 }
 0xbf9   : > { %v6535_v43 = vpop.f32.mrf.mxu0  ;;  %6557 = vmatmul.mubr.msk.f32.gmra.mxu0 %vm1475_vm1, %v6532_v29 }
 0xbfb   : > { %v4867_v50 = vpop.f32.mrf.mxu0 }
 0xbfc   : > { %6559 = vmatprep.mubr.msk.f32.mxu0 %vm1475_vm1, %v4867_v50  ;;  %v6939_v50 = vld [vmem:[%s7071_s15 + $0x40] sm:$0xff] }
 0xbfd   : > { %v6538_v63 = vpop.f32.mrf.mxu0  ;;  %6560 = vmatmul.mubr.msk.f32.gmra.mxu0 %vm1475_vm1, %v6535_v43 }
 0xbff   : > { %v4877_v23 = vpop.f32.mrf.mxu0 }
 0xc00   : > { %6562 = vmatprep.mubr.msk.f32.mxu0 %vm1475_vm1, %v4877_v23 }
 0xc01   : > { %v6541_v15 = vpop.f32.mrf.mxu0  ;;  %6563 = vmatmul.mubr.msk.f32.gmra.mxu0 %vm1475_vm1, %v6538_v63 }
 0xc03   : > { %v4887_v5 = vpop.f32.mrf.mxu0 }
 0xc04   : > { %6565 = vmatprep.mubr.msk.f32.mxu0 %vm1475_vm1, %v4887_v5  ;;  %v6940_v5 = vld [vmem:[%s7071_s15 + $0x58] sm:$0xff] }
 0xc05   : > { %v6544_v25 = vpop.f32.mrf.mxu0  ;;  %6566 = vmatmul.mubr.msk.f32.gmra.mxu0 %vm1475_vm1, %v6541_v15 }
 0xc07   : > { %v4897_v12 = vpop.f32.mrf.mxu0 }
 0xc08   : > { %6568 = vmatprep.mubr.msk.f32.mxu0 %vm1475_vm1, %v4897_v12 }
 0xc09   : > { %6569 = vmatmul.mubr.msk.f32.gmra.mxu0 %vm1475_vm1, %v6544_v25 }
 0xcad   : > { %v6549_v51 = vpop.f32.mrf.mxu0 }
 0xcae   : > { %v5101_v41 = vadd.f32 %v6549_v51, %v9384_v54 }
 0xcaf   : > { %v5021_v22 = vpop.f32.mrf.mxu0 }
 0xcb0   : > { %v5117_v36 = vadd.f32 %v6930_v62, %v5101_v41  ;;  %v5100_v61 = vadd.f32 %v5021_v22, %v9386_v11  ;;  %v6941_v41 = vld [vmem:[%s7071_s15 + $0x50] sm:$0xff] }
 0xcb1   : > { %v6552_v17 = vpop.f32.mrf.mxu0 }
 0xcb2   : > { %v5140_v54 = vadd.f32 %v9464_v44, %v5117_v36  ;;  %v5116_v34 = vadd.f32 %v6931_v49, %v5100_v61  ;;  %v5103_v55 = vadd.f32 %v6552_v17, %v9392_v3  ;;  %v6942_v61 = vld [vmem:[%s7071_s15 + $0x68] sm:$0xff] }
 0xcb3   : > { %v5031_v24 = vpop.f32.mrf.mxu0 }
 0xcb4   : > { %5156 = vst.msk [vmem:[%s9472_s16 + $0x8] sm:$0xff] %vm554_vm0, %v5140_v54  ;;  %v5139_v11 = vadd.f32 %v9464_v44, %v5116_v34  ;;  %v5119_v1 = vadd.f32 %v6932_v39, %v5103_v55  ;;  %v5102_v14 = vadd.f32 %v5031_v24, %v9396_v58  ;;  %v6944_v39 = vld [vmem:[%s7071_s15 + $0x78] sm:$0xff] }
 0xcb5   : > { %v6555_v47 = vpop.f32.mrf.mxu0 }
 0xcb6   : > { %5155 = vst.msk [vmem:[%s9472_s16] sm:$0xff] %vm554_vm0, %v5139_v11  ;;  %v5142_v6 = vadd.f32 %v9464_v44, %v5119_v1  ;;  %v5118_v3 = vadd.f32 %v6933_v35, %v5102_v14  ;;  %v5105_v37 = vadd.f32 %v6555_v47, %v9400_v57  ;;  %v6945_v47 = vld [vmem:[%s7071_s15 + $0x70] sm:$0xff] }
 0xcb7   : > { %v5041_v60 = vpop.f32.mrf.mxu0 }
 0xcb8   : > { %5158 = vst.msk [vmem:[%s9472_s16 + $0x18] sm:$0xff] %vm554_vm0, %v5142_v6  ;;  %v5141_v0 = vadd.f32 %v9464_v44, %v5118_v3  ;;  %v5121_v58 = vadd.f32 %v6934_v8, %v5105_v37  ;;  %v5104_v38 = vadd.f32 %v5041_v60, %v9404_v52 }
 0xcb9   : > { %v6558_v46 = vpop.f32.mrf.mxu0 }
 0xcba   : > { %5157 = vst.msk [vmem:[%s9472_s16 + $0x10] sm:$0xff] %vm554_vm0, %v5141_v0  ;;  %v5144_v33 = vadd.f32 %v9464_v44, %v5121_v58  ;;  %v5120_v57 = vadd.f32 %v6935_v19, %v5104_v38  ;;  %v5107_v4 = vadd.f32 %v6558_v46, %v9408_v16 }
 0xcbb   : > { %v5051_v45 = vpop.f32.mrf.mxu0 }
 0xcbc   : > { %5160 = vst.msk [vmem:[%s9472_s16 + $0x28] sm:$0xff] %vm554_vm0, %v5144_v33  ;;  %v5143_v31 = vadd.f32 %v9464_v44, %v5120_v57  ;;  %v5123_v52 = vadd.f32 %v6936_v53, %v5107_v4  ;;  %v5106_v7 = vadd.f32 %v5051_v45, %v9412_v59 }
 0xcbd   : > { %v6561_v9 = vpop.f32.mrf.mxu0 }
 0xcbe   : > { %5159 = vst.msk [vmem:[%s9472_s16 + $0x20] sm:$0xff] %vm554_vm0, %v5143_v31  ;;  %v5146_v13 = vadd.f32 %v9464_v44, %v5123_v52  ;;  %v5122_v16 = vadd.f32 %v6937_v10, %v5106_v7  ;;  %v5109_v32 = vadd.f32 %v6561_v9, %v9416_v21 }
 0xcbf   : > { %v5061_v27 = vpop.f32.mrf.mxu0 }
 0xcc0   : > { %5162 = vst.msk [vmem:[%s9472_s16 + $0x38] sm:$0xff] %vm554_vm0, %v5146_v13  ;;  %v5145_v26 = vadd.f32 %v9464_v44, %v5122_v16  ;;  %v5125_v59 = vadd.f32 %v6938_v20, %v5109_v32  ;;  %v5108_v29 = vadd.f32 %v5061_v27, %v9420_v28 }
 0xcc1   : > { %v6564_v18 = vpop.f32.mrf.mxu0 }
 0xcc2   : > { %5161 = vst.msk [vmem:[%s9472_s16 + $0x30] sm:$0xff] %vm554_vm0, %v5145_v26  ;;  %v5148_v43 = vadd.f32 %v9464_v44, %v5125_v59  ;;  %v5124_v21 = vadd.f32 %v6939_v50, %v5108_v29  ;;  %v5111_v63 = vadd.f32 %v6564_v18, %v9424_v40 }
 0xcc3   : > { %v5071_v23 = vpop.f32.mrf.mxu0 }
 0xcc4   : > { %5164 = vst.msk [vmem:[%s9472_s16 + $0x48] sm:$0xff] %vm554_vm0, %v5148_v43  ;;  %v5147_v15 = vadd.f32 %v9464_v44, %v5124_v21  ;;  %v5127_v28 = vadd.f32 %v6940_v5, %v5111_v63  ;;  %v5110_v25 = vadd.f32 %v5071_v23, %v9428_v2 }
 0xcc5   : > { %v6567_v12 = vpop.f32.mrf.mxu0 }
 0xcc6   : > { %5163 = vst.msk [vmem:[%s9472_s16 + $0x40] sm:$0xff] %vm554_vm0, %v5147_v15  ;;  %v5150_v51 = vadd.f32 %v9464_v44, %v5127_v28  ;;  %v5126_v40 = vadd.f32 %v6941_v41, %v5110_v25  ;;  %v5113_v22 = vadd.f32 %v6567_v12, %v9432_v56  ;;  %v6943_v56 = vld [vmem:[%s7071_s15 + $0x60] sm:$0xff] }
 0xcc7   : > { %v5081_v62 = vpop.f32.mrf.mxu0 }
 0xcc8   : > { %5166 = vst.msk [vmem:[%s9472_s16 + $0x58] sm:$0xff] %vm554_vm0, %v5150_v51  ;;  %v5149_v36 = vadd.f32 %v9464_v44, %v5126_v40  ;;  %v5129_v2 = vadd.f32 %v6942_v61, %v5113_v22  ;;  %v5112_v17 = vadd.f32 %v5081_v62, %v9436_v48 }
 0xcc9   : > { %v6570_v54 = vpop.f32.mrf.mxu0 }
 0xcca   : > { %5165 = vst.msk [vmem:[%s9472_s16 + $0x50] sm:$0xff] %vm554_vm0, %v5149_v36  ;;  %v5152_v49 = vadd.f32 %v9464_v44, %v5129_v2  ;;  %v5128_v34 = vadd.f32 %v6943_v56, %v5112_v17  ;;  %v5115_v55 = vadd.f32 %v6570_v54, %v9440_v42 }
 0xccb   : > { %v5091_v24 = vpop.f32.mrf.mxu0 }
 0xccc   : > { %5168 = vst.msk [vmem:[%s9472_s16 + $0x68] sm:$0xff] %vm554_vm0, %v5152_v49  ;;  %v5151_v11 = vadd.f32 %v9464_v44, %v5128_v34  ;;  %v5131_v1 = vadd.f32 %v6944_v39, %v5115_v55  ;;  %v5114_v48 = vadd.f32 %v5091_v24, %v9442_v30 }
 0xcce   : > { %5167 = vst.msk [vmem:[%s9472_s16 + $0x60] sm:$0xff] %vm554_vm0, %v5151_v11  ;;  %v5154_v14 = vadd.f32 %v9464_v44, %v5131_v1  ;;  %v5130_v6 = vadd.f32 %v6945_v47, %v5114_v48 }
 0xcd0   : > { %5170 = vst.msk [vmem:[%s9472_s16 + $0x78] sm:$0xff] %vm554_vm0, %v5154_v14  ;;  %v5153_v35 = vadd.f32 %v9464_v44, %v5130_v6 }
 0xcd2   : > { %5169 = vst.msk [vmem:[%s9472_s16 + $0x70] sm:$0xff] %vm554_vm0, %v5153_v35 }
 0xcd3 PF: > { %s23_s27 = sadd.s32 1, %s6968_s27   ;;  %s9789_s25 = smov %s6964_s26 }
 0xcd4   : > { %p20_p5 = scmp.ge.s32.totalorder %s23_s27, 4   ;;  %s9790_s26 = smov %s9792_s28 }
 0xcd6   :  { %22 = sbr.rel (!%p20_p5) target bundleno = 2 (0x2), region = 108 }

</bundles_post_ra>
